<compile_context>
chip_gen: v7x
topology: tpu7x:2x2x1
jax: 0.10.0
libtpu: 0.0.40
codegen_flags: <defaults>
</compile_context>

<pallas_src>
import jax
import jax.numpy as jnp
from jax.experimental import pallas as pl
from jax.experimental.pallas import tpu as pltpu

# Small config consistent with the module (keeps the 4x ffn ratio of Config).
EMBED = 256          # config.embedding_dims (scaled down)
FFN = 1024           # config.ffn_dims (scaled down, 4x embed)
BATCH = 4
SEQ = 128            # more tokens folded into M per review feedback
TF = 256             # F tile (streamed dim), multiple of 128
N_SPLIT = 2          # F-halves; maps to the two TensorCores on v7x
INIT_STD = 0.02


def llama_mlp_kernel(x_ref, wgu_ref, bgu_ref, wd_ref, o_ref, acc_ref):
    """SwiGLU MLP over one F tile of one F-half.

    Refs (per grid step):
      x_ref   : (M, C)      f32   (resident across the inner F axis)
      wgu_ref : (C, 2*tf)   bf16  fused [gate | up] columns for this F tile
      bgu_ref : (1, 2*tf)   f32   fused [gate | up] bias for this F tile
      wd_ref  : (tf, C)     bf16  down_proj rows for this F tile
      o_ref   : (1, M, C)   f32   partial output for this F-half
      acc_ref : (M, C)      f32   VMEM accumulator scratch
    """
    k = pl.program_id(1)                      # F tile within this half (reduction axis)

    @pl.when(k == 0)
    def _init():
        acc_ref[...] = jnp.zeros_like(acc_ref)

    # Cast activations to bf16 for the MXU on the VPU (kernel is weight-DMA-bound,
    # so this is free filler and avoids an extra HBM round trip in the wrapper).
    x = x_ref[...].astype(jnp.bfloat16)                                   # (M, C)

    # Fused gate|up projection: one weight stream, one MXU pass, one bias add.
    gu = jnp.dot(x, wgu_ref[...], preferred_element_type=jnp.float32) + bgu_ref[...]
    tf = gu.shape[-1] // 2
    g = gu[:, :tf]                                                        # gate_proj
    v = gu[:, tf:]                                                        # up_proj

    # Exact SiLU: g * sigmoid(g); exp goes to the EUP.  (Non-approx, per review.)
    h = g * (1.0 / (1.0 + jnp.exp(-g))) * v                               # (M, tf) f32
    # ffn_dropout == identity in eval mode.

    acc_ref[...] += jnp.dot(h.astype(wd_ref.dtype), wd_ref[...],
                            preferred_element_type=jnp.float32)

    @pl.when(k == pl.num_programs(1) - 1)
    def _finalize():
        o_ref[0] = acc_ref[...].astype(o_ref.dtype)


def prepare_params(wg, bg, wu, bu, wd, bd, *, tf):
    """One-time (init-time) parameter preparation.

    Fuses gate/up weights into a single (C, 2F) bf16 array whose columns are laid out
    in interleaved tf-blocks: [g_blk0 | u_blk0 | g_blk1 | u_blk1 | ...], so a
    (C, 2*tf) BlockSpec tile delivers matching gate+up columns in one DMA.
    """
    C, F = wg.shape
    assert F % tf == 0
    nblk = F // tf
    wg_blk = wg.reshape(C, nblk, tf)
    wu_blk = wu.reshape(C, nblk, tf)
    wgu = jnp.concatenate([wg_blk, wu_blk], axis=2).reshape(C, 2 * F).astype(jnp.bfloat16)
    bg_blk = bg.reshape(nblk, tf)
    bu_blk = bu.reshape(nblk, tf)
    bgu = jnp.concatenate([bg_blk, bu_blk], axis=1).reshape(1, 2 * F).astype(jnp.float32)
    wd_b = wd.astype(jnp.bfloat16)
    bd2 = bd.reshape(1, C).astype(jnp.float32)
    return wgu, bgu, wd_b, bd2


def llama_mlp(x, wgu, bgu, wd, bd, *, tf=TF, n_split=N_SPLIT):
    """x: (B, T, C) f32; wgu/bgu/wd/bd from prepare_params; returns (B, T, C) f32."""
    B, T, C = x.shape
    F = wd.shape[0]
    M = B * T
    nblk = F // tf
    assert M % 8 == 0 and C % 128 == 0 and tf % 128 == 0
    assert nblk % n_split == 0
    kt = nblk // n_split                      # F tiles per half

    x2 = x.reshape(M, C)                      # free reshape; cast to bf16 in-kernel

    partial = pl.pallas_call(
        llama_mlp_kernel,
        out_shape=jax.ShapeDtypeStruct((n_split, M, C), jnp.float32),
        grid_spec=pltpu.PrefetchScalarGridSpec(
            num_scalar_prefetch=0,
            # axis 0: F-half ("parallel" -> one per TensorCore on v7x, no duplicated
            #         weight traffic); axis 1: F tile stream ("arbitrary", accumulated).
            grid=(n_split, kt),
            in_specs=[
                pl.BlockSpec((M, C), lambda c, k: (0, 0)),                # x (resident)
                pl.BlockSpec((C, 2 * tf), lambda c, k: (0, c * kt + k)),  # fused gate|up W tile
                pl.BlockSpec((1, 2 * tf), lambda c, k: (0, c * kt + k)),  # fused gate|up bias tile
                pl.BlockSpec((tf, C), lambda c, k: (c * kt + k, 0)),      # down_proj W tile
            ],
            out_specs=pl.BlockSpec((1, M, C), lambda c, k: (c, 0, 0)),
            scratch_shapes=[pltpu.VMEM((M, C), jnp.float32)],
        ),
        compiler_params=pltpu.CompilerParams(
            dimension_semantics=("parallel", "arbitrary")),
    )(x2, wgu, bgu, wd)

    # Combine the per-half partial sums and add the down_proj bias (one tiny fused
    # XLA op; negligible vs. weight traffic).
    out = partial.sum(axis=0) + bd
    return out.reshape(B, T, C)


def reference(x, wg, bg, wu, bu, wd, bd):
    """Plain-JAX f32 mirror of the PyTorch forward (eval mode, no dropout)."""
    u = jax.nn.silu(x @ wg + bg)
    v = x @ wu + bu
    return (u * v) @ wd + bd


if __name__ == "__main__":
    key = jax.random.PRNGKey(0)
    kx, kg, ku, kd = jax.random.split(key, 4)

    x = jax.random.normal(kx, (BATCH, SEQ, EMBED), dtype=jnp.float32)
    # Weights: normal(0, init_std), biases: zeros — same init as the module.
    wg = INIT_STD * jax.random.normal(kg, (EMBED, FFN), dtype=jnp.float32)
    wu = INIT_STD * jax.random.normal(ku, (EMBED, FFN), dtype=jnp.float32)
    wd = INIT_STD * jax.random.normal(kd, (FFN, EMBED), dtype=jnp.float32)
    bg = jnp.zeros((FFN,), dtype=jnp.float32)
    bu = jnp.zeros((FFN,), dtype=jnp.float32)
    bd = jnp.zeros((EMBED,), dtype=jnp.float32)

    # One-time parameter preparation (hoisted out of the per-call path).
    wgu_b, bgu_f, wd_b, bd_f = prepare_params(wg, bg, wu, bu, wd, bd, tf=TF)
    wgu_b, bgu_f, wd_b, bd_f = jax.block_until_ready((wgu_b, bgu_f, wd_b, bd_f))

    out = llama_mlp(x, wgu_b, bgu_f, wd_b, bd_f, tf=TF, n_split=N_SPLIT)
    out = jax.block_until_ready(out)

    ref = reference(x, wg, bg, wu, bu, wd, bd)
    assert out.shape == (BATCH, SEQ, EMBED)
    # bf16 matmul operands vs f32 reference -> loose-but-meaningful tolerance.
    assert jnp.allclose(out, ref, atol=1e-2, rtol=5e-2), "Pallas kernel mismatch vs reference"
    print("KERNEL_OK")
</pallas_src>

<mosaic_0001>
module attributes {stable_mosaic.version = 11 : i64} {
  func.func @llama_mlp_kernel(%arg0: i32, %arg1: i32, %arg2: memref<512x256xf32, #tpu.memory_space<vmem>>, %arg3: memref<256x512xbf16, #tpu.memory_space<vmem>>, %arg4: memref<1x512xf32, #tpu.memory_space<vmem>>, %arg5: memref<256x256xbf16, #tpu.memory_space<vmem>>, %arg6: memref<1x512x256xf32, #tpu.memory_space<vmem>>, %arg7: memref<512x256xf32, #tpu.memory_space<vmem>>) attributes {dimension_semantics = [#tpu.dimension_semantics<parallel>, #tpu.dimension_semantics<arbitrary>], iteration_bounds = array<i64: 2, 2>, scalar_prefetch = 0 : i64, scratch_operands = 1 : i64, tpu.core_type = #tpu.core_type<tc>, window_params = [{pipeline_mode = #tpu.pipeline_mode<synchronous>, transform_indices = @transform_0, window_bounds = array<i64: 512, 256>}, {transform_indices = @transform_1, window_bounds = array<i64: 256, 512>}, {transform_indices = @transform_2, window_bounds = array<i64: 1, 512>}, {transform_indices = @transform_3, window_bounds = array<i64: 256, 256>}, {transform_indices = @transform_4, window_bounds = array<i64: 1, 512, 256>}]} {
    %c0_i32 = arith.constant 0 : i32
    %0 = arith.cmpi eq, %arg1, %c0_i32 : i32
    %1 = arith.extui %0 : i1 to i32
    %c0_i32_0 = arith.constant 0 : i32
    %2 = arith.cmpi ne, %1, %c0_i32_0 : i32
    scf.if %2 {
      %cst_17 = arith.constant 0.000000e+00 : f32
      %30 = vector.broadcast %cst_17 : f32 to vector<512x256xf32>
      %c0_18 = arith.constant 0 : index
      %c0_19 = arith.constant 0 : index
      %31 = vector.load %arg7[%c0_18, %c0_19] : memref<512x256xf32, #tpu.memory_space<vmem>>, vector<512x256xf32>
      tpu.vector_store %arg7[%c0_18, %c0_19], %30 {strides = array<i32>} : memref<512x256xf32, #tpu.memory_space<vmem>>, vector<512x256xf32>,
    } else {
    }
    %c0 = arith.constant 0 : index
    %c0_1 = arith.constant 0 : index
    %3 = vector.load %arg2[%c0, %c0_1] : memref<512x256xf32, #tpu.memory_space<vmem>>, vector<512x256xf32>
    %4 = arith.truncf %3 : vector<512x256xf32> to vector<512x256xbf16>
    %c0_2 = arith.constant 0 : index
    %c0_3 = arith.constant 0 : index
    %5 = vector.load %arg3[%c0_2, %c0_3] : memref<256x512xbf16, #tpu.memory_space<vmem>>, vector<256x512xbf16>
    %cst = arith.constant dense<0.000000e+00> : vector<512x512xf32>
    %6 = tpu.matmul %4, %5, %cst {dimension_numbers = #tpu.dot_dimension_numbers<[1], [0], [0], [1], [0, 0, 1, 1], [], []>} : vector<512x256xbf16>, vector<256x512xbf16>, vector<512x512xf32> -> vector<512x512xf32>
    %c0_4 = arith.constant 0 : index
    %c0_5 = arith.constant 0 : index
    %7 = vector.load %arg4[%c0_4, %c0_5] : memref<1x512xf32, #tpu.memory_space<vmem>>, vector<1x512xf32>
    %8 = vector.broadcast %7 : vector<1x512xf32> to vector<512x512xf32>
    %9 = arith.addf %6, %8 : vector<512x512xf32>
    %10 = vector.extract_strided_slice %9 {offsets = [0, 0], sizes = [512, 256], strides = [1, 1]} : vector<512x512xf32> to vector<512x256xf32>
    %11 = vector.extract_strided_slice %9 {offsets = [0, 256], sizes = [512, 256], strides = [1, 1]} : vector<512x512xf32> to vector<512x256xf32>
    %cst_6 = arith.constant 0.000000e+00 : f32
    %12 = vector.broadcast %cst_6 : f32 to vector<512x256xf32>
    %13 = arith.subf %12, %10 : vector<512x256xf32>
    %14 = math.exp %13 : vector<512x256xf32>
    %cst_7 = arith.constant 1.000000e+00 : f32
    %15 = vector.broadcast %cst_7 : f32 to vector<512x256xf32>
    %16 = arith.addf %15, %14 : vector<512x256xf32>
    %cst_8 = arith.constant 1.000000e+00 : f32
    %17 = vector.broadcast %cst_8 : f32 to vector<512x256xf32>
    %18 = arith.divf %17, %16 : vector<512x256xf32>
    %19 = arith.mulf %10, %18 : vector<512x256xf32>
    %20 = arith.mulf %19, %11 : vector<512x256xf32>
    %c0_9 = arith.constant 0 : index
    %c0_10 = arith.constant 0 : index
    %21 = vector.load %arg7[%c0_9, %c0_10] : memref<512x256xf32, #tpu.memory_space<vmem>>, vector<512x256xf32>
    %22 = arith.truncf %20 : vector<512x256xf32> to vector<512x256xbf16>
    %c0_11 = arith.constant 0 : index
    %c0_12 = arith.constant 0 : index
    %23 = vector.load %arg5[%c0_11, %c0_12] : memref<256x256xbf16, #tpu.memory_space<vmem>>, vector<256x256xbf16>
    %cst_13 = arith.constant dense<0.000000e+00> : vector<512x256xf32>
    %24 = tpu.matmul %22, %23, %cst_13 {dimension_numbers = #tpu.dot_dimension_numbers<[1], [0], [0], [1], [0, 0, 1, 1], [], []>} : vector<512x256xbf16>, vector<256x256xbf16>, vector<512x256xf32> -> vector<512x256xf32>
    %25 = arith.addf %21, %24 : vector<512x256xf32>
    %c0_14 = arith.constant 0 : index
    %c0_15 = arith.constant 0 : index
    %26 = vector.load %arg7[%c0_14, %c0_15] : memref<512x256xf32, #tpu.memory_space<vmem>>, vector<512x256xf32>
    tpu.vector_store %arg7[%c0_14, %c0_15], %25 {strides = array<i32>} : memref<512x256xf32, #tpu.memory_space<vmem>>, vector<512x256xf32>,
    %c1_i32 = arith.constant 1 : i32
    %27 = arith.cmpi eq, %arg1, %c1_i32 : i32
    %28 = arith.extui %27 : i1 to i32
    %c0_i32_16 = arith.constant 0 : i32
    %29 = arith.cmpi ne, %28, %c0_i32_16 : i32
    scf.if %29 {
      %c0_17 = arith.constant 0 : index
      %c0_18 = arith.constant 0 : index
      %30 = vector.load %arg7[%c0_17, %c0_18] : memref<512x256xf32, #tpu.memory_space<vmem>>, vector<512x256xf32>
      %c0_19 = arith.constant 0 : index
      %c0_20 = arith.constant 0 : index
      %c0_21 = arith.constant 0 : index
      %31 = vector.load %arg6[%c0_19, %c0_20, %c0_21] : memref<1x512x256xf32, #tpu.memory_space<vmem>>, vector<1x512x256xf32>
      %32 = vector.shape_cast %31 : vector<1x512x256xf32> to vector<512x256xf32>
      %33 = vector.shape_cast %30 : vector<512x256xf32> to vector<1x512x256xf32>
      tpu.vector_store %arg6[%c0_19, %c0_20, %c0_21], %33 {strides = array<i32>} : memref<1x512x256xf32, #tpu.memory_space<vmem>>, vector<1x512x256xf32>,
    } else {
    }
    return
  }
  func.func @transform_0(%arg0: i32, %arg1: i32) -> (i32, i32) {
    %c0_i32 = arith.constant 0 : i32
    %c0_i32_0 = arith.constant 0 : i32
    %c0_i32_1 = arith.constant 0 : i32
    return %c0_i32, %c0_i32_0 : i32, i32
  }
  func.func @transform_1(%arg0: i32, %arg1: i32) -> (i32, i32) {
    %c2_i32 = arith.constant 2 : i32
    %0 = arith.muli %arg0, %c2_i32 : i32
    %1 = arith.addi %0, %arg1 : i32
    %c0_i32 = arith.constant 0 : i32
    %c0_i32_0 = arith.constant 0 : i32
    return %c0_i32, %1 : i32, i32
  }
  func.func @transform_2(%arg0: i32, %arg1: i32) -> (i32, i32) {
    %c2_i32 = arith.constant 2 : i32
    %0 = arith.muli %arg0, %c2_i32 : i32
    %1 = arith.addi %0, %arg1 : i32
    %c0_i32 = arith.constant 0 : i32
    %c0_i32_0 = arith.constant 0 : i32
    return %c0_i32, %1 : i32, i32
  }
  func.func @transform_3(%arg0: i32, %arg1: i32) -> (i32, i32) {
    %c2_i32 = arith.constant 2 : i32
    %0 = arith.muli %arg0, %c2_i32 : i32
    %1 = arith.addi %0, %arg1 : i32
    %c0_i32 = arith.constant 0 : i32
    %c0_i32_0 = arith.constant 0 : i32
    return %1, %c0_i32 : i32, i32
  }
  func.func @transform_4(%arg0: i32, %arg1: i32) -> (i32, i32, i32) {
    %c0_i32 = arith.constant 0 : i32
    %c0_i32_0 = arith.constant 0 : i32
    %c0_i32_1 = arith.constant 0 : i32
    return %arg0, %c0_i32, %c0_i32_0 : i32, i32, i32
  }
}

</mosaic_0001>

<bundles_post_ra>
// kernel: tpu_custom_call.1
= control target key start
LH: loop header
LB: loop body
LE: loop exit
PB: predicated region body
PF: predicated region fallthrough
CT: control target
= control target key end

     0   :  { %s8677_s0 = inlined_call_operand.hbm [shape: f32[512,256], index: 0, kind: input, shape index: {}]   ;;  %s8678_s1 = inlined_call_operand.hbm [shape: bf16[256,2048], index: 1, kind: input, shape index: {}]   ;;  %s8679_s2 = inlined_call_operand.hbm [shape: f32[1,2048], index: 2, kind: input, shape index: {}]   ;;  %s8680_s3 = inlined_call_operand.hbm [shape: bf16[1024,256], index: 3, kind: input, shape index: {}]   ;;  %s8681_s4 = inlined_call_operand.hbm [shape: f32[2,512,256], index: 4, kind: output, shape index: {}]  }
   0x1   :  { %8789 = sst [smem:[#allocation158_spill]] %s8678_s1 }
   0x2   :  { %8790 = sst [smem:[#allocation159_spill]] %s8681_s4 }
   0x3   :  { %9 = vsyncpa [#allocation4], 0 }
   0x4   :  { %10 = vsyncpa [#allocation7], 0 }
   0x5   :  { %12 = vsyncpa [#allocation7 + $0x1], 0 }
   0x6   :  { %13 = vsyncpa [#allocation10], 0 }
   0x7   :  { %15 = vsyncpa [#allocation10 + $0x1], 0 }
   0x8   :  { %16 = vsyncpa [#allocation5], 0 }
   0x9   :  { %18 = vsyncpa [#allocation5 + $0x1], 0  ;;  %s5464_s15 = smov 0   ;;  %s5466_s16 = smov 0  }
   0xa   :  { %s5468_s17 = smov 0   ;;  %s5470_s18 = smov 0  }
   0xb   :  { %s5472_s19 = smov 0   ;;  %s5474_s20 = smov 0  }
   0xc   :  { %s5476_s21 = smov 0   ;;  %s5478_s22 = smov 0  }
   0xd   :  { %s5480_s23 = smov 0   ;;  %s5482_s24 = smov 0  }
   0xe   :  { %s5484_s25 = smov 0  }
   0xf LB: > { %8791 = sst [smem:[#allocation16_spill]] %s5392_s17  ;;  %s33_s26 = sadd.s32 1, %s5416_s23  ;;  %s5424_s25 = sphi %s5484_s25, %s24_s25   ;;  %s5420_s24 = sphi %s5482_s24, %s9270_s24   ;;  %s5416_s23 = sphi %s5480_s23, %s9269_s23   ;;  %s5412_s22 = sphi %s5478_s22, %s9268_s22   ;;  %s5408_s21 = sphi %s5476_s21, %s9275_s21   ;;  %s5404_s20 = sphi %s5474_s20, %s9266_s20   ;;  %s5400_s19 = sphi %s5472_s19, %s9274_s19   ;;  %s5396_s18 = sphi %s5470_s18, %s9273_s18   ;;  %s5392_s17 = sphi %s5468_s17, %s9264_s17   ;;  %s5388_s16 = sphi %s5466_s16, %s9272_s16   ;;  %s5384_s15 = sphi %s5464_s15, %s9271_s15  }
  0x10   : > { %8792 = sst [smem:[#allocation17_spill]] %s5404_s20  ;;  %s36_s27 = sadd.s32 1, %s5420_s24 }
  0x11   : > { %8793 = sst [smem:[#allocation18_spill]] %s5412_s22  ;;  %p34_p0 = scmp.ge.s32.totalorder %s33_s26, 2 }
  0x12   : > { %8794 = sst [smem:[#allocation19_spill]] %s5416_s23  ;;  %s4220_s28 = sshll.u32 %s5420_s24, 1 }
  0x13   : > { %8795 = sst [smem:[#allocation20_spill]] %s5420_s24  ;;  %s5523_s29 = sadd.s32 %s5416_s23, %s4220_s28 }
  0x14   : > { %s68_s30 = sadd.s32 1, %s5404_s20  ;;  %s9277_s26 = smov (%p34_p0, %s33_s26), 0 }
  0x15   : > { %8796 = sst [smem:[#allocation21_spill]] %s9277_s26  ;;  %s9279_s27 = smov (!%p34_p0, %s36_s27), %s5420_s24 }
  0x16   : > { %p75_p1 = scmp.ne.s32.totalorder %s5404_s20, %s5400_s19  ;;  %p76_p2 = scmp.eq.s32.totalorder %s5424_s25, 0 }
  0x17   : > { %p38_p3 = scmp.ge.s32.totalorder %s9279_s27, 2  ;;  %p4419_p5 = scmp.lt.s32.totalorder %s5424_s25, 4 }
  0x18   : > { %p5532_p4 = por %p76_p2, %p75_p1  ;;  %s204_s11 = sand.u32 1, %s5424_s25  }
  0x19   : > { %s9281_s27 = smov (%p38_p3, %s9279_s27), 0  ;;  %s5550_s12 = sand.u32 1, %s5404_s20  }
  0x1a   : > { %8798 = sst [smem:[#allocation22_spill]] %s9281_s27  ;;  %s4221_s6 = sshll.u32 %s9281_s27, 1 }
  0x1b   : > { %s151_s7 = ssub.s32 %s5420_s24, %s9281_s27  ;;  %s64_s8 = sadd.s32 %s4221_s6, %s9277_s26 }
  0x1c   : > { %p5543_p6 = scmp.eq.s32.totalorder %s151_s7, 0  ;;  %s65_s10 = ssub.s32 %s5523_s29, %s64_s8 }
  0x1d   : > { %p66_p7 = scmp.eq.s32.totalorder %s65_s10, 0  ;;  %s4351_s13 = sshll.u32 %s5523_s29, 8 }
  0x1e   : > { %s8799_s9 = scalar_select %p5543_p6, 1, 0 }
  0x1f   : > { %s5554_s14 = scalar_select %p66_p7, %s5404_s20, %s68_s30  }
  0x20   : > { %s4229_s28 = sshll.u32 %s5550_s12, 9  ;;  %s8801_s1 = sld [smem:[#allocation158_spill]] }
  0x21   : > { %8800 = sst [smem:[#allocation23_spill]] %s5554_s14  ;;  %p5566_p8 = pnand %p4419_p5, %p5532_p4 }
  0x22   : > { %s208_s7 = scalar_lea.vmem [#allocation6], %s4229_s28  ;;  %s5572_s8 = scalar_lea.sflag [#allocation7], %s204_s11 }
  0x23   : > { %s8802_s6 = scalar_select %p5566_p8, 1, 0 }
  0x24   : > { %s217_s30 = sshll.u32 %s208_s7, 4  ;;  %p5578_p10 = pneg %p5566_p8  ;;  %s5570_s30 = int_to_ptr.vmem [resolvable:$true] %s217_s30 }
  0x26   : > { %s5560_s22 = scalar_lea.hbm %s8801_s1, %s4351_s13  ;;  %s5181_s13 = scalar_lea.hbm %s8801_s1, 32768 }
  0x27   : > { %s5176_s4 = scalar_lea.hbm %s5560_s22, 8192  ;;  %p5182_p13 = scmp.lt.u32.totalorder %s5560_s22, %s8801_s1 }
  0x28   : > { %p5177_p9 = scmp.ne.s32.totalorder %s5560_s22, %s5176_s4  ;;  %p5183_p0 = scmp.lt.u32.totalorder %s5181_s13, %s5176_s4 }
  0x29   : > { %s8803_s23 = scalar_select %p5578_p10, 1, 0 }
  0x2a   : > { %p5179_p11 = pnand %p5578_p10, %p5177_p9  ;;  %p5184_p1 = por %p5183_p0, %p5182_p13 }
  0x2b   : > { %p5185_p2 = scmp.lt.u32.totalorder %s5176_s4, %s5560_s22 }
  0x2c   : > { %p5180_p12 = pneg %p5179_p11 }
  0x2d   : > { %p5186_p3 = por %p5185_p2, %p5184_p1 }
  0x2f   : > { %p5187_p4 = pnand %p5186_p3, %p5180_p12 }
  0x31   : > { %5190 = shalt.err (!%p5187_p4)
}
  0x32   : > { %s5191_s11 = scalar_lea.vmem %s5570_s30, 8192  ;;  %s5426_s5 = smov [#allocation6]  }
  0x33   : > { %p5192_p5 = scmp.ne.s32.totalorder %s5570_s30, %s5191_s11  ;;  %s5196_s10 = sshll.u32 %s5426_s5, 4  ;;  %s5197_s10 = int_to_ptr.vmem [resolvable:$false] %s5196_s10 }
  0x34   : > { %s5198_s28 = scalar_lea.vmem %s5197_s10, 16384  ;;  %p5199_p11 = scmp.lt.s32.totalorder %s5570_s30, %s5197_s10 }
  0x35   : > { %p5194_p7 = pnand %p5192_p5, %p5578_p10  ;;  %p5200_p6 = scmp.lt.s32.totalorder %s5198_s28, %s5191_s11 }
  0x37   : > { %p5195_p9 = pneg %p5194_p7  ;;  %p5201_p13 = por %p5200_p6, %p5199_p11 }
  0x39   : > { %p5202_p0 = pnand %p5201_p13, %p5195_p9 }
  0x3b   : > { %5205 = shalt.err (!%p5202_p0)
}
  0x3c   : > { %s5427_s4 = smov 1024   ;;  %s8684_s13 = smov 256  }
  0x3d   : > { %s8685_s7 = smov 16   ;;  %s5605_s11 = sadd.s32 4294967295, %s5424_s25  }
  0x3e   : > { %4407 = dma.hbm_to_vmem [thread:$0]  (!%p5566_p8), %s5560_s22, 8192, %s5570_s30, %s5572_s8, %s5427_s4, %s8684_s13, %s8685_s7  }
  0x3f   : > { %s4219_s5 = sadd.s32 4294967294, %s5424_s25   ;;  %p81_p6 = scmp.ne.s32.totalorder %s5400_s19, %s5396_s18 }
  0x40   : > { %p8692_p12 = scmp.eq.s32.totalorder %s5605_s11, 0  ;;  %s154_s10 = sadd.s32 1, %s5392_s17 }
  0x41   : > { %p164_p1 = scmp.ne.s32.totalorder %s5392_s17, %s5388_s16  ;;  %p165_p3 = scmp.eq.s32.totalorder %s5605_s11, 3 }
  0x42   : > { %p5616_p2 = por %p8692_p12, %p81_p6  ;;  %p8805_p4 = scmp.ne.s32.totalorder %s8799_s9, 0 }
  0x43   : > { %p5626_p5 = por %p165_p3, %p164_p1  ;;  %p170_p7 = scmp.ne.s32.totalorder %s5388_s16, %s5384_s15 }
  0x44   : > { %s8804_s28 = scalar_select %p5616_p2, 1, 0 }
  0x45   : > { %s5624_s22 = scalar_select %p8805_p4, %s5392_s17, %s154_s10  }
  0x46   : > { %s8807_s30 = scalar_select %p5626_p5, 1, 0 }
  0x47   : > { %8806 = sst [smem:[#allocation24_spill]] %s5624_s22  ;;  %p171_p9 = scmp.eq.s32.totalorder %s4219_s5, 3 }
  0x48   : > { %p4226_p11 = scmp.ge.s32.totalorder %s5424_s25, 1  ;;  %p178_p13 = scmp.lt.s32.totalorder %s5424_s25, 5 }
  0x49   : > { %p5634_p0 = por %p171_p9, %p170_p7  ;;  %s5430_s9 = smov [#allocation3]  }
  0x4a   : > { %p5638_p6 = pnand %p4226_p11, %p178_p13  ;;  %s190_s10 = sshll.u32 %s5430_s9, 4  ;;  %s5642_s10 = int_to_ptr.vmem [resolvable:$true] %s190_s10 }
  0x4b   : > { %s8808_s18 = scalar_select %p5634_p0, 1, 0 }
  0x4c   : > { %s8810_s4 = scalar_select %p5638_p6, 1, 0 }
  0x4d   : > { %8809 = sst [smem:[#allocation25_spill]] %s8808_s18  ;;  %s4233_s13 = sshll.u32 %s5550_s12, 2 }
  0x4e   : > { %p4400_p1 = pneg %p5638_p6  ;;  %s4352_s5 = sshll.u32 %s5523_s29, 6 }
  0x4f   : > { %s231_s7 = scalar_lea.vmem [#allocation8], %s4233_s13  ;;  %s5657_s14 = scalar_lea.hbm %s8679_s2, %s4352_s5 }
  0x50   : > { %s241_s1 = sshll.u32 %s231_s7, 4  ;;  %p5650_p3 = pnand %p4400_p1, %p8692_p12  ;;  %s5659_s1 = int_to_ptr.vmem [resolvable:$true] %s241_s1 }
  0x51   : > { %s4237_s9 = sshll.u32 %s5550_s12, 8  ;;  %s5206_s17 = scalar_lea.hbm %s8677_s0, 16384 }
  0x52   : > { %p5207_p4 = scmp.ne.s32.totalorder %s8677_s0, %s5206_s17  ;;  %p5208_p7 = pneg %p5650_p3 }
  0x53   : > { %p5213_p13 = scmp.lt.u32.totalorder %s5206_s17, %s8677_s0 }
  0x54   : > { %p5209_p9 = pnand %p5208_p7, %p5207_p4 }
  0x56   : > { %p5210_p11 = pneg %p5209_p9 }
  0x58   : > { %p5215_p1 = pnand %p5213_p13, %p5210_p11 }
  0x5a   : > { %5218 = shalt.err (!%p5215_p1)
}
  0x5b   : > { %s5219_s26 = scalar_lea.vmem %s5642_s10, 16384  ;;  %p5227_p2 = scmp.lt.s32.totalorder %s5642_s10, %s5642_s10 }
  0x5c   : > { %p5220_p12 = scmp.ne.s32.totalorder %s5642_s10, %s5219_s26  ;;  %p5228_p6 = scmp.lt.s32.totalorder %s5219_s26, %s5219_s26 }
  0x5e   : > { %p5222_p0 = pnand %p5220_p12, %p5208_p7  ;;  %p5229_p8 = por %p5228_p6, %p5227_p2 }
  0x60   : > { %p5223_p5 = pneg %p5222_p0 }
  0x62   : > { %p5230_p10 = pnand %p5229_p8, %p5223_p5 }
  0x64   : > { %5233 = shalt.err (!%p5230_p10)
}
  0x65   : > { %s8812_s20 = smov 16   ;;  %s8813_s22 = smov 256  }
  0x66   : > { %4403 = dma.hbm_to_vmem [thread:$0]  (!%p5650_p3), %s8677_s0, 16384, %s5642_s10, [#allocation4], %s8813_s22, %s8813_s22, %s8812_s20  }
  0x67   : > { %s5234_s5 = scalar_lea.hbm %s5657_s14, 64  ;;  %p8814_p2 = scmp.ne.s32.totalorder %s8803_s23, 0 }
  0x68   : > { %p5235_p12 = scmp.ne.s32.totalorder %s5657_s14, %s5234_s5  ;;  %s5239_s7 = scalar_lea.hbm %s8679_s2, 256 }
  0x69   : > { %p5240_p5 = scmp.lt.u32.totalorder %s5657_s14, %s8679_s2  ;;  %p5241_p0 = scmp.lt.u32.totalorder %s5239_s7, %s5234_s5 }
  0x6a   : > { %p5237_p8 = pnand %p5235_p12, %p8814_p2  ;;  %p5243_p4 = scmp.lt.u32.totalorder %s5234_s5, %s5657_s14 }
  0x6b   : > { %p5242_p6 = por %p5241_p0, %p5240_p5 }
  0x6c   : > { %p5238_p10 = pneg %p5237_p8 }
  0x6d   : > { %p5244_p7 = por %p5243_p4, %p5242_p6 }
  0x6f   : > { %p5245_p9 = pnand %p5244_p7, %p5238_p10 }
  0x71   : > { %5248 = shalt.err (!%p5245_p9)
}
  0x72   : > { %s5249_s10 = scalar_lea.vmem %s5659_s1, 64  ;;  %s5431_s20 = smov [#allocation8]  }
  0x73   : > { %p5250_p3 = scmp.ne.s32.totalorder %s5659_s1, %s5249_s10  ;;  %s5254_s22 = sshll.u32 %s5431_s20, 4  ;;  %s5255_s22 = int_to_ptr.vmem [resolvable:$false] %s5254_s22 }
  0x74   : > { %s5256_s17 = scalar_lea.vmem %s5255_s22, 128  ;;  %p5257_p1 = scmp.lt.s32.totalorder %s5659_s1, %s5255_s22 }
  0x75   : > { %p5252_p11 = pnand %p5250_p3, %p8814_p2  ;;  %p5258_p12 = scmp.lt.s32.totalorder %s5256_s17, %s5249_s10 }
  0x77   : > { %p5253_p13 = pneg %p5252_p11  ;;  %p5259_p8 = por %p5258_p12, %p5257_p1 }
  0x79   : > { %p5260_p5 = pnand %p5259_p8, %p5253_p13 }
  0x7b   : > { %5263 = shalt.err (!%p5260_p5)
}
  0x7c   : > { %p8815_p10 = scmp.ne.s32.totalorder %s8802_s6, 0  ;;  %s4354_s18 = sshll.u32 %s5523_s29, 12 }
  0x7d   : > { %s5712_s27 = scalar_lea.hbm %s8680_s3, %s4354_s18  ;;  %s252_s7 = scalar_lea.vmem [#allocation9], %s4237_s9 }
  0x7e   : > { %4410 = dma.hbm_to_vmem [thread:$0]  (!%p8815_p10), %s5657_s14, 64, %s5659_s1, %s5572_s8  }
  0x7f   : > { %s262_s24 = sshll.u32 %s252_s7, 4  ;;  %s249_s26 = scalar_lea.sflag [#allocation10], %s5550_s12  ;;  %s5716_s24 = int_to_ptr.vmem [resolvable:$true] %s262_s24 }
  0x80   : > { %s5264_s10 = scalar_lea.hbm %s5712_s27, 4096  ;;  %s5269_s14 = scalar_lea.hbm %s8680_s3, 16384 }
  0x81   : > { %p5265_p0 = scmp.ne.s32.totalorder %s5712_s27, %s5264_s10  ;;  %p5270_p7 = scmp.lt.u32.totalorder %s5712_s27, %s8680_s3 }
  0x82   : > { %p5271_p9 = scmp.lt.u32.totalorder %s5269_s14, %s5264_s10  ;;  %p5273_p11 = scmp.lt.u32.totalorder %s5264_s10, %s5712_s27 }
  0x83   : > { %p5267_p6 = pnand %p5265_p0, %p8814_p2 }
  0x84   : > { %p5272_p3 = por %p5271_p9, %p5270_p7 }
  0x85   : > { %p5268_p4 = pneg %p5267_p6 }
  0x86   : > { %p5274_p13 = por %p5273_p11, %p5272_p3 }
  0x88   : > { %p5275_p1 = pnand %p5274_p13, %p5268_p4 }
  0x8a   : > { %5278 = shalt.err (!%p5275_p1)
}
  0x8b   : > { %s5279_s9 = scalar_lea.vmem %s5716_s24, 4096  ;;  %s5432_s22 = smov [#allocation9]  }
  0x8c   : > { %p5280_p12 = scmp.ne.s32.totalorder %s5716_s24, %s5279_s9  ;;  %s5284_s17 = sshll.u32 %s5432_s22, 4  ;;  %s5285_s17 = int_to_ptr.vmem [resolvable:$false] %s5284_s17 }
  0x8d   : > { %s5286_s18 = scalar_lea.vmem %s5285_s17, 8192  ;;  %p5287_p0 = scmp.lt.s32.totalorder %s5716_s24, %s5285_s17 }
  0x8e   : > { %p5282_p8 = pnand %p5280_p12, %p8814_p2  ;;  %p5288_p6 = scmp.lt.s32.totalorder %s5286_s18, %s5279_s9 }
  0x90   : > { %p5283_p5 = pneg %p5282_p8  ;;  %p5289_p7 = por %p5288_p6, %p5287_p0 }
  0x92   : > { %p5290_p9 = pnand %p5289_p7, %p5283_p5 }
  0x94   : > { %5293 = shalt.err (!%p5290_p9)
}
  0x95   : > { %s5433_s5 = smov 128   ;;  %s5434_s13 = smov 8  }
  0x96   : > { %4413 = dma.hbm_to_vmem [thread:$0]  (!%p8815_p10), %s5712_s27, 4096, %s5716_s24, %s249_s26, %s5433_s5, %s5433_s5, %s5434_s13  }
  0x97   : > { %p8816_p2 = scmp.ne.s32.totalorder %s8810_s4, 0 }
  0x99   : > { %274 = sbr.rel (%p8816_p2) target bundleno = 1221 (0x4c5), region = 36 }
  0xa0   : > { %p8817_p4 = scmp.eq.s32.totalorder %s5605_s11, 0 }
  0xa2   : > { %5367 = dma.done.wait (%p8817_p4), [#allocation4], 16384   ;;  %p8818_p3 = pmov %p8817_p4 }
  0xa3   : > { %s280_s23 = sand.u32 1, %s5605_s11   ;;  %s282_s7 = sand.u32 1, %s5400_s19  }
  0xa4   : > { %5369 = vsyncadd (%p8818_p3), [#allocation4], 4294950912  ;;  %s4244_s10 = sshll.u32 %s282_s7, 9  ;;  %s281_s1 = scalar_lea.sflag [#allocation7], %s280_s23 }
  0xa5   : > { %s5750_s29 = scalar_lea.vmem [#allocation6], %s4244_s10  ;;  %p8819_p11 = scmp.ne.s32.totalorder %s8804_s28, 0 }
  0xa7   : > { %5371 = dma.done.wait (%p8819_p11), %s281_s1, 8256  }
  0xa8   : > { %5373 = vsyncadd (%p8819_p11), %s281_s1, 4294959040  ;;  %s4245_s12 = sshll.u32 %s282_s7, 2  ;;  %s4246_s6 = sshll.u32 %s282_s7, 8 }
  0xa9   : > { %s5756_s4 = scalar_lea.vmem [#allocation8], %s4245_s12  ;;  %s299_s27 = scalar_lea.sflag [#allocation10], %s282_s7 }
  0xaa   : > { %s5758_s24 = scalar_lea.vmem [#allocation9], %s4246_s6 }
  0xab   : > { %5375 = dma.done.wait (%p8819_p11), %s299_s27, 4096  }
  0xac   : > { %5377 = vsyncadd (%p8819_p11), %s299_s27, 4294963200  ;;  %s334_s11 = sand.u32 1, %s5388_s16   ;;  %p4248_p10 = scmp.ne.s32.totalorder %s5408_s21, 0 }
  0xad   : > { %s4247_s26 = sshll.u32 %s334_s11, 10  ;;  %v5435_v0 = vmov (!%p4248_p10), 0.0  }
  0xae   : > { %s5767_s14 = scalar_lea.vmem [#allocation11], %s4247_s26  ;;  %349 = sbr.rel (%p4248_p10) target bundleno = 238 (0xee), region = 56  ;;  %350 = vst [vmem:[#allocation2] sm:$0xff] (!%p4248_p10), %v5435_v0  ;;  %351 = vst [vmem:[#allocation2 + $0x8] sm:$0xff] (!%p4248_p10), %v5435_v0 }
  0xaf   : > { %352 = vst [vmem:[#allocation2 + $0x10] sm:$0xff] (!%p4248_p10), %v5435_v0  ;;  %353 = vst [vmem:[#allocation2 + $0x18] sm:$0xff] (!%p4248_p10), %v5435_v0 }
  0xb0   : > { %354 = vst [vmem:[#allocation2 + $0x20] sm:$0xff] (!%p4248_p10), %v5435_v0  ;;  %355 = vst [vmem:[#allocation2 + $0x28] sm:$0xff] (!%p4248_p10), %v5435_v0 }
  0xb1   : > { %356 = vst [vmem:[#allocation2 + $0x30] sm:$0xff] (!%p4248_p10), %v5435_v0  ;;  %357 = vst [vmem:[#allocation2 + $0x38] sm:$0xff] (!%p4248_p10), %v5435_v0 }
  0xb2   : > { %358 = vst [vmem:[#allocation2 + $0x40] sm:$0xff] (!%p4248_p10), %v5435_v0  ;;  %359 = vst [vmem:[#allocation2 + $0x48] sm:$0xff] (!%p4248_p10), %v5435_v0 }
  0xb3   : > { %360 = vst [vmem:[#allocation2 + $0x50] sm:$0xff] (!%p4248_p10), %v5435_v0  ;;  %361 = vst [vmem:[#allocation2 + $0x58] sm:$0xff] (!%p4248_p10), %v5435_v0 }
  0xb4   : > { %362 = vst [vmem:[#allocation2 + $0x60] sm:$0xff] (!%p4248_p10), %v5435_v0  ;;  %363 = vst [vmem:[#allocation2 + $0x68] sm:$0xff] (!%p4248_p10), %v5435_v0 }
  0xb5   : > { %364 = vst [vmem:[#allocation2 + $0x70] sm:$0xff] %v5435_v0  ;;  %365 = vst [vmem:[#allocation2 + $0x78] sm:$0xff] %v5435_v0 }
  0xb6   : > { %366 = vst [vmem:[#allocation2 + $0x80] sm:$0xff] %v5435_v0  ;;  %367 = vst [vmem:[#allocation2 + $0x88] sm:$0xff] %v5435_v0 }
  0xb7   : > { %368 = vst [vmem:[#allocation2 + $0x90] sm:$0xff] %v5435_v0  ;;  %369 = vst [vmem:[#allocation2 + $0x98] sm:$0xff] %v5435_v0 }
  0xb8   : > { %370 = vst [vmem:[#allocation2 + $0xa0] sm:$0xff] %v5435_v0  ;;  %371 = vst [vmem:[#allocation2 + $0xa8] sm:$0xff] %v5435_v0 }
  0xb9   : > { %372 = vst [vmem:[#allocation2 + $0xb0] sm:$0xff] %v5435_v0  ;;  %373 = vst [vmem:[#allocation2 + $0xb8] sm:$0xff] %v5435_v0 }
  0xba   : > { %374 = vst [vmem:[#allocation2 + $0xc0] sm:$0xff] %v5435_v0  ;;  %375 = vst [vmem:[#allocation2 + $0xc8] sm:$0xff] %v5435_v0 }
  0xbb   : > { %376 = vst [vmem:[#allocation2 + $0xd0] sm:$0xff] %v5435_v0  ;;  %377 = vst [vmem:[#allocation2 + $0xd8] sm:$0xff] %v5435_v0 }
  0xbc   : > { %378 = vst [vmem:[#allocation2 + $0xe0] sm:$0xff] %v5435_v0  ;;  %379 = vst [vmem:[#allocation2 + $0xe8] sm:$0xff] %v5435_v0 }
  0xbd   : > { %380 = vst [vmem:[#allocation2 + $0xf0] sm:$0xff] %v5435_v0  ;;  %381 = vst [vmem:[#allocation2 + $0xf8] sm:$0xff] %v5435_v0 }
  0xbe   : > { %382 = vst [vmem:[#allocation2 + $0x100] sm:$0xff] %v5435_v0  ;;  %383 = vst [vmem:[#allocation2 + $0x108] sm:$0xff] %v5435_v0 }
  0xbf   : > { %384 = vst [vmem:[#allocation2 + $0x110] sm:$0xff] %v5435_v0  ;;  %385 = vst [vmem:[#allocation2 + $0x118] sm:$0xff] %v5435_v0 }
  0xc0   : > { %386 = vst [vmem:[#allocation2 + $0x120] sm:$0xff] %v5435_v0  ;;  %387 = vst [vmem:[#allocation2 + $0x128] sm:$0xff] %v5435_v0 }
  0xc1   : > { %388 = vst [vmem:[#allocation2 + $0x130] sm:$0xff] %v5435_v0  ;;  %389 = vst [vmem:[#allocation2 + $0x138] sm:$0xff] %v5435_v0 }
  0xc2   : > { %390 = vst [vmem:[#allocation2 + $0x140] sm:$0xff] %v5435_v0  ;;  %391 = vst [vmem:[#allocation2 + $0x148] sm:$0xff] %v5435_v0 }
  0xc3   : > { %392 = vst [vmem:[#allocation2 + $0x150] sm:$0xff] %v5435_v0  ;;  %393 = vst [vmem:[#allocation2 + $0x158] sm:$0xff] %v5435_v0 }
  0xc4   : > { %394 = vst [vmem:[#allocation2 + $0x160] sm:$0xff] %v5435_v0  ;;  %395 = vst [vmem:[#allocation2 + $0x168] sm:$0xff] %v5435_v0 }
  0xc5   : > { %396 = vst [vmem:[#allocation2 + $0x170] sm:$0xff] %v5435_v0  ;;  %397 = vst [vmem:[#allocation2 + $0x178] sm:$0xff] %v5435_v0 }
  0xc6   : > { %398 = vst [vmem:[#allocation2 + $0x180] sm:$0xff] %v5435_v0  ;;  %399 = vst [vmem:[#allocation2 + $0x188] sm:$0xff] %v5435_v0 }
  0xc7   : > { %400 = vst [vmem:[#allocation2 + $0x190] sm:$0xff] %v5435_v0  ;;  %401 = vst [vmem:[#allocation2 + $0x198] sm:$0xff] %v5435_v0 }
  0xc8   : > { %402 = vst [vmem:[#allocation2 + $0x1a0] sm:$0xff] %v5435_v0  ;;  %403 = vst [vmem:[#allocation2 + $0x1a8] sm:$0xff] %v5435_v0 }
  0xc9   : > { %404 = vst [vmem:[#allocation2 + $0x1b0] sm:$0xff] %v5435_v0  ;;  %405 = vst [vmem:[#allocation2 + $0x1b8] sm:$0xff] %v5435_v0 }
  0xca   : > { %406 = vst [vmem:[#allocation2 + $0x1c0] sm:$0xff] %v5435_v0  ;;  %407 = vst [vmem:[#allocation2 + $0x1c8] sm:$0xff] %v5435_v0 }
  0xcb   : > { %408 = vst [vmem:[#allocation2 + $0x1d0] sm:$0xff] %v5435_v0  ;;  %409 = vst [vmem:[#allocation2 + $0x1d8] sm:$0xff] %v5435_v0 }
  0xcc   : > { %410 = vst [vmem:[#allocation2 + $0x1e0] sm:$0xff] %v5435_v0  ;;  %411 = vst [vmem:[#allocation2 + $0x1e8] sm:$0xff] %v5435_v0 }
  0xcd   : > { %412 = vst [vmem:[#allocation2 + $0x1f0] sm:$0xff] %v5435_v0  ;;  %413 = vst [vmem:[#allocation2 + $0x1f8] sm:$0xff] %v5435_v0 }
  0xce   : > { %414 = vst [vmem:[#allocation2 + $0x200] sm:$0xff] %v5435_v0  ;;  %415 = vst [vmem:[#allocation2 + $0x208] sm:$0xff] %v5435_v0 }
  0xcf   : > { %416 = vst [vmem:[#allocation2 + $0x210] sm:$0xff] %v5435_v0  ;;  %417 = vst [vmem:[#allocation2 + $0x218] sm:$0xff] %v5435_v0 }
  0xd0   : > { %418 = vst [vmem:[#allocation2 + $0x220] sm:$0xff] %v5435_v0  ;;  %419 = vst [vmem:[#allocation2 + $0x228] sm:$0xff] %v5435_v0 }
  0xd1   : > { %420 = vst [vmem:[#allocation2 + $0x230] sm:$0xff] %v5435_v0  ;;  %421 = vst [vmem:[#allocation2 + $0x238] sm:$0xff] %v5435_v0 }
  0xd2   : > { %422 = vst [vmem:[#allocation2 + $0x240] sm:$0xff] %v5435_v0  ;;  %423 = vst [vmem:[#allocation2 + $0x248] sm:$0xff] %v5435_v0 }
  0xd3   : > { %424 = vst [vmem:[#allocation2 + $0x250] sm:$0xff] %v5435_v0  ;;  %425 = vst [vmem:[#allocation2 + $0x258] sm:$0xff] %v5435_v0 }
  0xd4   : > { %426 = vst [vmem:[#allocation2 + $0x260] sm:$0xff] %v5435_v0  ;;  %427 = vst [vmem:[#allocation2 + $0x268] sm:$0xff] %v5435_v0 }
  0xd5   : > { %428 = vst [vmem:[#allocation2 + $0x270] sm:$0xff] %v5435_v0  ;;  %429 = vst [vmem:[#allocation2 + $0x278] sm:$0xff] %v5435_v0 }
  0xd6   : > { %430 = vst [vmem:[#allocation2 + $0x280] sm:$0xff] %v5435_v0  ;;  %431 = vst [vmem:[#allocation2 + $0x288] sm:$0xff] %v5435_v0 }
  0xd7   : > { %432 = vst [vmem:[#allocation2 + $0x290] sm:$0xff] %v5435_v0  ;;  %433 = vst [vmem:[#allocation2 + $0x298] sm:$0xff] %v5435_v0 }
  0xd8   : > { %434 = vst [vmem:[#allocation2 + $0x2a0] sm:$0xff] %v5435_v0  ;;  %435 = vst [vmem:[#allocation2 + $0x2a8] sm:$0xff] %v5435_v0 }
  0xd9   : > { %436 = vst [vmem:[#allocation2 + $0x2b0] sm:$0xff] %v5435_v0  ;;  %437 = vst [vmem:[#allocation2 + $0x2b8] sm:$0xff] %v5435_v0 }
  0xda   : > { %438 = vst [vmem:[#allocation2 + $0x2c0] sm:$0xff] %v5435_v0  ;;  %439 = vst [vmem:[#allocation2 + $0x2c8] sm:$0xff] %v5435_v0 }
  0xdb   : > { %440 = vst [vmem:[#allocation2 + $0x2d0] sm:$0xff] %v5435_v0  ;;  %441 = vst [vmem:[#allocation2 + $0x2d8] sm:$0xff] %v5435_v0 }
  0xdc   : > { %442 = vst [vmem:[#allocation2 + $0x2e0] sm:$0xff] %v5435_v0  ;;  %443 = vst [vmem:[#allocation2 + $0x2e8] sm:$0xff] %v5435_v0 }
  0xdd   : > { %444 = vst [vmem:[#allocation2 + $0x2f0] sm:$0xff] %v5435_v0  ;;  %445 = vst [vmem:[#allocation2 + $0x2f8] sm:$0xff] %v5435_v0 }
  0xde   : > { %446 = vst [vmem:[#allocation2 + $0x300] sm:$0xff] %v5435_v0  ;;  %447 = vst [vmem:[#allocation2 + $0x308] sm:$0xff] %v5435_v0 }
  0xdf   : > { %448 = vst [vmem:[#allocation2 + $0x310] sm:$0xff] %v5435_v0  ;;  %449 = vst [vmem:[#allocation2 + $0x318] sm:$0xff] %v5435_v0 }
  0xe0   : > { %450 = vst [vmem:[#allocation2 + $0x320] sm:$0xff] %v5435_v0  ;;  %451 = vst [vmem:[#allocation2 + $0x328] sm:$0xff] %v5435_v0 }
  0xe1   : > { %452 = vst [vmem:[#allocation2 + $0x330] sm:$0xff] %v5435_v0  ;;  %453 = vst [vmem:[#allocation2 + $0x338] sm:$0xff] %v5435_v0 }
  0xe2   : > { %454 = vst [vmem:[#allocation2 + $0x340] sm:$0xff] %v5435_v0  ;;  %455 = vst [vmem:[#allocation2 + $0x348] sm:$0xff] %v5435_v0 }
  0xe3   : > { %456 = vst [vmem:[#allocation2 + $0x350] sm:$0xff] %v5435_v0  ;;  %457 = vst [vmem:[#allocation2 + $0x358] sm:$0xff] %v5435_v0 }
  0xe4   : > { %458 = vst [vmem:[#allocation2 + $0x360] sm:$0xff] %v5435_v0  ;;  %459 = vst [vmem:[#allocation2 + $0x368] sm:$0xff] %v5435_v0 }
  0xe5   : > { %460 = vst [vmem:[#allocation2 + $0x370] sm:$0xff] %v5435_v0  ;;  %461 = vst [vmem:[#allocation2 + $0x378] sm:$0xff] %v5435_v0 }
  0xe6   : > { %462 = vst [vmem:[#allocation2 + $0x380] sm:$0xff] %v5435_v0  ;;  %463 = vst [vmem:[#allocation2 + $0x388] sm:$0xff] %v5435_v0 }
  0xe7   : > { %464 = vst [vmem:[#allocation2 + $0x390] sm:$0xff] %v5435_v0  ;;  %465 = vst [vmem:[#allocation2 + $0x398] sm:$0xff] %v5435_v0 }
  0xe8   : > { %466 = vst [vmem:[#allocation2 + $0x3a0] sm:$0xff] %v5435_v0  ;;  %467 = vst [vmem:[#allocation2 + $0x3a8] sm:$0xff] %v5435_v0 }
  0xe9   : > { %468 = vst [vmem:[#allocation2 + $0x3b0] sm:$0xff] %v5435_v0  ;;  %469 = vst [vmem:[#allocation2 + $0x3b8] sm:$0xff] %v5435_v0 }
  0xea   : > { %470 = vst [vmem:[#allocation2 + $0x3c0] sm:$0xff] %v5435_v0  ;;  %471 = vst [vmem:[#allocation2 + $0x3c8] sm:$0xff] %v5435_v0 }
  0xeb   : > { %472 = vst [vmem:[#allocation2 + $0x3d0] sm:$0xff] %v5435_v0  ;;  %473 = vst [vmem:[#allocation2 + $0x3d8] sm:$0xff] %v5435_v0 }
  0xec   : > { %474 = vst [vmem:[#allocation2 + $0x3e0] sm:$0xff] %v5435_v0  ;;  %475 = vst [vmem:[#allocation2 + $0x3e8] sm:$0xff] %v5435_v0 }
  0xed   : > { %476 = vst [vmem:[#allocation2 + $0x3f0] sm:$0xff] %v5435_v0  ;;  %477 = vst [vmem:[#allocation2 + $0x3f8] sm:$0xff] %v5435_v0 }
  0xee PF: > { %v4519_v1 = vld [vmem:[%s5750_s29 + $0x4] ss:$16 sps:$4 sm:$0xff]   ;;  %v4521_v2 = vld [vmem:[%s5750_s29] ss:$16 sps:$4 sm:$0xff]   ;;  %v543_v14 = vld [vmem:[#allocation3 + $0x208] sm:$0xff]  ;;  %p4345_p13 = scmp.ne.s32.totalorder %s5408_s21, 1 }
  0xef   : > { %4356 = vmatprep.subr.bf16.mxu1 %v4519_v1  ;;  %v4522_v3 = vld [vmem:[%s5750_s29 + $0x24] ss:$16 sps:$4 sm:$0xff]   ;;  %1076 = vmatprep.subr.bf16.mxu0 %v4519_v1  ;;  %v4524_v4 = vld [vmem:[%s5750_s29 + $0x20] ss:$16 sps:$4 sm:$0xff]   ;;  %v545_v15 = vld [vmem:[#allocation3 + $0x218] sm:$0xff] }
  0xf0   : > { %4372 = vmatpush1.bf16.msra.mxu1 %v4521_v2  ;;  %1077 = vmatpush1.bf16.msra.mxu0 %v4521_v2  ;;  %v4525_v5 = vld [vmem:[%s5750_s29 + $0x44] ss:$16 sps:$4 sm:$0xff]   ;;  %v4527_v6 = vld [vmem:[%s5750_s29 + $0x40] ss:$16 sps:$4 sm:$0xff]   ;;  %v5911_v16 = vpack.c.bf16 %v545_v15, %v543_v14  ;;  %v479_v29 = vld [vmem:[#allocation3 + $0x8] sm:$0xff] }
  0xf1   : > { %4357 = vmatprep.subr.bf16.mxu1 %v4522_v3  ;;  %1078 = vmatprep.subr.bf16.mxu0 %v4522_v3  ;;  %v4528_v7 = vld [vmem:[%s5750_s29 + $0x64] ss:$16 sps:$4 sm:$0xff]   ;;  %v4530_v8 = vld [vmem:[%s5750_s29 + $0x60] ss:$16 sps:$4 sm:$0xff]   ;;  %v481_v30 = vld [vmem:[#allocation3 + $0x18] sm:$0xff] }
  0xf2   : > { %v4531_v9 = vld [vmem:[%s5750_s29 + $0x84] ss:$16 sps:$4 sm:$0xff]   ;;  %v4533_v10 = vld [vmem:[%s5750_s29 + $0x80] ss:$16 sps:$4 sm:$0xff]   ;;  %1268 = vmatprep.mubr.bf16.mxu1 %v5911_v16  ;;  %v5926_v31 = vpack.c.bf16 %v481_v30, %v479_v29  ;;  %v4569_v41 = vld [vmem:[%s5750_s29 + $0xc] ss:$16 sps:$4 sm:$0xff]  }
  0xf3   : > { %v4534_v11 = vld [vmem:[%s5750_s29 + $0xa4] ss:$16 sps:$4 sm:$0xff]   ;;  %v4536_v12 = vld [vmem:[%s5750_s29 + $0xa0] ss:$16 sps:$4 sm:$0xff]   ;;  %v547_v42 = vld [vmem:[#allocation3 + $0x228] sm:$0xff] }
  0xf4   : > { %4373 = vmatpush1.bf16.msra.mxu1 %v4524_v4  ;;  %1079 = vmatpush1.bf16.msra.mxu0 %v4524_v4  ;;  %v4537_v13 = vld [vmem:[%s5750_s29 + $0xc4] ss:$16 sps:$4 sm:$0xff]   ;;  %v4539_v17 = vld [vmem:[%s5750_s29 + $0xc0] ss:$16 sps:$4 sm:$0xff]   ;;  %v549_v45 = vld [vmem:[#allocation3 + $0x238] sm:$0xff] }
  0xf5   : > { %4358 = vmatprep.subr.bf16.mxu1 %v4525_v5  ;;  %1080 = vmatprep.subr.bf16.mxu0 %v4525_v5  ;;  %v4540_v18 = vld [vmem:[%s5750_s29 + $0xe4] ss:$16 sps:$4 sm:$0xff]   ;;  %v4542_v19 = vld [vmem:[%s5750_s29 + $0xe0] ss:$16 sps:$4 sm:$0xff]   ;;  %v483_v46 = vld [vmem:[#allocation3 + $0x28] sm:$0xff]  ;;  %v5942_v51 = vpack.c.bf16 %v549_v45, %v547_v42 }
  0xf6   : > { %v4543_v20 = vld [vmem:[%s5750_s29 + $0x104] ss:$16 sps:$4 sm:$0xff]   ;;  %v4545_v21 = vld [vmem:[%s5750_s29 + $0x100] ss:$16 sps:$4 sm:$0xff]   ;;  %1108 = vmatprep.mubr.bf16.mxu0 %v5926_v31  ;;  %v485_v47 = vld [vmem:[#allocation3 + $0x38] sm:$0xff] }
  0xf7   : > { %v4546_v22 = vld [vmem:[%s5750_s29 + $0x124] ss:$16 sps:$4 sm:$0xff]   ;;  %v4548_v23 = vld [vmem:[%s5750_s29 + $0x120] ss:$16 sps:$4 sm:$0xff]   ;;  %v4567_v50 = vld [vmem:[%s5750_s29 + $0x8] ss:$16 sps:$4 sm:$0xff]   ;;  %v5945_v53 = vpack.c.bf16 %v485_v47, %v483_v46 }
  0xf8   : > { %4374 = vmatpush1.bf16.msra.mxu1 %v4527_v6  ;;  %1081 = vmatpush1.bf16.msra.mxu0 %v4527_v6  ;;  %v4549_v24 = vld [vmem:[%s5750_s29 + $0x144] ss:$16 sps:$4 sm:$0xff]   ;;  %v4551_v25 = vld [vmem:[%s5750_s29 + $0x140] ss:$16 sps:$4 sm:$0xff]   ;;  %v4572_v52 = vld [vmem:[%s5750_s29 + $0x2c] ss:$16 sps:$4 sm:$0xff]  }
  0xf9   : > { %4359 = vmatprep.subr.bf16.mxu1 %v4528_v7  ;;  %1082 = vmatprep.subr.bf16.mxu0 %v4528_v7  ;;  %v4552_v26 = vld [vmem:[%s5750_s29 + $0x164] ss:$16 sps:$4 sm:$0xff]   ;;  %v4554_v27 = vld [vmem:[%s5750_s29 + $0x160] ss:$16 sps:$4 sm:$0xff]   ;;  %v4570_v56 = vld [vmem:[%s5750_s29 + $0x28] ss:$16 sps:$4 sm:$0xff]  }
  0xfa   : > { %v4555_v28 = vld [vmem:[%s5750_s29 + $0x184] ss:$16 sps:$4 sm:$0xff]   ;;  %v4557_v32 = vld [vmem:[%s5750_s29 + $0x180] ss:$16 sps:$4 sm:$0xff]   ;;  %v551_v57 = vld [vmem:[#allocation3 + $0x248] sm:$0xff] }
  0xfb   : > { %v4558_v33 = vld [vmem:[%s5750_s29 + $0x1a4] ss:$16 sps:$4 sm:$0xff]   ;;  %v4560_v34 = vld [vmem:[%s5750_s29 + $0x1a0] ss:$16 sps:$4 sm:$0xff]   ;;  %v553_v58 = vld [vmem:[#allocation3 + $0x258] sm:$0xff] }
  0xfc   : > { %4375 = vmatpush1.bf16.msra.mxu1 %v4530_v8  ;;  %1083 = vmatpush1.bf16.msra.mxu0 %v4530_v8  ;;  %v4561_v35 = vld [vmem:[%s5750_s29 + $0x1c4] ss:$16 sps:$4 sm:$0xff]   ;;  %v4563_v36 = vld [vmem:[%s5750_s29 + $0x1c0] ss:$16 sps:$4 sm:$0xff]   ;;  %v4575_v61 = vld [vmem:[%s5750_s29 + $0x4c] ss:$16 sps:$4 sm:$0xff]   ;;  %v5957_v2 = vpack.c.bf16 %v553_v58, %v551_v57 }
  0xfd   : > { %4360 = vmatprep.subr.bf16.mxu1 %v4531_v9  ;;  %1084 = vmatprep.subr.bf16.mxu0 %v4531_v9  ;;  %v4564_v37 = vld [vmem:[%s5750_s29 + $0x1e4] ss:$16 sps:$4 sm:$0xff]   ;;  %v4566_v38 = vld [vmem:[%s5750_s29 + $0x1e0] ss:$16 sps:$4 sm:$0xff]   ;;  %v487_v62 = vld [vmem:[#allocation3 + $0x48] sm:$0xff] }
  0xfe   : > { %v542_v39 = vld [vmem:[#allocation3 + $0x200] sm:$0xff]  ;;  %v544_v40 = vld [vmem:[#allocation3 + $0x210] sm:$0xff]  ;;  %v489_v63 = vld [vmem:[#allocation3 + $0x58] sm:$0xff] }
  0xff   : > { %v478_v43 = vld [vmem:[#allocation3] sm:$0xff]  ;;  %v480_v44 = vld [vmem:[#allocation3 + $0x10] sm:$0xff]  ;;  %v5937_v48 = vpack.c.bf16 %v544_v40, %v542_v39  ;;  %v4573_v3 = vld [vmem:[%s5750_s29 + $0x48] ss:$16 sps:$4 sm:$0xff]   ;;  %v5961_v5 = vpack.c.bf16 %v489_v63, %v487_v62 }
 0x100   : > { %4376 = vmatpush1.bf16.msra.mxu1 %v4533_v10  ;;  %1085 = vmatpush1.bf16.msra.mxu0 %v4533_v10  ;;  %v5939_v49 = vpack.c.bf16 %v480_v44, %v478_v43  ;;  %v546_v54 = vld [vmem:[#allocation3 + $0x220] sm:$0xff]  ;;  %v548_v55 = vld [vmem:[#allocation3 + $0x230] sm:$0xff]  ;;  %v4578_v4 = vld [vmem:[%s5750_s29 + $0x6c] ss:$16 sps:$4 sm:$0xff]  }
 0x101   : > { %4361 = vmatprep.subr.bf16.mxu1 %v4534_v11  ;;  %1086 = vmatprep.subr.bf16.mxu0 %v4534_v11  ;;  %v482_v59 = vld [vmem:[#allocation3 + $0x20] sm:$0xff]  ;;  %v484_v60 = vld [vmem:[#allocation3 + $0x30] sm:$0xff]  ;;  %v5953_v0 = vpack.c.bf16 %v548_v55, %v546_v54  ;;  %v555_v8 = vld [vmem:[#allocation3 + $0x268] sm:$0xff] }
 0x102   : > { %v5955_v1 = vpack.c.bf16 %v484_v60, %v482_v59  ;;  %v550_v6 = vld [vmem:[#allocation3 + $0x240] sm:$0xff]  ;;  %v552_v7 = vld [vmem:[#allocation3 + $0x250] sm:$0xff]  ;;  %v4576_v9 = vld [vmem:[%s5750_s29 + $0x68] ss:$16 sps:$4 sm:$0xff]  }
 0x103   : > { %v486_v10 = vld [vmem:[#allocation3 + $0x40] sm:$0xff]  ;;  %v488_v11 = vld [vmem:[#allocation3 + $0x50] sm:$0xff]  ;;  %v491_v14 = vld [vmem:[#allocation3 + $0x68] sm:$0xff] }
 0x104   : > { %4377 = vmatpush1.bf16.msra.mxu1 %v4536_v12  ;;  %1087 = vmatpush1.bf16.msra.mxu0 %v4536_v12  ;;  %v557_v12 = vld [vmem:[#allocation3 + $0x278] sm:$0xff]  ;;  %v490_v29 = vld [vmem:[#allocation3 + $0x60] sm:$0xff]  ;;  %v492_v30 = vld [vmem:[#allocation3 + $0x70] sm:$0xff] }
 0x105   : > { %4362 = vmatprep.subr.bf16.mxu1 %v4537_v13  ;;  %1088 = vmatprep.subr.bf16.mxu0 %v4537_v13  ;;  %v4581_v13 = vld [vmem:[%s5750_s29 + $0x8c] ss:$16 sps:$4 sm:$0xff]   ;;  %v4579_v15 = vld [vmem:[%s5750_s29 + $0x88] ss:$16 sps:$4 sm:$0xff]   ;;  %v558_v40 = vld [vmem:[#allocation3 + $0x280] sm:$0xff] }
 0x106   : > { %v4588_v42 = vld [vmem:[%s5750_s29 + $0xe8] ss:$16 sps:$4 sm:$0xff]   ;;  %v494_v43 = vld [vmem:[#allocation3 + $0x80] sm:$0xff]  ;;  %v496_v44 = vld [vmem:[#allocation3 + $0x90] sm:$0xff] }
 0x107   : > { %v563_v45 = vld [vmem:[#allocation3 + $0x2a8] sm:$0xff]  ;;  %v565_v46 = vld [vmem:[#allocation3 + $0x2b8] sm:$0xff]  ;;  %v6003_v55 = vpack.c.bf16 %v496_v44, %v494_v43  ;;  %v562_v60 = vld [vmem:[#allocation3 + $0x2a0] sm:$0xff] }
 0x108   : > { %4378 = vmatpush1.bf16.msra.mxu1 %v4539_v17  ;;  %1089 = vmatpush1.bf16.msra.mxu0 %v4539_v17  ;;  %v493_v17 = vld [vmem:[#allocation3 + $0x78] sm:$0xff]  ;;  %v498_v63 = vld [vmem:[#allocation3 + $0xa0] sm:$0xff]  ;;  %v572_v43 = vld [vmem:[#allocation3 + $0x2f0] sm:$0xff] }
 0x109   : > { %4363 = vmatprep.subr.bf16.mxu1 %v4540_v18  ;;  %1090 = vmatprep.subr.bf16.mxu0 %v4540_v18  ;;  %v5970_v18 = vpack.c.bf16 %v552_v7, %v550_v6  ;;  %v4593_v47 = vld [vmem:[%s5750_s29 + $0x10c] ss:$16 sps:$4 sm:$0xff]   ;;  %v4591_v57 = vld [vmem:[%s5750_s29 + $0x108] ss:$16 sps:$4 sm:$0xff]  }
 0x10a   : > { %v4596_v58 = vld [vmem:[%s5750_s29 + $0x12c] ss:$16 sps:$4 sm:$0xff]   ;;  %v4594_v62 = vld [vmem:[%s5750_s29 + $0x128] ss:$16 sps:$4 sm:$0xff]  }
 0x10b   : > { %v569_v6 = vld [vmem:[#allocation3 + $0x2d8] sm:$0xff] }
 0x10c   : > { %4379 = vmatpush1.bf16.msra.mxu1 %v4542_v19  ;;  %1091 = vmatpush1.bf16.msra.mxu0 %v4542_v19  ;;  %v4584_v19 = vld [vmem:[%s5750_s29 + $0xac] ss:$16 sps:$4 sm:$0xff]   ;;  %v4606_v44 = vld [vmem:[%s5750_s29 + $0x1a8] ss:$16 sps:$4 sm:$0xff]  }
 0x10d   : > { %4364 = vmatprep.subr.bf16.mxu1 %v4543_v20  ;;  %1092 = vmatprep.subr.bf16.mxu0 %v4543_v20  ;;  %v5973_v20 = vpack.c.bf16 %v488_v11, %v486_v10  ;;  %v4599_v7 = vld [vmem:[%s5750_s29 + $0x14c] ss:$16 sps:$4 sm:$0xff]  }
 0x110   : > { %4380 = vmatpush1.bf16.msra.mxu1 %v4545_v21  ;;  %1093 = vmatpush1.bf16.msra.mxu0 %v4545_v21  ;;  %v5975_v21 = vpack.c.bf16 %v557_v12, %v555_v8  ;;  %v503_v8 = vld [vmem:[#allocation3 + $0xc8] sm:$0xff] }
 0x111   : > { %4365 = vmatprep.subr.bf16.mxu1 %v4546_v22  ;;  %1094 = vmatprep.subr.bf16.mxu0 %v4546_v22  ;;  %v5977_v22 = vpack.c.bf16 %v493_v17, %v491_v14  ;;  %v4602_v14 = vld [vmem:[%s5750_s29 + $0x16c] ss:$16 sps:$4 sm:$0xff]   ;;  %v566_v17 = vld [vmem:[#allocation3 + $0x2c0] sm:$0xff] }
 0x114   : > { %4381 = vmatpush1.bf16.msra.mxu1 %v4548_v23  ;;  %1095 = vmatpush1.bf16.msra.mxu0 %v4548_v23  ;;  %v554_v23 = vld [vmem:[#allocation3 + $0x260] sm:$0xff] }
 0x115   : > { %4366 = vmatprep.subr.bf16.mxu1 %v4549_v24  ;;  %1096 = vmatprep.subr.bf16.mxu0 %v4549_v24  ;;  %v556_v24 = vld [vmem:[#allocation3 + $0x270] sm:$0xff] }
 0x118   : > { %4382 = vmatpush1.bf16.msra.mxu1 %v4551_v25  ;;  %1097 = vmatpush1.bf16.msra.mxu0 %v4551_v25  ;;  %v4582_v25 = vld [vmem:[%s5750_s29 + $0xa8] ss:$16 sps:$4 sm:$0xff]  }
 0x119   : > { %4367 = vmatprep.subr.bf16.mxu1 %v4552_v26  ;;  %1098 = vmatprep.subr.bf16.mxu0 %v4552_v26  ;;  %v559_v26 = vld [vmem:[#allocation3 + $0x288] sm:$0xff] }
 0x11c   : > { %4383 = vmatpush1.bf16.msra.mxu1 %v4554_v27  ;;  %1099 = vmatpush1.bf16.msra.mxu0 %v4554_v27  ;;  %v561_v27 = vld [vmem:[#allocation3 + $0x298] sm:$0xff] }
 0x11d   : > { %4368 = vmatprep.subr.bf16.mxu1 %v4555_v28  ;;  %1100 = vmatprep.subr.bf16.mxu0 %v4555_v28  ;;  %v4587_v28 = vld [vmem:[%s5750_s29 + $0xcc] ss:$16 sps:$4 sm:$0xff]  }
 0x120   : > { %4384 = vmatpush1.bf16.msra.mxu1 %v4557_v32  ;;  %1101 = vmatpush1.bf16.msra.mxu0 %v4557_v32  ;;  %v495_v32 = vld [vmem:[#allocation3 + $0x88] sm:$0xff] }
 0x121   : > { %4369 = vmatprep.subr.bf16.mxu1 %v4558_v33  ;;  %1102 = vmatprep.subr.bf16.mxu0 %v4558_v33  ;;  %v497_v33 = vld [vmem:[#allocation3 + $0x98] sm:$0xff] }
 0x122   : > { %v5993_v39 = vpack.c.bf16 %v497_v33, %v495_v32 }
 0x124   : > { %4385 = vmatpush1.bf16.msra.mxu1 %v4560_v34  ;;  %1103 = vmatpush1.bf16.msra.mxu0 %v4560_v34  ;;  %v4585_v34 = vld [vmem:[%s5750_s29 + $0xc8] ss:$16 sps:$4 sm:$0xff]  }
 0x125   : > { %4370 = vmatprep.subr.bf16.mxu1 %v4561_v35  ;;  %1104 = vmatprep.subr.bf16.mxu0 %v4561_v35  ;;  %v5986_v35 = vpack.c.bf16 %v556_v24, %v554_v23  ;;  %v4600_v23 = vld [vmem:[%s5750_s29 + $0x168] ss:$16 sps:$4 sm:$0xff]   ;;  %v502_v24 = vld [vmem:[#allocation3 + $0xc0] sm:$0xff] }
 0x128   : > { %4386 = vmatpush1.bf16.msra.mxu1 %v4563_v36  ;;  %1105 = vmatpush1.bf16.msra.mxu0 %v4563_v36  ;;  %v4590_v36 = vld [vmem:[%s5750_s29 + $0xec] ss:$16 sps:$4 sm:$0xff]  }
 0x129   : > { %4371 = vmatprep.subr.bf16.mxu1 %v4564_v37  ;;  %1106 = vmatprep.subr.bf16.mxu0 %v4564_v37  ;;  %v5989_v37 = vpack.c.bf16 %v492_v30, %v490_v29  ;;  %v507_v29 = vld [vmem:[#allocation3 + $0xe8] sm:$0xff]  ;;  %v509_v30 = vld [vmem:[#allocation3 + $0xf8] sm:$0xff] }
 0x12c   : > { %4387 = vmatpush1.bf16.msra.mxu1 %v4566_v38  ;;  %1107 = vmatpush1.bf16.msra.mxu0 %v4566_v38  ;;  %v5991_v38 = vpack.c.bf16 %v561_v27, %v559_v26  ;;  %v571_v26 = vld [vmem:[#allocation3 + $0x2e8] sm:$0xff]  ;;  %v573_v27 = vld [vmem:[#allocation3 + $0x2f8] sm:$0xff] }
 0x12d   : > { %1429 = vmatprep.subr.bf16.mxu1 %v4569_v41  ;;  %v560_v41 = vld [vmem:[#allocation3 + $0x290] sm:$0xff] }
 0x12e   : > { %v6001_v54 = vpack.c.bf16 %v560_v41, %v558_v40  ;;  %v4608_v40 = vld [vmem:[%s5750_s29 + $0x1ac] ss:$16 sps:$4 sm:$0xff]   ;;  %v6041_v41 = vpack.c.bf16 %v509_v30, %v507_v29  ;;  %v580_v29 = vld [vmem:[#allocation3 + $0x330] sm:$0xff] }
 0x12f   : > { %1269 = vmatmul.mubr.bf16.vlgmr.msra.gmra.mrb[0].mxu1 %v5937_v48  ;;  %1109 = vmatmul.mubr.bf16.vlgmr.msra.gmra.mrb[0].mxu0 %v5939_v49  ;;  %v583_v30 = vld [vmem:[#allocation3 + $0x348] sm:$0xff] }
 0x130   : > { %1430 = vmatpush1.bf16.msra.mxu1 %v4567_v50  ;;  %1278 = vmatprep.mubr.bf16.mxu1 %v5942_v51  ;;  %v499_v50 = vld [vmem:[#allocation3 + $0xa8] sm:$0xff] }
 0x131   : > { %1431 = vmatprep.subr.bf16.mxu1 %v4572_v52  ;;  %1118 = vmatprep.mubr.bf16.mxu0 %v5945_v53  ;;  %v501_v52 = vld [vmem:[#allocation3 + $0xb8] sm:$0xff] }
 0x132   : > { %v6009_v59 = vpack.c.bf16 %v501_v52, %v499_v50  ;;  %v577_v50 = vld [vmem:[#allocation3 + $0x318] sm:$0xff] }
 0x133   : > { %v4611_v52 = vld [vmem:[%s5750_s29 + $0x1cc] ss:$16 sps:$4 sm:$0xff]  }
 0x134   : > { %1432 = vmatpush1.bf16.msra.mxu1 %v4570_v56  ;;  %v6005_v56 = vpack.c.bf16 %v565_v46, %v563_v45  ;;  %v506_v45 = vld [vmem:[#allocation3 + $0xe0] sm:$0xff]  ;;  %v508_v46 = vld [vmem:[#allocation3 + $0xf0] sm:$0xff] }
 0x135   : > { %1433 = vmatprep.subr.bf16.mxu1 %v4575_v61  ;;  %v564_v61 = vld [vmem:[#allocation3 + $0x2b0] sm:$0xff] }
 0x136   : > { %v6017_v10 = vpack.c.bf16 %v564_v61, %v562_v60  ;;  %v6051_v61 = vpack.c.bf16 %v508_v46, %v506_v45 }
 0x137   : > { %1279 = vmatmul.mubr.bf16.gmra.mrb[4].mxu1 %v5953_v0  ;;  %1119 = vmatmul.mubr.bf16.gmra.mrb[4].mxu0 %v5955_v1 }
 0x138   : > { %1288 = vmatprep.mubr.bf16.mxu1 %v5957_v2  ;;  %1434 = vmatpush1.bf16.msra.mxu1 %v4573_v3  ;;  %v500_v3 = vld [vmem:[#allocation3 + $0xb0] sm:$0xff] }
 0x139   : > { %1435 = vmatprep.subr.bf16.mxu1 %v4578_v4  ;;  %1128 = vmatprep.mubr.bf16.mxu0 %v5961_v5  ;;  %v567_v4 = vld [vmem:[#allocation3 + $0x2c8] sm:$0xff]  ;;  %v6019_v11 = vpack.c.bf16 %v500_v3, %v498_v63 }
 0x13a   : > { %v6021_v12 = vpack.c.bf16 %v569_v6, %v567_v4  ;;  %v4609_v63 = vld [vmem:[%s5750_s29 + $0x1c8] ss:$16 sps:$4 sm:$0xff]   ;;  %v4614_v3 = vld [vmem:[%s5750_s29 + $0x1ec] ss:$16 sps:$4 sm:$0xff]   ;;  %v574_v6 = vld [vmem:[#allocation3 + $0x300] sm:$0xff] }
 0x13c   : > { %1436 = vmatpush1.bf16.msra.mxu1 %v4576_v9  ;;  %v505_v9 = vld [vmem:[#allocation3 + $0xd8] sm:$0xff] }
 0x13d   : > { %1437 = vmatprep.subr.bf16.mxu1 %v4581_v13  ;;  %v4597_v13 = vld [vmem:[%s5750_s29 + $0x148] ss:$16 sps:$4 sm:$0xff]  }
 0x13f   : > { %1289 = vmatmul.mubr.bf16.gmra.mrb[8].mxu1 %v5970_v18  ;;  %1129 = vmatmul.mubr.bf16.gmra.mrb[8].mxu0 %v5973_v20 }
 0x140   : > { %1298 = vmatprep.mubr.bf16.mxu1 %v5975_v21  ;;  %1438 = vmatpush1.bf16.msra.mxu1 %v4579_v15  ;;  %v6025_v15 = vpack.c.bf16 %v505_v9, %v503_v8  ;;  %v579_v8 = vld [vmem:[#allocation3 + $0x328] sm:$0xff] }
 0x141   : > { %1439 = vmatprep.subr.bf16.mxu1 %v4584_v19  ;;  %1138 = vmatprep.mubr.bf16.mxu0 %v5977_v22  ;;  %v568_v19 = vld [vmem:[#allocation3 + $0x2d0] sm:$0xff]  ;;  %v4612_v9 = vld [vmem:[%s5750_s29 + $0x1e8] ss:$16 sps:$4 sm:$0xff]  }
 0x142   : > { %v6033_v32 = vpack.c.bf16 %v568_v19, %v566_v17  ;;  %v581_v17 = vld [vmem:[#allocation3 + $0x338] sm:$0xff]  ;;  %v515_v19 = vld [vmem:[#allocation3 + $0x128] sm:$0xff] }
 0x144   : > { %1440 = vmatpush1.bf16.msra.mxu1 %v4582_v25  ;;  %v504_v25 = vld [vmem:[#allocation3 + $0xd0] sm:$0xff] }
 0x145   : > { %1441 = vmatprep.subr.bf16.mxu1 %v4587_v28  ;;  %v4605_v28 = vld [vmem:[%s5750_s29 + $0x18c] ss:$16 sps:$4 sm:$0xff]   ;;  %v6035_v33 = vpack.c.bf16 %v504_v25, %v502_v24 }
 0x147   : > { %1299 = vmatmul.mubr.bf16.gmra.mrb[12].mxu1 %v5986_v35  ;;  %1139 = vmatmul.mubr.bf16.gmra.mrb[12].mxu0 %v5989_v37 }
 0x148   : > { %1308 = vmatprep.mubr.bf16.mxu1 %v5991_v38  ;;  %1442 = vmatpush1.bf16.msra.mxu1 %v4585_v34  ;;  %v6037_v34 = vpack.c.bf16 %v573_v27, %v571_v26  ;;  %v6068_v26 = vpack.c.bf16 %v581_v17, %v579_v8  ;;  %v525_v8 = vld [vmem:[#allocation3 + $0x178] sm:$0xff] }
 0x149   : > { %1443 = vmatprep.subr.bf16.mxu1 %v4590_v36  ;;  %1148 = vmatprep.mubr.bf16.mxu0 %v5993_v39  ;;  %v4603_v36 = vld [vmem:[%s5750_s29 + $0x188] ss:$16 sps:$4 sm:$0xff]  }
 0x14c   : > { %1444 = vmatpush1.bf16.msra.mxu1 %v4588_v42  ;;  %v570_v42 = vld [vmem:[#allocation3 + $0x2e0] sm:$0xff] }
 0x14d   : > { %1445 = vmatprep.subr.bf16.mxu1 %v4593_v47  ;;  %v575_v47 = vld [vmem:[#allocation3 + $0x308] sm:$0xff]  ;;  %v6049_v60 = vpack.c.bf16 %v572_v43, %v570_v42  ;;  %v585_v42 = vld [vmem:[#allocation3 + $0x358] sm:$0xff] }
 0x14e   : > { %v519_v43 = vld [vmem:[#allocation3 + $0x148] sm:$0xff] }
 0x14f   : > { %1309 = vmatmul.mubr.bf16.gmra.mrb[16].mxu1 %v6001_v54  ;;  %1149 = vmatmul.mubr.bf16.gmra.mrb[16].mxu0 %v6003_v55 }
 0x150   : > { %1318 = vmatprep.mubr.bf16.mxu1 %v6005_v56  ;;  %1446 = vmatpush1.bf16.msra.mxu1 %v4591_v57  ;;  %v511_v57 = vld [vmem:[#allocation3 + $0x108] sm:$0xff] }
 0x151   : > { %1447 = vmatprep.subr.bf16.mxu1 %v4596_v58  ;;  %1158 = vmatprep.mubr.bf16.mxu0 %v6009_v59  ;;  %v513_v58 = vld [vmem:[#allocation3 + $0x118] sm:$0xff] }
 0x152   : > { %v6057_v4 = vpack.c.bf16 %v513_v58, %v511_v57  ;;  %v584_v57 = vld [vmem:[#allocation3 + $0x350] sm:$0xff]  ;;  %v587_v58 = vld [vmem:[#allocation3 + $0x368] sm:$0xff] }
 0x154   : > { %1448 = vmatpush1.bf16.msra.mxu1 %v4594_v62  ;;  %v6053_v62 = vpack.c.bf16 %v577_v50, %v575_v47  ;;  %v6080_v47 = vpack.c.bf16 %v585_v42, %v583_v30  ;;  %v524_v30 = vld [vmem:[#allocation3 + $0x170] sm:$0xff]  ;;  %v529_v42 = vld [vmem:[#allocation3 + $0x198] sm:$0xff] }
 0x155   : > { %1449 = vmatprep.subr.bf16.mxu1 %v4599_v7  ;;  %v576_v7 = vld [vmem:[#allocation3 + $0x310] sm:$0xff] }
 0x156   : > { %v6064_v24 = vpack.c.bf16 %v576_v7, %v574_v6  ;;  %8821 = vst [vmem:[#allocation27_spill] sm:$0xff] %v6080_v47  ;;  %v589_v6 = vld [vmem:[#allocation3 + $0x378] sm:$0xff]  ;;  %v523_v7 = vld [vmem:[#allocation3 + $0x168] sm:$0xff] }
 0x157   : > { %1319 = vmatmul.mubr.bf16.gmra.mrb[20].mxu1 %v6017_v10  ;;  %1159 = vmatmul.mubr.bf16.gmra.mrb[20].mxu0 %v6019_v11  ;;  %v6094_v17 = vpack.c.bf16 %v525_v8, %v523_v7  ;;  %v528_v7 = vld [vmem:[#allocation3 + $0x190] sm:$0xff]  ;;  %v597_v8 = vld [vmem:[#allocation3 + $0x3b8] sm:$0xff] }
 0x158   : > { %1328 = vmatprep.mubr.bf16.mxu1 %v6021_v12  ;;  %1450 = vmatpush1.bf16.msra.mxu1 %v4597_v13  ;;  %v510_v13 = vld [vmem:[#allocation3 + $0x100] sm:$0xff] }
 0x159   : > { %1451 = vmatprep.subr.bf16.mxu1 %v4602_v14  ;;  %1168 = vmatprep.mubr.bf16.mxu0 %v6025_v15  ;;  %v512_v14 = vld [vmem:[#allocation3 + $0x110] sm:$0xff] }
 0x15a   : > { %v6066_v25 = vpack.c.bf16 %v512_v14, %v510_v13  ;;  %v6092_v14 = vpack.c.bf16 %v589_v6, %v587_v58  ;;  %v590_v58 = vld [vmem:[#allocation3 + $0x380] sm:$0xff] }
 0x15b   : > { %v526_v6 = vld [vmem:[#allocation3 + $0x180] sm:$0xff] }
 0x15c   : > { %1452 = vmatpush1.bf16.msra.mxu1 %v4600_v23  ;;  %v517_v23 = vld [vmem:[#allocation3 + $0x138] sm:$0xff]  ;;  %8823 = vst [vmem:[#allocation29_spill] sm:$0xff] %v6092_v14 }
 0x15d   : > { %1453 = vmatprep.subr.bf16.mxu1 %v4605_v28  ;;  %v6070_v27 = vpack.c.bf16 %v517_v23, %v515_v19  ;;  %v578_v28 = vld [vmem:[#allocation3 + $0x320] sm:$0xff]  ;;  %v588_v23 = vld [vmem:[#allocation3 + $0x370] sm:$0xff] }
 0x15e   : > { %v6076_v45 = vpack.c.bf16 %v580_v29, %v578_v28  ;;  %v586_v19 = vld [vmem:[#allocation3 + $0x360] sm:$0xff]  ;;  %v591_v28 = vld [vmem:[#allocation3 + $0x388] sm:$0xff] }
 0x15f   : > { %1329 = vmatmul.mubr.bf16.gmra.mrb[24].mxu1 %v6033_v32  ;;  %1169 = vmatmul.mubr.bf16.gmra.mrb[24].mxu0 %v6035_v33  ;;  %v522_v29 = vld [vmem:[#allocation3 + $0x160] sm:$0xff] }
 0x160   : > { %1338 = vmatprep.mubr.bf16.mxu1 %v6037_v34  ;;  %1454 = vmatpush1.bf16.msra.mxu1 %v4603_v36  ;;  %v514_v36 = vld [vmem:[#allocation3 + $0x120] sm:$0xff]  ;;  %8820 = vst [vmem:[#allocation26_spill] sm:$0xff] %v6076_v45 }
 0x161   : > { %1455 = vmatprep.subr.bf16.mxu1 %v4608_v40  ;;  %1178 = vmatprep.mubr.bf16.mxu0 %v6041_v41  ;;  %v516_v40 = vld [vmem:[#allocation3 + $0x130] sm:$0xff] }
 0x162   : > { %v6078_v46 = vpack.c.bf16 %v516_v40, %v514_v36  ;;  %v593_v36 = vld [vmem:[#allocation3 + $0x398] sm:$0xff]  ;;  %v527_v40 = vld [vmem:[#allocation3 + $0x188] sm:$0xff] }
 0x164   : > { %1456 = vmatpush1.bf16.msra.mxu1 %v4606_v44  ;;  %v521_v44 = vld [vmem:[#allocation3 + $0x158] sm:$0xff] }
 0x165   : > { %1457 = vmatprep.subr.bf16.mxu1 %v4611_v52  ;;  %v6082_v50 = vpack.c.bf16 %v521_v44, %v519_v43  ;;  %v582_v52 = vld [vmem:[#allocation3 + $0x340] sm:$0xff]  ;;  %v6100_v43 = vpack.c.bf16 %v588_v23, %v586_v19  ;;  %v6102_v44 = vpack.c.bf16 %v524_v30, %v522_v29  ;;  %v531_v19 = vld [vmem:[#allocation3 + $0x1a8] sm:$0xff]  ;;  %v533_v23 = vld [vmem:[#allocation3 + $0x1b8] sm:$0xff]  ;;  %v6114_v29 = vpack.c.bf16 %v528_v7, %v526_v6 }
 0x166   : > { %v535_v6 = vld [vmem:[#allocation3 + $0x1c8] sm:$0xff]  ;;  %v537_v7 = vld [vmem:[#allocation3 + $0x1d8] sm:$0xff] }
 0x167   : > { %1339 = vmatmul.mubr.bf16.gmra.mrb[28].mxu1 %v6049_v60  ;;  %1179 = vmatmul.mubr.bf16.gmra.mrb[28].mxu0 %v6051_v61  ;;  %8824 = vst [vmem:[#allocation30_spill] sm:$0xff] %v6100_v43 }
 0x168   : > { %1348 = vmatprep.mubr.bf16.mxu1 %v6053_v62  ;;  %1458 = vmatpush1.bf16.msra.mxu1 %v4609_v63  ;;  %v518_v63 = vld [vmem:[#allocation3 + $0x140] sm:$0xff] }
 0x169   : > { %1459 = vmatprep.subr.bf16.mxu1 %v4614_v3  ;;  %1188 = vmatprep.mubr.bf16.mxu0 %v6057_v4  ;;  %v520_v3 = vld [vmem:[#allocation3 + $0x150] sm:$0xff] }
 0x16a   : > { %v6090_v13 = vpack.c.bf16 %v520_v3, %v518_v63  ;;  %v592_v63 = vld [vmem:[#allocation3 + $0x390] sm:$0xff]  ;;  %v595_v3 = vld [vmem:[#allocation3 + $0x3a8] sm:$0xff] }
 0x16b   : > { %v6116_v30 = vpack.c.bf16 %v597_v8, %v595_v3 }
 0x16c   : > { %1460 = vmatpush1.bf16.msra.mxu1 %v4612_v9  ;;  %v6088_v9 = vpack.c.bf16 %v584_v57, %v582_v52  ;;  %v6104_v52 = vpack.c.bf16 %v593_v36, %v591_v28  ;;  %v6106_v57 = vpack.c.bf16 %v529_v42, %v527_v40  ;;  %v6112_v28 = vpack.c.bf16 %v592_v63, %v590_v58  ;;  %v594_v40 = vld [vmem:[#allocation3 + $0x3a0] sm:$0xff]  ;;  %v596_v42 = vld [vmem:[#allocation3 + $0x3b0] sm:$0xff]  ;;  %v601_v63 = vld [vmem:[#allocation3 + $0x3d8] sm:$0xff] }
 0x16d   : > { %8827 = vst [vmem:[#allocation33_spill] sm:$0xff] %v6116_v30  ;;  %v6118_v36 = vpack.c.bf16 %v533_v23, %v531_v19  ;;  %v532_v58 = vld [vmem:[#allocation3 + $0x1b0] sm:$0xff]  ;;  %v6124_v3 = vpack.c.bf16 %v596_v42, %v594_v40  ;;  %v6130_v23 = vpack.c.bf16 %v537_v7, %v535_v6  ;;  %v605_v42 = vld [vmem:[#allocation3 + $0x3f8] sm:$0xff] }
 0x16e   : > { %8822 = vst [vmem:[#allocation28_spill] sm:$0xff] %v6088_v9  ;;  %8825 = vst [vmem:[#allocation31_spill] sm:$0xff] %v6104_v52  ;;  %v536_v40 = vld [vmem:[#allocation3 + $0x1d0] sm:$0xff] }
 0x16f   : > { %1349 = vmatmul.mubr.bf16.gmra.mrb[32].mxu1 %v6064_v24  ;;  %1189 = vmatmul.mubr.bf16.gmra.mrb[32].mxu0 %v6066_v25  ;;  %8826 = vst [vmem:[#allocation32_spill] sm:$0xff] %v6112_v28  ;;  %8828 = vst [vmem:[#allocation34_spill] sm:$0xff] %v6124_v3 }
 0x170   : > { %1358 = vmatprep.mubr.bf16.mxu1 %v6068_v26  ;;  %1198 = vmatprep.mubr.bf16.mxu0 %v6070_v27 }
 0x177   : > { %1359 = vmatmul.mubr.bf16.gmra.mrb[36].mxu1 %v6076_v45  ;;  %1199 = vmatmul.mubr.bf16.gmra.mrb[36].mxu0 %v6078_v46 }
 0x178   : > { %1368 = vmatprep.mubr.bf16.mxu1 %v6080_v47  ;;  %1208 = vmatprep.mubr.bf16.mxu0 %v6082_v50 }
 0x17f   : > { %1369 = vmatmul.mubr.bf16.gmra.mrb[40].mxu1 %v6088_v9  ;;  %1209 = vmatmul.mubr.bf16.gmra.mrb[40].mxu0 %v6090_v13  ;;  %v534_v9 = vld [vmem:[#allocation3 + $0x1c0] sm:$0xff] }
 0x180   : > { %1378 = vmatprep.mubr.bf16.mxu1 %v6092_v14  ;;  %1218 = vmatprep.mubr.bf16.mxu0 %v6094_v17  ;;  %v603_v14 = vld [vmem:[#allocation3 + $0x3e8] sm:$0xff] }
 0x181   : > { %v6140_v6 = vpack.c.bf16 %v605_v42, %v603_v14  ;;  %v4617_v42 = vld [vmem:[%s5758_s24 + $0x4] ss:$8 sps:$4 sm:$0xff]  }
 0x182   : > { %3190 = vmatprep.subr.bf16.mxu0 %v4617_v42 }
 0x183   : > { %8831 = vst [vmem:[#allocation37_spill] sm:$0xff] %v6140_v6 }
 0x187   : > { %1379 = vmatmul.mubr.bf16.gmra.mrb[44].mxu1 %v6100_v43  ;;  %1219 = vmatmul.mubr.bf16.gmra.mrb[44].mxu0 %v6102_v44  ;;  %v530_v43 = vld [vmem:[#allocation3 + $0x1a0] sm:$0xff] }
 0x188   : > { %1388 = vmatprep.mubr.bf16.mxu1 %v6104_v52  ;;  %1228 = vmatprep.mubr.bf16.mxu0 %v6106_v57  ;;  %v599_v52 = vld [vmem:[#allocation3 + $0x3c8] sm:$0xff]  ;;  %v6126_v8 = vpack.c.bf16 %v532_v58, %v530_v43  ;;  %v541_v58 = vld [vmem:[#allocation3 + $0x1f8] sm:$0xff] }
 0x189   : > { %v6128_v19 = vpack.c.bf16 %v601_v63, %v599_v52  ;;  %v539_v43 = vld [vmem:[#allocation3 + $0x1e8] sm:$0xff]  ;;  %v6138_v63 = vpack.c.bf16 %v536_v40, %v534_v9  ;;  %v538_v9 = vld [vmem:[#allocation3 + $0x1e0] sm:$0xff] }
 0x18a   : > { %v6142_v7 = vpack.c.bf16 %v541_v58, %v539_v43  ;;  %v4615_v40 = vld [vmem:[%s5758_s24] ss:$8 sps:$4 sm:$0xff]   ;;  %v4623_v43 = vld [vmem:[%s5758_s24 + $0x24] ss:$8 sps:$4 sm:$0xff]  }
 0x18b   : > { %8829 = vst [vmem:[#allocation35_spill] sm:$0xff] %v6128_v19  ;;  %3191 = vmatpush1.bf16.msra.mxu0 %v4615_v40 }
 0x18f   : > { %1389 = vmatmul.mubr.bf16.gmra.mrb[48].mxu1 %v6112_v28  ;;  %1229 = vmatmul.mubr.bf16.gmra.mrb[48].mxu0 %v6114_v29  ;;  %v598_v28 = vld [vmem:[#allocation3 + $0x3c0] sm:$0xff] }
 0x190   : > { %1398 = vmatprep.mubr.bf16.mxu1 %v6116_v30  ;;  %1238 = vmatprep.mubr.bf16.mxu0 %v6118_v36  ;;  %v600_v30 = vld [vmem:[#allocation3 + $0x3d0] sm:$0xff] }
 0x191   : > { %v6136_v52 = vpack.c.bf16 %v600_v30, %v598_v28  ;;  %v540_v28 = vld [vmem:[#allocation3 + $0x1f0] sm:$0xff] }
 0x192   : > { %v6150_v14 = vpack.c.bf16 %v540_v28, %v538_v9 }
 0x193   : > { %8830 = vst [vmem:[#allocation36_spill] sm:$0xff] %v6136_v52 }
 0x197   : > { %1399 = vmatmul.mubr.bf16.gmra.mrb[52].mxu1 %v6124_v3  ;;  %1239 = vmatmul.mubr.bf16.gmra.mrb[52].mxu0 %v6126_v8  ;;  %v604_v3 = vld [vmem:[#allocation3 + $0x3f0] sm:$0xff] }
 0x198   : > { %1408 = vmatprep.mubr.bf16.mxu1 %v6128_v19  ;;  %1248 = vmatprep.mubr.bf16.mxu0 %v6130_v23  ;;  %v602_v19 = vld [vmem:[#allocation3 + $0x3e0] sm:$0xff] }
 0x199   : > { %v6148_v30 = vpack.c.bf16 %v604_v3, %v602_v19  ;;  %v4618_v3 = vld [vmem:[%s5758_s24 + $0x10] ss:$8 sps:$4 sm:$0xff]   ;;  %v4620_v19 = vld [vmem:[%s5758_s24 + $0x14] ss:$8 sps:$4 sm:$0xff]  }
 0x19a   : > { %3192 = vmatprep.subr.bf16.mxu0 %v4620_v19 }
 0x19b   : > { %8832 = vst [vmem:[#allocation38_spill] sm:$0xff] %v6148_v30  ;;  %3193 = vmatpush1.bf16.msra.mxu0 %v4618_v3  ;;  %v4645_v3 = vld [vmem:[%s5758_s24 + $0xa0] ss:$8 sps:$4 sm:$0xff]  }
 0x19c   : > { %3194 = vmatprep.subr.bf16.mxu0 %v4623_v43 }
 0x19f   : > { %1409 = vmatmul.mubr.bf16.gmra.mrb[56].mxu1 %v6136_v52  ;;  %1249 = vmatmul.mubr.bf16.gmra.mrb[56].mxu0 %v6138_v63  ;;  %v4653_v52 = vld [vmem:[%s5758_s24 + $0xc4] ss:$8 sps:$4 sm:$0xff]  }
 0x1a0   : > { %1418 = vmatprep.mubr.bf16.mxu1 %v6140_v6  ;;  %1258 = vmatprep.mubr.bf16.mxu0 %v6142_v7  ;;  %v4651_v6 = vld [vmem:[%s5758_s24 + $0xc0] ss:$8 sps:$4 sm:$0xff]  }
 0x1a7   : > { %1419 = vmatmul.mubr.bf16.gmra.mrb[60].mxu1 %v6148_v30  ;;  %1259 = vmatmul.mubr.bf16.gmra.mrb[60].mxu0 %v6150_v14 }
 0x1a8   : > { %1461 = vmatprep.mubr.bf16.mxu1 %v5926_v31  ;;  %v4621_v31 = vld [vmem:[%s5758_s24 + $0x20] ss:$8 sps:$4 sm:$0xff]  }
 0x1a9   : > { %3195 = vmatpush1.bf16.msra.mxu0 %v4621_v31 }
 0x1af   : > { %1462 = vmatmul.mubr.bf16.vlgmr.msra.gmra.mrb[64].mxu1 %v5939_v49  ;;  %v4624_v49 = vld [vmem:[%s5758_s24 + $0x30] ss:$8 sps:$4 sm:$0xff]  }
 0x1b0   : > { %1471 = vmatprep.mubr.bf16.mxu1 %v5945_v53  ;;  %v4626_v53 = vld [vmem:[%s5758_s24 + $0x34] ss:$8 sps:$4 sm:$0xff]  }
 0x1b1   : > { %3196 = vmatprep.subr.bf16.mxu0 %v4626_v53 }
 0x1b2   : > { %3197 = vmatpush1.bf16.msra.mxu0 %v4624_v49 }
 0x1b7   : > { %1472 = vmatmul.mubr.bf16.gmra.mrb[68].mxu1 %v5955_v1  ;;  %v4627_v1 = vld [vmem:[%s5758_s24 + $0x40] ss:$8 sps:$4 sm:$0xff]  }
 0x1b8   : > { %1481 = vmatprep.mubr.bf16.mxu1 %v5961_v5  ;;  %v4629_v5 = vld [vmem:[%s5758_s24 + $0x44] ss:$8 sps:$4 sm:$0xff]  }
 0x1b9   : > { %3198 = vmatprep.subr.bf16.mxu0 %v4629_v5 }
 0x1ba   : > { %3199 = vmatpush1.bf16.msra.mxu0 %v4627_v1 }
 0x1bf   : > { %1482 = vmatmul.mubr.bf16.gmra.mrb[72].mxu1 %v5973_v20  ;;  %v4630_v20 = vld [vmem:[%s5758_s24 + $0x50] ss:$8 sps:$4 sm:$0xff]  }
 0x1c0   : > { %1491 = vmatprep.mubr.bf16.mxu1 %v5977_v22  ;;  %v4632_v22 = vld [vmem:[%s5758_s24 + $0x54] ss:$8 sps:$4 sm:$0xff]  }
 0x1c1   : > { %3200 = vmatprep.subr.bf16.mxu0 %v4632_v22 }
 0x1c2   : > { %3201 = vmatpush1.bf16.msra.mxu0 %v4630_v20 }
 0x1c7   : > { %1492 = vmatmul.mubr.bf16.gmra.mrb[76].mxu1 %v5989_v37  ;;  %v4633_v37 = vld [vmem:[%s5758_s24 + $0x60] ss:$8 sps:$4 sm:$0xff]  }
 0x1c8   : > { %1501 = vmatprep.mubr.bf16.mxu1 %v5993_v39  ;;  %v4635_v39 = vld [vmem:[%s5758_s24 + $0x64] ss:$8 sps:$4 sm:$0xff]  }
 0x1c9   : > { %3202 = vmatprep.subr.bf16.mxu0 %v4635_v39  ;;  %v4650_v39 = vld [vmem:[%s5758_s24 + $0xb4] ss:$8 sps:$4 sm:$0xff]  }
 0x1ca   : > { %3203 = vmatpush1.bf16.msra.mxu0 %v4633_v37 }
 0x1cf   : > { %1502 = vmatmul.mubr.bf16.gmra.mrb[80].mxu1 %v6003_v55  ;;  %v4636_v55 = vld [vmem:[%s5758_s24 + $0x70] ss:$8 sps:$4 sm:$0xff]  }
 0x1d0   : > { %1511 = vmatprep.mubr.bf16.mxu1 %v6009_v59  ;;  %v4638_v59 = vld [vmem:[%s5758_s24 + $0x74] ss:$8 sps:$4 sm:$0xff]  }
 0x1d1   : > { %3204 = vmatprep.subr.bf16.mxu0 %v4638_v59 }
 0x1d2   : > { %3205 = vmatpush1.bf16.msra.mxu0 %v4636_v55 }
 0x1d7   : > { %1512 = vmatmul.mubr.bf16.gmra.mrb[84].mxu1 %v6019_v11  ;;  %v4641_v11 = vld [vmem:[%s5758_s24 + $0x84] ss:$8 sps:$4 sm:$0xff]  }
 0x1d8   : > { %1521 = vmatprep.mubr.bf16.mxu1 %v6025_v15  ;;  %v4639_v15 = vld [vmem:[%s5758_s24 + $0x80] ss:$8 sps:$4 sm:$0xff]   ;;  %3206 = vmatprep.subr.bf16.mxu0 %v4641_v11 }
 0x1d9   : > { %3207 = vmatpush1.bf16.msra.mxu0 %v4639_v15 }
 0x1df   : > { %1522 = vmatmul.mubr.bf16.gmra.mrb[88].mxu1 %v6035_v33  ;;  %v4644_v33 = vld [vmem:[%s5758_s24 + $0x94] ss:$8 sps:$4 sm:$0xff]  }
 0x1e0   : > { %1531 = vmatprep.mubr.bf16.mxu1 %v6041_v41  ;;  %v4642_v41 = vld [vmem:[%s5758_s24 + $0x90] ss:$8 sps:$4 sm:$0xff]   ;;  %3208 = vmatprep.subr.bf16.mxu0 %v4644_v33  ;;  %v736_v33 = vlaneseq }
 0x1e1   : > { %3209 = vmatpush1.bf16.msra.mxu0 %v4642_v41 }
 0x1e7   : > { %1532 = vmatmul.mubr.bf16.gmra.mrb[92].mxu1 %v6051_v61 }
 0x1e8   : > { %1541 = vmatprep.mubr.bf16.mxu1 %v6057_v4 }
 0x1ef   : > { %1542 = vmatmul.mubr.bf16.gmra.mrb[96].mxu1 %v6066_v25 }
 0x1f0   : > { %1551 = vmatprep.mubr.bf16.mxu1 %v6070_v27 }
 0x1f7   : > { %1552 = vmatmul.mubr.bf16.gmra.mrb[100].mxu1 %v6078_v46 }
 0x1f8   : > { %1561 = vmatprep.mubr.bf16.mxu1 %v6082_v50 }
 0x1ff   : > { %1562 = vmatmul.mubr.bf16.gmra.mrb[104].mxu1 %v6090_v13  ;;  %v4647_v13 = vld [vmem:[%s5758_s24 + $0xa4] ss:$8 sps:$4 sm:$0xff]  }
 0x200   : > { %1571 = vmatprep.mubr.bf16.mxu1 %v6094_v17  ;;  %3210 = vmatprep.subr.bf16.mxu0 %v4647_v13 }
 0x201   : > { %3211 = vmatpush1.bf16.msra.mxu0 %v4645_v3 }
 0x202   : > { %v6197_v61 = vpop.f32.mrb[0].mxu1  ;;  %v6199_v4 = vpop.f32.mrb[0].mxu0  ;;  %3212 = vmatprep.subr.bf16.mxu0 %v4650_v39 }
 0x203   : > { %v6201_v25 = vpop.f32.mrb[1].mxu1  ;;  %v6203_v27 = vpop.f32.mrb[1].mxu0 }
 0x204   : > { %v6205_v46 = vpop.f32.mrb[2].mxu1  ;;  %v6207_v50 = vpop.f32.mrb[2].mxu0 }
 0x205   : > { %v6209_v58 = vpop.f32.mrb[3].mxu1  ;;  %v6211_v9 = vpop.f32.mrb[3].mxu0 }
 0x207   : > { %1572 = vmatmul.mubr.bf16.gmra.mrb[108].mxu1 %v6102_v44 }
 0x208   : > { %1581 = vmatprep.mubr.bf16.mxu1 %v6106_v57 }
 0x20a   : > { %v6216_v17 = vpop.f32.mrb[4].mxu1  ;;  %v6218_v28 = vpop.f32.mrb[4].mxu0 }
 0x20b   : > { %v6220_v40 = vpop.f32.mrb[5].mxu1  ;;  %v6222_v42 = vpop.f32.mrb[5].mxu0 }
 0x20c   : > { %v6225_v19 = vpop.f32.mrb[6].mxu1  ;;  %v6227_v31 = vpop.f32.mrb[6].mxu0 }
 0x20d   : > { %v6229_v44 = vpop.f32.mrb[7].mxu1  ;;  %v6231_v57 = vpop.f32.mrb[7].mxu0 }
 0x20f   : > { %1582 = vmatmul.mubr.bf16.gmra.mrb[112].mxu1 %v6114_v29  ;;  %v4648_v29 = vld [vmem:[%s5758_s24 + $0xb0] ss:$8 sps:$4 sm:$0xff]  }
 0x210   : > { %1591 = vmatprep.mubr.bf16.mxu1 %v6118_v36  ;;  %3213 = vmatpush1.bf16.msra.mxu0 %v4648_v29 }
 0x211   : > { %3214 = vmatprep.subr.bf16.mxu0 %v4653_v52 }
 0x212   : > { %v6235_v43 = vpop.f32.mrb[8].mxu1  ;;  %v6237_v49 = vpop.f32.mrb[8].mxu0 }
 0x213   : > { %v6239_v53 = vpop.f32.mrb[9].mxu1  ;;  %v6241_v1 = vpop.f32.mrb[9].mxu0 }
 0x214   : > { %v6243_v5 = vpop.f32.mrb[10].mxu1  ;;  %v6245_v20 = vpop.f32.mrb[10].mxu0  ;;  %3215 = vmatpush1.bf16.msra.mxu0 %v4651_v6 }
 0x215   : > { %8833 = vst [vmem:[#allocation39_spill] sm:$0xff] %v6245_v20  ;;  %v6247_v22 = vpop.f32.mrb[11].mxu1  ;;  %v6249_v37 = vpop.f32.mrb[11].mxu0 }
 0x216   : > { %8834 = vst [vmem:[#allocation40_spill] sm:$0xff] %v6249_v37 }
 0x217   : > { %1592 = vmatmul.mubr.bf16.gmra.mrb[116].mxu1 %v6126_v8 }
 0x218   : > { %1601 = vmatprep.mubr.bf16.mxu1 %v6130_v23  ;;  %v6273_v23 = vshrl.u32 %v736_v33, 7 }
 0x21a   : > { %v6255_v36 = vpop.f32.mrb[12].mxu1  ;;  %v6259_v59 = vpop.f32.mrb[12].mxu0  ;;  %8839 = vst [vmem:[#allocation45_spill] sm:$0xff] %v6273_v23  ;;  %v742_v47 = vsub.s32 1, %v6273_v23 }
 0x21b   : > { %v6257_v55 = vpop.f32.mrb[13].mxu1  ;;  %8835 = vst [vmem:[#allocation41_spill] sm:$0xff] %v6259_v59  ;;  %v6263_v15 = vpop.f32.mrb[13].mxu0  ;;  %v4656_v59 = vld [vmem:[%s5758_s24 + $0xd4] ss:$8 sps:$4 sm:$0xff]  }
 0x21c   : > { %v6261_v11 = vpop.f32.mrb[14].mxu1  ;;  %8836 = vst [vmem:[#allocation42_spill] sm:$0xff] %v6263_v15  ;;  %v6267_v8 = vpop.f32.mrb[14].mxu0  ;;  %3216 = vmatprep.subr.bf16.mxu0 %v4656_v59 }
 0x21d   : > { %v6265_v41 = vpop.f32.mrb[15].mxu1  ;;  %8837 = vst [vmem:[#allocation43_spill] sm:$0xff] %v6267_v8  ;;  %v6269_v13 = vpop.f32.mrb[15].mxu0 }
 0x21e   : > { %8838 = vst [vmem:[#allocation44_spill] sm:$0xff] %v6269_v13 }
 0x21f   : > { %1602 = vmatmul.mubr.bf16.gmra.mrb[120].mxu1 %v6138_v63  ;;  %v738_v63 = vsub.s32 0, %v6273_v23 }
 0x220   : > { %1611 = vmatprep.mubr.bf16.mxu1 %v6142_v7 }
 0x222   : > { %v6275_v3 = vpop.f32.mrb[16].mxu1  ;;  %v6277_v39 = vpop.f32.mrb[16].mxu0 }
 0x223   : > { %8840 = vst [vmem:[#allocation46_spill] sm:$0xff] %v6277_v39  ;;  %v6279_v29 = vpop.f32.mrb[17].mxu1  ;;  %v6281_v30 = vpop.f32.mrb[17].mxu0  ;;  %v734_v39 = vld [vmem:[%s5756_s4] sm:$0xf] }
 0x224   : > { %8841 = vst [vmem:[#allocation47_spill] sm:$0xff] %v6281_v30  ;;  %v6285_v8 = vpop.f32.mrb[18].mxu1  ;;  %v6287_v13 = vpop.f32.mrb[18].mxu0  ;;  %v6298_v30 = vrot.slane %v734_v39, %v738_v63  ;;  %v6300_v45 = vrot.slane %v734_v39, %v742_v47 }
 0x225   : > { %8842 = vst [vmem:[#allocation48_spill] sm:$0xff] %v6287_v13  ;;  %v6290_v7 = vpop.f32.mrb[19].mxu1  ;;  %v6292_v33 = vpop.f32.mrb[19].mxu0 }
 0x226   : > { %8843 = vst [vmem:[#allocation49_spill] sm:$0xff] %v6292_v33  ;;  %8844 = vst [vmem:[#allocation50_spill] sm:$0xff] %v6300_v45  ;;  %v4654_v33 = vld [vmem:[%s5758_s24 + $0xd0] ss:$8 sps:$4 sm:$0xff]   ;;  %v6326_v39 = vadd.f32 %v6201_v25, %v6300_v45  ;;  %v6330_v63 = vadd.f32 %v6205_v46, %v6298_v30  ;;  %v6335_v59 = vadd.f32 %v6209_v58, %v6300_v45 }
 0x227   : > { %1612 = vmatmul.mubr.bf16.gmra.mrb[124].mxu1 %v6150_v14  ;;  %3217 = vmatpush1.bf16.msra.mxu0 %v4654_v33 }
 0x228   : > { %1621 = vmatprep.mubr.bf16.mxu1 %v5911_v16  ;;  %v6318_v16 = vadd.f32 %v6197_v61, %v6298_v30  ;;  %8850 = vst [vmem:[#allocation56_spill] sm:$0xff] %v6326_v39  ;;  %8851 = vst [vmem:[#allocation57_spill] sm:$0xff] %v6330_v63  ;;  %v1847_v33 = vsub.f32 0.0, %v6326_v39  ;;  %v1848_v46 = vsub.f32 0.0, %v6330_v63  ;;  %v1849_v58 = vsub.f32 0.0, %v6335_v59 }
 0x229   : > { %8852 = vst [vmem:[#allocation58_spill] sm:$0xff] %v6335_v59  ;;  %v6356_v39 = vadd.f32 %v6216_v17, %v6298_v30  ;;  %v6374_v17 = vadd.f32 %v6229_v44, %v6300_v45  ;;  %v6388_v44 = vadd.f32 %v6203_v27, %v6300_v45  ;;  %v6406_v27 = vadd.f32 %v6211_v9, %v6300_v45 }
 0x22a   : > { %v6302_v13 = vpop.f32.mrb[20].mxu1  ;;  %v6304_v15 = vpop.f32.mrb[20].mxu0  ;;  %8848 = vst [vmem:[#allocation54_spill] sm:$0xff] %v6318_v16  ;;  %v1846_v61 = vsub.f32 0.0, %v6318_v16  ;;  %v2040_v63 = vmul.f32 1.442695, %v1847_v33  ;;  %v6368_v16 = vadd.f32 %v6225_v19, %v6298_v30 }
 0x22b   : > { %8845 = vst [vmem:[#allocation51_spill] sm:$0xff] %v6304_v15  ;;  %v6307_v37 = vpop.f32.mrb[21].mxu1  ;;  %v6309_v52 = vpop.f32.mrb[21].mxu0  ;;  %8856 = vst [vmem:[#allocation62_spill] sm:$0xff] %v6356_v39  ;;  %v2042_v59 = vmul.f32 1.442695, %v1848_v46  ;;  %v6381_v46 = vadd.f32 %v6199_v4, %v6298_v30  ;;  %v6397_v4 = vadd.f32 %v6207_v50, %v6298_v30 }
 0x22c   : > { %8846 = vst [vmem:[#allocation52_spill] sm:$0xff] %v6309_v52  ;;  %v6312_v23 = vpop.f32.mrb[22].mxu1  ;;  %v6314_v6 = vpop.f32.mrb[22].mxu0  ;;  %v2038_v15 = vmul.f32 1.442695, %v1846_v61  ;;  %8859 = vst [vmem:[#allocation65_spill] sm:$0xff] %v6368_v16 }
 0x22d   : > { %8847 = vst [vmem:[#allocation53_spill] sm:$0xff] %v6314_v6  ;;  %v6320_v47 = vpop.f32.mrb[23].mxu1  ;;  %v6322_v14 = vpop.f32.mrb[23].mxu0  ;;  %v4659_v61 = vld [vmem:[%s5758_s24 + $0xe4] ss:$8 sps:$4 sm:$0xff]   ;;  %8860 = vst [vmem:[#allocation66_spill] sm:$0xff] %v6374_v17 }
 0x22e   : > { %8849 = vst [vmem:[#allocation55_spill] sm:$0xff] %v6322_v14  ;;  %v4657_v33 = vld [vmem:[%s5758_s24 + $0xe0] ss:$8 sps:$4 sm:$0xff]   ;;  %4663 = vpow2.f32 %v2038_v15  ;;  %8861 = vst [vmem:[#allocation67_spill] sm:$0xff] %v6381_v46  ;;  %3218 = vmatprep.subr.bf16.mxu0 %v4659_v61  ;;  %v1853_v61 = vsub.f32 0.0, %v6374_v17  ;;  %v1782_v50 = vsub.f32 0.0, %v6381_v46 }
 0x22f   : > { %1622 = vmatmul.mubr.bf16.gmra.mrb[128].mxu1 %v5937_v48  ;;  %4665 = vpow2.f32 %v2040_v63  ;;  %3219 = vmatpush1.bf16.msra.mxu0 %v4657_v33  ;;  %8863 = vst [vmem:[#allocation69_spill] sm:$0xff] %v6397_v4  ;;  %8865 = vst [vmem:[#allocation71_spill] sm:$0xff] %v6406_v27  ;;  %v1784_v9 = vsub.f32 0.0, %v6397_v4  ;;  %v4662_v46 = vld [vmem:[%s5758_s24 + $0xf4] ss:$8 sps:$4 sm:$0xff]  }
 0x230   : > { %1631 = vmatprep.mubr.bf16.mxu1 %v5942_v51  ;;  %4667 = vpow2.f32 %v2042_v59  ;;  %3220 = vmatprep.subr.bf16.mxu0 %v4662_v46 }
 0x232   : > { %v6340_v14 = vpop.f32.mrb[24].mxu1  ;;  %v6342_v25 = vpop.f32.mrb[24].mxu0 }
 0x233   : > { %8853 = vst [vmem:[#allocation59_spill] sm:$0xff] %v6342_v25  ;;  %v6345_v6 = vpop.f32.mrb[25].mxu1  ;;  %v6347_v48 = vpop.f32.mrb[25].mxu0 }
 0x234   : > { %8854 = vst [vmem:[#allocation60_spill] sm:$0xff] %v6347_v48  ;;  %v6350_v52 = vpop.f32.mrb[26].mxu1  ;;  %v6352_v51 = vpop.f32.mrb[26].mxu0  ;;  %v6364_v48 = vadd.f32 %v6220_v40, %v6300_v45  ;;  %v1850_v40 = vsub.f32 0.0, %v6356_v39  ;;  %v4660_v39 = vld [vmem:[%s5758_s24 + $0xf0] ss:$8 sps:$4 sm:$0xff]  }
 0x235   : > { %8855 = vst [vmem:[#allocation61_spill] sm:$0xff] %v6352_v51  ;;  %v6358_v25 = vpop.f32.mrb[27].mxu1  ;;  %v6360_v20 = vpop.f32.mrb[27].mxu0  ;;  %v2044_v51 = vmul.f32 1.442695, %v1849_v58  ;;  %3221 = vmatpush1.bf16.msra.mxu0 %v4660_v39 }
 0x236   : > { %8857 = vst [vmem:[#allocation63_spill] sm:$0xff] %v6360_v20  ;;  %8858 = vst [vmem:[#allocation64_spill] sm:$0xff] %v6364_v48  ;;  %v2046_v33 = vmul.f32 1.442695, %v1850_v40  ;;  %v2052_v40 = vmul.f32 1.442695, %v1853_v61 }
 0x237   : > { %1632 = vmatmul.mubr.bf16.gmra.mrb[132].mxu1 %v5953_v0  ;;  %v1851_v0 = vsub.f32 0.0, %v6364_v48  ;;  %4669 = vpow2.f32 %v2044_v51  ;;  %v6415_v51 = vadd.f32 %v6218_v28, %v6298_v30 }
 0x238   : > { %1641 = vmatprep.mubr.bf16.mxu1 %v5957_v2  ;;  %v1852_v2 = vsub.f32 0.0, %v6368_v16  ;;  %v1783_v16 = vsub.f32 0.0, %v6388_v44  ;;  %4671 = vpow2.f32 %v2046_v33  ;;  %v6437_v33 = vadd.f32 %v6239_v53, %v6300_v45 }
 0x239   : > { %8868 = vst [vmem:[#allocation74_spill] sm:$0xff] %v6415_v51  ;;  %v2048_v17 = vmul.f32 1.442695, %v1851_v0  ;;  %v1786_v28 = vsub.f32 0.0, %v6415_v51  ;;  %v6429_v0 = vadd.f32 %v6235_v43, %v6298_v30  ;;  %v6453_v53 = vadd.f32 %v6247_v22, %v6300_v45 }
 0x23a   : > { %v6384_v19 = vpop.f32.mrb[28].mxu1  ;;  %v6390_v58 = vpop.f32.mrb[28].mxu0  ;;  %v2050_v48 = vmul.f32 1.442695, %v1852_v2 }
 0x23b   : > { %8862 = vst [vmem:[#allocation68_spill] sm:$0xff] %v6390_v58  ;;  %v6393_v15 = vpop.f32.mrb[29].mxu1  ;;  %v6399_v63 = vpop.f32.mrb[29].mxu0  ;;  %4673 = vpow2.f32 %v2048_v17  ;;  %v1918_v39 = vmul.f32 1.442695, %v1786_v28  ;;  %v1857_v28 = vsub.f32 0.0, %v6453_v53 }
 0x23c   : > { %8864 = vst [vmem:[#allocation70_spill] sm:$0xff] %v6399_v63  ;;  %v6402_v20 = vpop.f32.mrb[30].mxu1  ;;  %v6408_v59 = vpop.f32.mrb[30].mxu0  ;;  %4675 = vpow2.f32 %v2050_v48 }
 0x23d   : > { %8866 = vst [vmem:[#allocation72_spill] sm:$0xff] %v6408_v59  ;;  %v6410_v58 = vpop.f32.mrb[31].mxu1  ;;  %v6417_v63 = vpop.f32.mrb[31].mxu0  ;;  %v1785_v59 = vsub.f32 0.0, %v6406_v27  ;;  %4677 = vpow2.f32 %v2052_v40 }
 0x23e   : > { %8867 = vst [vmem:[#allocation73_spill] sm:$0xff] %v6410_v58  ;;  %8869 = vst [vmem:[#allocation75_spill] sm:$0xff] %v6417_v63  ;;  %v1910_v58 = vmul.f32 1.442695, %v1782_v50  ;;  %v1914_v63 = vmul.f32 1.442695, %v1784_v9 }
 0x23f   : > { %1642 = vmatmul.mubr.bf16.gmra.mrb[136].mxu1 %v5970_v18  ;;  %v1912_v18 = vmul.f32 1.442695, %v1783_v16  ;;  %v6445_v16 = vadd.f32 %v6243_v5, %v6298_v30  ;;  %v1854_v5 = vsub.f32 0.0, %v6429_v0 }
 0x240   : > { %1651 = vmatprep.mubr.bf16.mxu1 %v5975_v21  ;;  %v4664_v21 = vpop.eup %4663  ;;  %4679 = vpow2.f32 %v1910_v58 }
 0x241   : > { %v4666_v43 = vpop.eup %4665  ;;  %v2230_v27 = vadd.f32 1.0, %v4664_v21  ;;  %4681 = vpow2.f32 %v1912_v18  ;;  %v1856_v22 = vsub.f32 0.0, %v6445_v16  ;;  %v2054_v21 = vmul.f32 1.442695, %v1854_v5 }
 0x242   : > { %v6431_v2 = vpop.f32.mrb[32].mxu1  ;;  %v6433_v61 = vpop.f32.mrb[32].mxu0  ;;  %v2231_v4 = vadd.f32 1.0, %v4666_v43  ;;  %4683 = vpow2.f32 %v1914_v63  ;;  %v6467_v18 = vadd.f32 %v6255_v36, %v6298_v30  ;;  %v6483_v36 = vadd.f32 %v6261_v11, %v6298_v30 }
 0x243   : > { %8870 = vst [vmem:[#allocation76_spill] sm:$0xff] %v6433_v61  ;;  %v6439_v50 = vpop.f32.mrb[33].mxu1  ;;  %v6441_v17 = vpop.f32.mrb[33].mxu0  ;;  %v1916_v61 = vmul.f32 1.442695, %v1785_v59  ;;  %v1855_v59 = vsub.f32 0.0, %v6437_v33 }
 0x244   : > { %8871 = vst [vmem:[#allocation77_spill] sm:$0xff] %v6441_v17  ;;  %v6447_v46 = vpop.f32.mrb[34].mxu1  ;;  %v6449_v48 = vpop.f32.mrb[34].mxu0  ;;  %v1858_v11 = vsub.f32 0.0, %v6467_v18 }
 0x245   : > { %8872 = vst [vmem:[#allocation78_spill] sm:$0xff] %v6447_v46  ;;  %8873 = vst [vmem:[#allocation79_spill] sm:$0xff] %v6449_v48  ;;  %v4668_v51 = vpop.eup %4667  ;;  %v6455_v9 = vpop.f32.mrb[35].mxu1  ;;  %4685 = vpow2.f32 %v1916_v61 }
 0x246   : > { %8874 = vst [vmem:[#allocation80_spill] sm:$0xff] %v6455_v9  ;;  %v6457_v17 = vpop.f32.mrb[35].mxu0  ;;  %v4670_v40 = vpop.eup %4669  ;;  %v2232_v48 = vadd.f32 1.0, %v4668_v51  ;;  %4687 = vpow2.f32 %v1918_v39  ;;  %v2056_v51 = vmul.f32 1.442695, %v1855_v59 }
 0x247   : > { %8875 = vst [vmem:[#allocation81_spill] sm:$0xff] %v6457_v17  ;;  %1652 = vmatmul.mubr.bf16.gmra.mrb[140].mxu1 %v5986_v35  ;;  %v2233_v58 = vadd.f32 1.0, %v4670_v40  ;;  %4689 = vrcp.f32 %v2230_v27  ;;  %v4672_v63 = vpop.eup %4671  ;;  %v2058_v40 = vmul.f32 1.442695, %v1856_v22  ;;  %v2060_v59 = vmul.f32 1.442695, %v1857_v28 }
 0x248   : > { %1661 = vmatprep.mubr.bf16.mxu1 %v5991_v38  ;;  %4691 = vrcp.f32 %v2231_v4  ;;  %v6475_v38 = vadd.f32 %v6257_v55, %v6300_v45  ;;  %v4674_v27 = vpop.eup %4673  ;;  %v6491_v55 = vadd.f32 %v6265_v41, %v6300_v45  ;;  %v2234_v22 = vadd.f32 1.0, %v4672_v63 }
 0x249   : > { %4693 = vrcp.f32 %v2232_v48  ;;  %v4676_v4 = vpop.eup %4675  ;;  %v1860_v63 = vsub.f32 0.0, %v6483_v36 }
 0x24a   : > { %v6469_v43 = vpop.f32.mrb[36].mxu1  ;;  %v6471_v35 = vpop.f32.mrb[36].mxu0  ;;  %4695 = vrcp.f32 %v2233_v58  ;;  %v6501_v58 = vadd.f32 %v6275_v3, %v6298_v30  ;;  %v2236_v28 = vadd.f32 1.0, %v4676_v4  ;;  %v1861_v3 = vsub.f32 0.0, %v6491_v55 }
 0x24b   : > { %8876 = vst [vmem:[#allocation82_spill] sm:$0xff] %v6469_v43  ;;  %8877 = vst [vmem:[#allocation83_spill] sm:$0xff] %v6471_v35  ;;  %v6477_v61 = vpop.f32.mrb[37].mxu1  ;;  %v6479_v39 = vpop.f32.mrb[37].mxu0  ;;  %4697 = vpow2.f32 %v2054_v21  ;;  %v6509_v21 = vadd.f32 %v6279_v29, %v6300_v45  ;;  %v6523_v29 = vadd.f32 %v6290_v7, %v6300_v45 }
 0x24c   : > { %8878 = vst [vmem:[#allocation84_spill] sm:$0xff] %v6477_v61  ;;  %8879 = vst [vmem:[#allocation85_spill] sm:$0xff] %v6479_v39  ;;  %v6485_v5 = vpop.f32.mrb[38].mxu1  ;;  %v6487_v43 = vpop.f32.mrb[38].mxu0  ;;  %4699 = vpow2.f32 %v2056_v51 }
 0x24d   : > { %8880 = vst [vmem:[#allocation86_spill] sm:$0xff] %v6485_v5  ;;  %8881 = vst [vmem:[#allocation87_spill] sm:$0xff] %v6487_v43  ;;  %v6493_v61 = vpop.f32.mrb[39].mxu1  ;;  %v6495_v39 = vpop.f32.mrb[39].mxu0  ;;  %v2235_v5 = vadd.f32 1.0, %v4674_v27  ;;  %v1859_v43 = vsub.f32 0.0, %v6475_v38  ;;  %4701 = vpow2.f32 %v2058_v40 }
 0x24e   : > { %8882 = vst [vmem:[#allocation88_spill] sm:$0xff] %v6493_v61  ;;  %8883 = vst [vmem:[#allocation89_spill] sm:$0xff] %v6495_v39  ;;  %v4678_v48 = vpop.eup %4677  ;;  %4703 = vpow2.f32 %v2060_v59  ;;  %v2062_v40 = vmul.f32 1.442695, %v1858_v11  ;;  %v1862_v39 = vsub.f32 0.0, %v6501_v58  ;;  %v1863_v7 = vsub.f32 0.0, %v6509_v21 }
 0x24f   : > { %v4680_v35 = vpop.eup %4679  ;;  %1662 = vmatmul.mubr.bf16.gmra.mrb[144].mxu1 %v6001_v54  ;;  %8884 = vst [vmem:[#allocation90_spill] sm:$0xff] %v6509_v21  ;;  %v2237_v27 = vadd.f32 1.0, %v4678_v48  ;;  %v6517_v54 = vadd.f32 %v6285_v8, %v6298_v30  ;;  %4705 = vrcp.f32 %v2234_v22  ;;  %v2064_v59 = vmul.f32 1.442695, %v1859_v43 }
 0x250   : > { %v6504_v41 = vpop.eup %4681  ;;  %1671 = vmatprep.mubr.bf16.mxu1 %v6005_v56  ;;  %4707 = vrcp.f32 %v2235_v5  ;;  %v2066_v11 = vmul.f32 1.442695, %v1860_v63  ;;  %v2068_v43 = vmul.f32 1.442695, %v1861_v3  ;;  %v2166_v63 = vadd.f32 1.0, %v4680_v35 }
 0x251   : > { %v6512_v51 = vpop.eup %4683  ;;  %4709 = vrcp.f32 %v2236_v28  ;;  %v1864_v5 = vsub.f32 0.0, %v6517_v54  ;;  %v1865_v28 = vsub.f32 0.0, %v6523_v29 }
 0x252   : > { %v6519_v4 = vpop.eup %4685  ;;  %v6525_v61 = vpop.f32.mrb[40].mxu1  ;;  %4711 = vrcp.f32 %v2237_v27  ;;  %v6557_v27 = vadd.f32 %v6302_v13, %v6298_v30 }
 0x253   : > { %8885 = vst [vmem:[#allocation91_spill] sm:$0xff] %v6525_v61  ;;  %v6527_v56 = vpop.f32.mrb[40].mxu0  ;;  %v6529_v48 = vpop.eup %4687  ;;  %4713 = vpow2.f32 %v2062_v40  ;;  %v2074_v40 = vmul.f32 1.442695, %v1864_v5 }
 0x254   : > { %8886 = vst [vmem:[#allocation92_spill] sm:$0xff] %v6527_v56  ;;  %v6532_v8 = vpop.f32.mrb[41].mxu1  ;;  %v6534_v17 = vpop.f32.mrb[41].mxu0  ;;  %4715 = vpow2.f32 %v2064_v59  ;;  %8893 = vst [vmem:[#allocation99_spill] sm:$0xff] %v6557_v27  ;;  %v2076_v59 = vmul.f32 1.442695, %v1865_v28 }
 0x255   : > { %8887 = vst [vmem:[#allocation93_spill] sm:$0xff] %v6532_v8  ;;  %8888 = vst [vmem:[#allocation94_spill] sm:$0xff] %v6534_v17  ;;  %v6536_v22 = vpop.eup %4689  ;;  %v6539_v9 = vpop.f32.mrb[42].mxu1  ;;  %4717 = vpow2.f32 %v2066_v11 }
 0x256   : > { %8889 = vst [vmem:[#allocation95_spill] sm:$0xff] %v6539_v9  ;;  %v6541_v61 = vpop.f32.mrb[42].mxu0  ;;  %v6543_v56 = vpop.eup %4691  ;;  %v2070_v9 = vmul.f32 1.442695, %v1862_v39  ;;  %4719 = vpow2.f32 %v2068_v43  ;;  %v6567_v39 = vadd.f32 %v6312_v23, %v6298_v30  ;;  %v1866_v43 = vsub.f32 0.0, %v6557_v27 }
 0x257   : > { %8890 = vst [vmem:[#allocation96_spill] sm:$0xff] %v6541_v61  ;;  %v6546_v46 = vpop.f32.mrb[43].mxu1  ;;  %v6548_v8 = vpop.f32.mrb[43].mxu0  ;;  %1672 = vmatmul.mubr.bf16.gmra.mrb[148].mxu1 %v6017_v10  ;;  %v6571_v10 = vadd.f32 %v6320_v47, %v6300_v45  ;;  %4721 = vrcp.f32 %v2166_v63 }
 0x258   : > { %8891 = vst [vmem:[#allocation97_spill] sm:$0xff] %v6546_v46  ;;  %8892 = vst [vmem:[#allocation98_spill] sm:$0xff] %v6548_v8  ;;  %v6550_v17 = vpop.eup %4693  ;;  %v2072_v46 = vmul.f32 1.442695, %v1863_v7  ;;  %v6562_v8 = vadd.f32 %v6307_v37, %v6300_v45  ;;  %1681 = vmatprep.mubr.bf16.mxu1 %v6021_v12  ;;  %4723 = vpow2.f32 %v2070_v9  ;;  %v1868_v9 = vsub.f32 0.0, %v6567_v39 }
 0x259   : > { %v6553_v21 = vpop.eup %4695  ;;  %8895 = vst [vmem:[#allocation101_spill] sm:$0xff] %v6567_v39  ;;  %8896 = vst [vmem:[#allocation102_spill] sm:$0xff] %v6571_v10 }
 0x25a   : > { %v4698_v3 = vpop.eup %4697  ;;  %8894 = vst [vmem:[#allocation100_spill] sm:$0xff] %v6562_v8  ;;  %v6573_v11 = vpop.f32.mrb[44].mxu1  ;;  %4725 = vpow2.f32 %v2072_v46  ;;  %v1867_v47 = vsub.f32 0.0, %v6562_v8  ;;  %v1869_v46 = vsub.f32 0.0, %v6571_v10 }
 0x25b   : > { %v4700_v35 = vpop.eup %4699  ;;  %8897 = vst [vmem:[#allocation103_spill] sm:$0xff] %v6573_v11  ;;  %v6575_v37 = vpop.f32.mrb[44].mxu0  ;;  %v2238_v12 = vadd.f32 1.0, %v4698_v3  ;;  %4727 = vpow2.f32 %v2074_v40 }
 0x25c   : > { %v4702_v13 = vpop.eup %4701  ;;  %8898 = vst [vmem:[#allocation104_spill] sm:$0xff] %v6575_v37  ;;  %v6578_v5 = vpop.f32.mrb[45].mxu1  ;;  %v2239_v28 = vadd.f32 1.0, %v4700_v35  ;;  %4729 = vpow2.f32 %v2076_v59  ;;  %v2080_v40 = vmul.f32 1.442695, %v1867_v47 }
 0x25d   : > { %v4704_v7 = vpop.eup %4703  ;;  %8899 = vst [vmem:[#allocation105_spill] sm:$0xff] %v6578_v5  ;;  %v6580_v23 = vpop.f32.mrb[45].mxu0  ;;  %v2240_v3 = vadd.f32 1.0, %v4702_v13  ;;  %4731 = vrcp.f32 %v2238_v12  ;;  %v2082_v59 = vmul.f32 1.442695, %v1868_v9  ;;  %v6623_v9 = vadd.f32 %v6340_v14, %v6298_v30 }
 0x25e   : > { %8900 = vst [vmem:[#allocation106_spill] sm:$0xff] %v6580_v23  ;;  %v6582_v61 = vpop.eup %4705  ;;  %v6585_v63 = vpop.f32.mrb[46].mxu1  ;;  %v2241_v35 = vadd.f32 1.0, %v4704_v7  ;;  %4733 = vrcp.f32 %v2239_v28  ;;  %v2084_v10 = vmul.f32 1.442695, %v1869_v46  ;;  %v6613_v28 = vadd.f32 %v6227_v31, %v6298_v30 }
 0x25f   : > { %8901 = vst [vmem:[#allocation107_spill] sm:$0xff] %v6585_v63  ;;  %v6587_v11 = vpop.f32.mrb[46].mxu0  ;;  %v6589_v37 = vpop.eup %4707  ;;  %v2078_v63 = vmul.f32 1.442695, %v1866_v43  ;;  %1682 = vmatmul.mubr.bf16.gmra.mrb[152].mxu1 %v6033_v32  ;;  %4735 = vrcp.f32 %v2240_v3  ;;  %8909 = vst [vmem:[#allocation115_spill] sm:$0xff] %v6623_v9 }
 0x260   : > { %8902 = vst [vmem:[#allocation108_spill] sm:$0xff] %v6587_v11  ;;  %v6592_v27 = vpop.f32.mrb[47].mxu1  ;;  %v6594_v5 = vpop.f32.mrb[47].mxu0  ;;  %1691 = vmatprep.mubr.bf16.mxu1 %v6037_v34  ;;  %4737 = vrcp.f32 %v2241_v35  ;;  %v8944_v11 = vld [vmem:[#allocation58_spill] sm:$0xff] }
 0x261   : > { %8903 = vst [vmem:[#allocation109_spill] sm:$0xff] %v6592_v27  ;;  %8904 = vst [vmem:[#allocation110_spill] sm:$0xff] %v6594_v5  ;;  %v6596_v23 = vpop.eup %4709  ;;  %v6604_v27 = vadd.f32 %v6222_v42, %v6300_v45  ;;  %4739 = vpow2.f32 %v2078_v63 }
 0x262   : > { %v6599_v8 = vpop.eup %4711  ;;  %v6607_v5 = vpop.f32.mrb[48].mxu1  ;;  %4741 = vpow2.f32 %v2080_v40 }
 0x263   : > { %v4714_v13 = vpop.eup %4713  ;;  %8905 = vst [vmem:[#allocation111_spill] sm:$0xff] %v6607_v5  ;;  %v6609_v12 = vpop.f32.mrb[48].mxu0  ;;  %v1787_v35 = vsub.f32 0.0, %v6604_v27  ;;  %4743 = vpow2.f32 %v2082_v59 }
 0x264   : > { %v4716_v39 = vpop.eup %4715  ;;  %8906 = vst [vmem:[#allocation112_spill] sm:$0xff] %v6609_v12  ;;  %v2242_v43 = vadd.f32 1.0, %v4714_v13  ;;  %v6615_v42 = vpop.f32.mrb[49].mxu1  ;;  %4745 = vpow2.f32 %v2084_v10  ;;  %v1870_v10 = vsub.f32 0.0, %v6623_v9 }
 0x265   : > { %v4718_v7 = vpop.eup %4717  ;;  %8907 = vst [vmem:[#allocation113_spill] sm:$0xff] %v6615_v42  ;;  %v6617_v34 = vpop.f32.mrb[49].mxu0  ;;  %v2243_v3 = vadd.f32 1.0, %v4716_v39  ;;  %v6632_v42 = vadd.f32 %v6345_v6, %v6300_v45  ;;  %v6636_v39 = vadd.f32 %v6231_v57, %v6300_v45  ;;  %v6648_v6 = vadd.f32 %v6358_v25, %v6300_v45 }
 0x266   : > { %v4720_v32 = vpop.eup %4719  ;;  %8908 = vst [vmem:[#allocation114_spill] sm:$0xff] %v6617_v34  ;;  %v6626_v46 = vpop.f32.mrb[50].mxu1  ;;  %v2244_v13 = vadd.f32 1.0, %v4718_v7  ;;  %4747 = vrcp.f32 %v2242_v43  ;;  %v2167_v57 = vadd.f32 1.0, %v6504_v41  ;;  %v1788_v7 = vsub.f32 0.0, %v6613_v28 }
 0x267   : > { %v6619_v47 = vpop.eup %4721  ;;  %8910 = vst [vmem:[#allocation116_spill] sm:$0xff] %v6626_v46  ;;  %v6628_v63 = vpop.f32.mrb[50].mxu0  ;;  %8912 = vst [vmem:[#allocation118_spill] sm:$0xff] %v6632_v42  ;;  %v2245_v34 = vadd.f32 1.0, %v4720_v32  ;;  %v6644_v46 = vadd.f32 %v6350_v52, %v6298_v30  ;;  %1692 = vmatmul.mubr.bf16.gmra.mrb[156].mxu1 %v6049_v60  ;;  %4749 = vrcp.f32 %v2243_v3  ;;  %v1871_v43 = vsub.f32 0.0, %v6632_v42 }
 0x268   : > { %8911 = vst [vmem:[#allocation117_spill] sm:$0xff] %v6628_v63  ;;  %v4724_v31 = vpop.eup %4723  ;;  %v6638_v40 = vpop.f32.mrb[51].mxu1  ;;  %8916 = vst [vmem:[#allocation122_spill] sm:$0xff] %v6648_v6  ;;  %1701 = vmatprep.mubr.bf16.mxu1 %v6053_v62  ;;  %4751 = vrcp.f32 %v2244_v13  ;;  %v1789_v41 = vsub.f32 0.0, %v6636_v39  ;;  %v1873_v42 = vsub.f32 0.0, %v6648_v6 }
 0x269   : > { %8913 = vst [vmem:[#allocation119_spill] sm:$0xff] %v6638_v40  ;;  %v6640_v14 = vpop.f32.mrb[51].mxu0  ;;  %v4726_v5 = vpop.eup %4725  ;;  %8915 = vst [vmem:[#allocation121_spill] sm:$0xff] %v6644_v46  ;;  %v2246_v32 = vadd.f32 1.0, %v4724_v31  ;;  %4753 = vrcp.f32 %v2245_v34  ;;  %v1872_v3 = vsub.f32 0.0, %v6644_v46 }
 0x26a   : > { %8914 = vst [vmem:[#allocation120_spill] sm:$0xff] %v6640_v14  ;;  %v4728_v59 = vpop.eup %4727  ;;  %v6654_v14 = vmul.f32 1.442695, %v1787_v35  ;;  %v2247_v25 = vadd.f32 1.0, %v4726_v5  ;;  %v6666_v35 = vadd.f32 %v6237_v49, %v6298_v30  ;;  %v6668_v31 = vpop.f32.mrb[52].mxu1  ;;  %4755 = vrcp.f32 %v2167_v57 }
 0x26b   : > { %v4730_v40 = vpop.eup %4729  ;;  %v2248_v60 = vadd.f32 1.0, %v4728_v59  ;;  %8917 = vst [vmem:[#allocation123_spill] sm:$0xff] %v6668_v31  ;;  %v6670_v62 = vpop.f32.mrb[52].mxu0  ;;  %v6675_v9 = vmul.f32 1.442695, %v1788_v7  ;;  %4757 = vrcp.f32 %v2246_v32  ;;  %v6684_v31 = vadd.f32 1.0, %v6512_v51 }
 0x26c   : > { %v6657_v52 = vpop.eup %4731  ;;  %8918 = vst [vmem:[#allocation124_spill] sm:$0xff] %v6670_v62  ;;  %v2249_v5 = vadd.f32 1.0, %v4730_v40  ;;  %v6677_v34 = vpop.f32.mrb[53].mxu1  ;;  %v2086_v49 = vmul.f32 1.442695, %v1870_v10  ;;  %4759 = vrcp.f32 %v2247_v25  ;;  %v6697_v10 = vadd.f32 1.0, %v6519_v4 }
 0x26d   : > { %v6661_v63 = vpop.eup %4733  ;;  %8919 = vst [vmem:[#allocation125_spill] sm:$0xff] %v6677_v34  ;;  %v6679_v59 = vpop.f32.mrb[53].mxu0  ;;  %v2088_v57 = vmul.f32 1.442695, %v1871_v43  ;;  %v6690_v7 = vmul.f32 1.442695, %v1789_v41  ;;  %4761 = vrcp.f32 %v2248_v60  ;;  %v6701_v51 = vadd.f32 %v6241_v1, %v6300_v45 }
 0x26e   : > { %v6672_v13 = vpop.eup %4735  ;;  %8920 = vst [vmem:[#allocation126_spill] sm:$0xff] %v6679_v59  ;;  %v6686_v62 = vpop.f32.mrb[54].mxu1  ;;  %v2090_v32 = vmul.f32 1.442695, %v1872_v3  ;;  %4763 = vrcp.f32 %v2249_v5  ;;  %v2092_v25 = vmul.f32 1.442695, %v1873_v42  ;;  %v6705_v43 = vadd.f32 %v6384_v19, %v6298_v30 }
 0x26f   : > { %v6681_v46 = vpop.eup %4737  ;;  %8921 = vst [vmem:[#allocation127_spill] sm:$0xff] %v6686_v62  ;;  %v6688_v12 = vpop.f32.mrb[54].mxu0  ;;  %v1790_v41 = vsub.f32 0.0, %v6666_v35  ;;  %1702 = vmatmul.mubr.bf16.gmra.mrb[160].mxu1 %v6064_v24  ;;  %4765 = vpow2.f32 %v2086_v49  ;;  %v6711_v4 = vadd.f32 %v6393_v15, %v6300_v45  ;;  %v6714_v1 = vadd.f32 1.0, %v6529_v48  ;;  %v8927_v19 = vld [vmem:[#allocation54_spill] sm:$0xff] }
 0x270   : > { %8922 = vst [vmem:[#allocation128_spill] sm:$0xff] %v6688_v12  ;;  %v4740_v40 = vpop.eup %4739  ;;  %v6692_v6 = vpop.f32.mrb[55].mxu1  ;;  %8925 = vst [vmem:[#allocation131_spill] sm:$0xff] %v6705_v43  ;;  %1711 = vmatprep.mubr.bf16.mxu1 %v6068_v26  ;;  %v6721_v5 = vmul.f32 %v6536_v22, %v8927_v19  ;;  %4767 = vpow2.f32 %v2088_v57  ;;  %v6725_v24 = vadd.f32 %v6402_v20, %v6298_v30  ;;  %v1791_v48 = vsub.f32 0.0, %v6701_v51  ;;  %v8930_v26 = vld [vmem:[#allocation39_spill] sm:$0xff] }
 0x271   : > { %8923 = vst [vmem:[#allocation129_spill] sm:$0xff] %v6692_v6  ;;  %v6694_v34 = vpop.f32.mrb[55].mxu0  ;;  %v4742_v59 = vpop.eup %4741  ;;  %v2250_v3 = vadd.f32 1.0, %v4740_v40  ;;  %8926 = vst [vmem:[#allocation132_spill] sm:$0xff] %v6711_v4  ;;  %4769 = vpow2.f32 %v2090_v32  ;;  %v6732_v40 = vadd.f32 %v8930_v26, %v6298_v30  ;;  %v1874_v20 = vsub.f32 0.0, %v6705_v43  ;;  %v8936_v26 = vld [vmem:[#allocation56_spill] sm:$0xff] }
 0x272   : > { %8924 = vst [vmem:[#allocation130_spill] sm:$0xff] %v6694_v34  ;;  %v4744_v62 = vpop.eup %4743  ;;  %8928 = vst [vmem:[#allocation54_spill] sm:$0xff] %v6721_v5  ;;  %v2251_v6 = vadd.f32 1.0, %v4742_v59  ;;  %v6734_v34 = vpop.f32.mrb[56].mxu1  ;;  %4771 = vpow2.f32 %v2092_v25  ;;  %v6741_v19 = vmul.f32 1.442695, %v1790_v41  ;;  %v6751_v12 = vmul.f32 %v6543_v56, %v8936_v26 }
 0x273   : > { %v4746_v60 = vpop.eup %4745  ;;  %8929 = vst [vmem:[#allocation133_spill] sm:$0xff] %v6725_v24  ;;  %v2252_v15 = vadd.f32 1.0, %v4744_v62  ;;  %8931 = vst [vmem:[#allocation39_spill] sm:$0xff] %v6732_v40  ;;  %v6736_v22 = vpop.f32.mrb[56].mxu0  ;;  %4773 = vrcp.f32 %v2250_v3  ;;  %v6770_v56 = vmul.f32 %v6553_v21, %v8944_v11  ;;  %v1876_v3 = vsub.f32 0.0, %v6725_v24  ;;  %v8949_v11 = vld [vmem:[#allocation62_spill] sm:$0xff] }
 0x274   : > { %v6717_v42 = vpop.eup %4747  ;;  %8932 = vst [vmem:[#allocation134_spill] sm:$0xff] %v6734_v34  ;;  %8933 = vst [vmem:[#allocation135_spill] sm:$0xff] %v6736_v22  ;;  %v2253_v57 = vadd.f32 1.0, %v4746_v60  ;;  %v6743_v62 = vpop.f32.mrb[57].mxu1  ;;  %v1875_v34 = vsub.f32 0.0, %v6711_v4  ;;  %v8938_v60 = vld [vmem:[#allocation40_spill] sm:$0xff]  ;;  %4775 = vrcp.f32 %v2251_v6  ;;  %v6790_v6 = vmul.f32 %v6582_v61, %v8949_v11 }
 0x275   : > { %v6727_v49 = vpop.eup %4749  ;;  %8934 = vst [vmem:[#allocation136_spill] sm:$0xff] %v6743_v62  ;;  %v6745_v32 = vpop.f32.mrb[57].mxu0  ;;  %8937 = vst [vmem:[#allocation56_spill] sm:$0xff] %v6751_v12  ;;  %v6756_v25 = vadd.f32 %v8938_v60, %v6300_v45  ;;  %4777 = vrcp.f32 %v2252_v15  ;;  %v6779_v4 = vmul.f32 1.442695, %v1791_v48  ;;  %v1792_v12 = vsub.f32 0.0, %v6732_v40 }
 0x276   : > { %v6738_v59 = vpop.eup %4751  ;;  %8935 = vst [vmem:[#allocation137_spill] sm:$0xff] %v6745_v32  ;;  %v6758_v43 = vpop.f32.mrb[58].mxu1  ;;  %v8942_v32 = vld [vmem:[#allocation57_spill] sm:$0xff]  ;;  %8945 = vst [vmem:[#allocation58_spill] sm:$0xff] %v6770_v56  ;;  %4779 = vrcp.f32 %v2253_v57  ;;  %v8951_v24 = vld [vmem:[#allocation42_spill] sm:$0xff] }
 0x277   : > { %v6747_v5 = vpop.eup %4753  ;;  %8939 = vst [vmem:[#allocation40_spill] sm:$0xff] %v6756_v25  ;;  %8940 = vst [vmem:[#allocation138_spill] sm:$0xff] %v6758_v43  ;;  %v6760_v41 = vpop.f32.mrb[58].mxu0  ;;  %v6766_v22 = vmul.f32 %v6550_v17, %v8942_v32  ;;  %v8948_v17 = vld [vmem:[#allocation41_spill] sm:$0xff]  ;;  %v6794_v56 = vadd.f32 %v8951_v24, %v6300_v45  ;;  %v8952_v15 = vld [vmem:[#allocation26_spill] sm:$0xff]  ;;  %4781 = vpow2.f32 %v6654_v14  ;;  %v1793_v61 = vsub.f32 0.0, %v6756_v25 }
 0x278   : > { %8941 = vst [vmem:[#allocation139_spill] sm:$0xff] %v6760_v41  ;;  %v6762_v62 = vpop.eup %4755  ;;  %v6773_v26 = vpop.f32.mrb[59].mxu1  ;;  %v6784_v32 = vadd.f32 %v8948_v17, %v6298_v30  ;;  %8950 = vst [vmem:[#allocation41_spill] sm:$0xff] %v6790_v6  ;;  %1712 = vmatmul.mubr.bf16.gmra.mrb[164].mxu1 %v8952_v15  ;;  %v8953_v17 = vld [vmem:[#allocation73_spill] sm:$0xff]  ;;  %v8955_v11 = vld [vmem:[#allocation27_spill] sm:$0xff]  ;;  %4783 = vpow2.f32 %v6675_v9 }
 0x279   : > { %8943 = vst [vmem:[#allocation57_spill] sm:$0xff] %v6766_v22  ;;  %8946 = vst [vmem:[#allocation140_spill] sm:$0xff] %v6773_v26  ;;  %v6775_v60 = vpop.f32.mrb[59].mxu0  ;;  %v6777_v43 = vpop.eup %4757  ;;  %v2094_v26 = vmul.f32 1.442695, %v1874_v20  ;;  %1721 = vmatprep.mubr.bf16.mxu1 %v8955_v11  ;;  %v8956_v20 = vld [vmem:[#allocation64_spill] sm:$0xff]  ;;  %4785 = vpow2.f32 %v6690_v7 }
 0x27a   : > { %8947 = vst [vmem:[#allocation141_spill] sm:$0xff] %v6775_v60  ;;  %v6786_v21 = vpop.eup %4759  ;;  %v2096_v22 = vmul.f32 1.442695, %v1875_v34  ;;  %v6801_v60 = vadd.f32 %v8953_v17, %v6300_v45  ;;  %v6810_v24 = vmul.f32 %v6589_v37, %v8956_v20  ;;  %v8958_v15 = vld [vmem:[#allocation65_spill] sm:$0xff]  ;;  %v2098_v34 = vmul.f32 1.442695, %v1876_v3 }
 0x27b   : > { %v6797_v48 = vpop.eup %4761  ;;  %v6814_v6 = vmul.f32 %v6596_v23, %v8958_v15  ;;  %v8960_v41 = vld [vmem:[#allocation66_spill] sm:$0xff]  ;;  %v1930_v11 = vmul.f32 1.442695, %v1792_v12  ;;  %v1794_v25 = vsub.f32 0.0, %v6784_v32  ;;  %v6823_v40 = vpop.f32.mrb[60].mxu1  ;;  %4787 = vpow2.f32 %v2094_v26  ;;  %v8964_v23 = vld [vmem:[#allocation67_spill] sm:$0xff] }
 0x27c   : > { %8954 = vst [vmem:[#allocation62_spill] sm:$0xff] %v6801_v60  ;;  %v6806_v57 = vpop.eup %4763  ;;  %8957 = vst [vmem:[#allocation42_spill] sm:$0xff] %v6810_v24  ;;  %v6819_v14 = vmul.f32 %v6599_v8, %v8960_v41  ;;  %v6825_v37 = vpop.f32.mrb[60].mxu0  ;;  %v6829_v3 = vmul.f32 %v6619_v47, %v8964_v23  ;;  %v1795_v9 = vsub.f32 0.0, %v6794_v56  ;;  %v8965_v8 = vld [vmem:[#allocation43_spill] sm:$0xff]  ;;  %4789 = vpow2.f32 %v2096_v22 }
 0x27d   : > { %8959 = vst [vmem:[#allocation26_spill] sm:$0xff] %v6814_v6  ;;  %v4766_v17 = vpop.eup %4765  ;;  %8962 = vst [vmem:[#allocation27_spill] sm:$0xff] %v6823_v40  ;;  %v6834_v41 = vadd.f32 %v8965_v8, %v6298_v30  ;;  %v6836_v7 = vpop.f32.mrb[61].mxu1  ;;  %v6842_v40 = vmul.f32 %v6657_v52, %v6429_v0  ;;  %v1877_v26 = vsub.f32 0.0, %v6801_v60  ;;  %v1932_v47 = vmul.f32 1.442695, %v1793_v61 }
 0x27e   : > { %8961 = vst [vmem:[#allocation73_spill] sm:$0xff] %v6819_v14  ;;  %8963 = vst [vmem:[#allocation64_spill] sm:$0xff] %v6825_v37  ;;  %v4768_v20 = vpop.eup %4767  ;;  %v6838_v12 = vpop.f32.mrb[61].mxu0  ;;  %v6853_v8 = vmul.f32 %v6661_v63, %v6437_v33  ;;  %v6861_v0 = vmul.f32 %v6681_v46, %v6453_v53  ;;  %4791 = vpow2.f32 %v2098_v34  ;;  %v6875_v33 = vmul.f32 %v6727_v49, %v6475_v38 }
 0x27f   : > { %8966 = vst [vmem:[#allocation65_spill] sm:$0xff] %v6836_v7  ;;  %8967 = vst [vmem:[#allocation66_spill] sm:$0xff] %v6838_v12  ;;  %v4770_v15 = vpop.eup %4769  ;;  %v6845_v23 = vpop.f32.mrb[62].mxu1  ;;  %v6857_v7 = vmul.f32 %v6672_v13, %v6445_v16  ;;  %4793 = vrcp.f32 %v6684_v31  ;;  %v6878_v16 = vmul.f32 1.442695, %v1794_v25  ;;  %v6884_v46 = vmul.f32 %v6738_v59, %v6483_v36  ;;  %v8981_v13 = vld [vmem:[#allocation28_spill] sm:$0xff] }
 0x280   : > { %8968 = vst [vmem:[#allocation67_spill] sm:$0xff] %v6842_v40  ;;  %8969 = vst [vmem:[#allocation43_spill] sm:$0xff] %v6845_v23  ;;  %v6847_v14 = vpop.f32.mrb[62].mxu0  ;;  %v6849_v6 = vpop.eup %4771  ;;  %v6871_v23 = vmul.f32 %v6717_v42, %v6467_v18  ;;  %4795 = vrcp.f32 %v6697_v10  ;;  %v6887_v63 = vmul.f32 1.442695, %v1795_v9  ;;  %v1796_v18 = vsub.f32 0.0, %v6834_v41  ;;  %1722 = vmatmul.mubr.bf16.gmra.mrb[168].mxu1 %v8981_v13 }
 0x281   : > { %8970 = vst [vmem:[#allocation142_spill] sm:$0xff] %v6847_v14  ;;  %8971 = vst [vmem:[#allocation143_spill] sm:$0xff] %v6853_v8  ;;  %v6863_v52 = vpop.f32.mrb[63].mxu1  ;;  %v6865_v22 = vpop.f32.mrb[63].mxu0  ;;  %v2100_v42 = vmul.f32 1.442695, %v1877_v26  ;;  %v6895_v31 = vadd.f32 %v6431_v2, %v6298_v30  ;;  %4797 = vpow2.f32 %v6741_v19  ;;  %v6907_v25 = vmul.f32 %v6747_v5, %v6491_v55 }
 0x282   : > { %8972 = vst [vmem:[#allocation144_spill] sm:$0xff] %v6857_v7  ;;  %8973 = vst [vmem:[#allocation145_spill] sm:$0xff] %v6861_v0  ;;  %v6867_v61 = vpop.eup %4773  ;;  %v8984_v36 = vld [vmem:[#allocation44_spill] sm:$0xff]  ;;  %v8985_v10 = vld [vmem:[#allocation29_spill] sm:$0xff]  ;;  %v2254_v34 = vadd.f32 1.0, %v4766_v17  ;;  %v6911_v9 = vadd.f32 %v6439_v50, %v6300_v45  ;;  %4799 = vpow2.f32 %v6779_v4  ;;  %v2255_v19 = vadd.f32 1.0, %v4768_v20 }
 0x283   : > { %8974 = vst [vmem:[#allocation146_spill] sm:$0xff] %v6863_v52  ;;  %8975 = vst [vmem:[#allocation147_spill] sm:$0xff] %v6865_v22  ;;  %v6880_v53 = vpop.eup %4775  ;;  %v6900_v49 = vadd.f32 %v8984_v36, %v6300_v45  ;;  %1731 = vmatprep.mubr.bf16.mxu1 %v8985_v10  ;;  %v6916_v26 = vmul.f32 %v6762_v62, %v6388_v44  ;;  %4801 = vpow2.f32 %v1930_v11  ;;  %v8989_v13 = vld [vmem:[#allocation46_spill] sm:$0xff]  ;;  %v6922_v55 = vpop.f32.mrb[64].mxu1  ;;  %v2256_v17 = vadd.f32 1.0, %v4770_v15 }
 0x284   : > { %8976 = vst [vmem:[#allocation148_spill] sm:$0xff] %v6867_v61  ;;  %8977 = vst [vmem:[#allocation149_spill] sm:$0xff] %v6871_v23  ;;  %v6891_v38 = vpop.eup %4777  ;;  %v6920_v36 = vadd.f32 %v8989_v13, %v6298_v30  ;;  %v6926_v50 = vmul.f32 %v6777_v43, %v6501_v58  ;;  %4803 = vpow2.f32 %v1932_v47  ;;  %v6928_v4 = vmul.f32 1.442695, %v1796_v18  ;;  %v6930_v20 = vpop.f32.mrb[65].mxu1  ;;  %v8991_v62 = vld [vmem:[#allocation90_spill] sm:$0xff] }
 0x285   : > { %8978 = vst [vmem:[#allocation150_spill] sm:$0xff] %v6875_v33  ;;  %8979 = vst [vmem:[#allocation151_spill] sm:$0xff] %v6880_v53  ;;  %v6903_v59 = vpop.eup %4779  ;;  %v6934_v11 = vmul.f32 %v6786_v21, %v8991_v62  ;;  %4805 = vpow2.f32 %v2100_v42  ;;  %v1878_v10 = vsub.f32 0.0, %v6895_v31  ;;  %v1797_v13 = vsub.f32 0.0, %v6900_v49  ;;  %v6938_v52 = vpop.f32.mrb[66].mxu1  ;;  %v8994_v15 = vld [vmem:[#allocation78_spill] sm:$0xff] }
 0x286   : > { %8980 = vst [vmem:[#allocation152_spill] sm:$0xff] %v6884_v46  ;;  %8982 = vst [vmem:[#allocation28_spill] sm:$0xff] %v6891_v38  ;;  %v4782_v2 = vpop.eup %4781  ;;  %4807 = vrcp.f32 %v2254_v34  ;;  %v1879_v43 = vsub.f32 0.0, %v6911_v9  ;;  %v6945_v47 = vadd.f32 %v8994_v15, %v6298_v30  ;;  %v6947_v60 = vpop.f32.mrb[67].mxu1  ;;  %v1798_v62 = vsub.f32 0.0, %v6920_v36  ;;  %v9000_v15 = vld [vmem:[#allocation48_spill] sm:$0xff] }
 0x287   : > { %8983 = vst [vmem:[#allocation153_spill] sm:$0xff] %v6895_v31  ;;  %8986 = vst [vmem:[#allocation44_spill] sm:$0xff] %v6903_v59  ;;  %v4784_v5 = vpop.eup %4783  ;;  %v2171_v18 = vadd.f32 1.0, %v4782_v2  ;;  %4809 = vrcp.f32 %v2255_v19  ;;  %v8997_v31 = vld [vmem:[#allocation47_spill] sm:$0xff]  ;;  %v9001_v19 = vld [vmem:[#allocation30_spill] sm:$0xff] }
 0x288   : > { %8987 = vst [vmem:[#allocation29_spill] sm:$0xff] %v6907_v25  ;;  %8988 = vst [vmem:[#allocation154_spill] sm:$0xff] %v6911_v9  ;;  %v4786_v44 = vpop.eup %4785  ;;  %v2172_v42 = vadd.f32 1.0, %v4784_v5  ;;  %v6960_v9 = vmul.f32 %v6797_v48, %v6517_v54  ;;  %4811 = vrcp.f32 %v2256_v17  ;;  %1732 = vmatmul.mubr.bf16.gmra.mrb[172].mxu1 %v9001_v19  ;;  %v6969_v25 = vmul.f32 %v6806_v57, %v6523_v29  ;;  %v9005_v54 = vld [vmem:[#allocation49_spill] sm:$0xff]  ;;  %v9006_v17 = vld [vmem:[#allocation31_spill] sm:$0xff] }
 0x289   : > { %8990 = vst [vmem:[#allocation46_spill] sm:$0xff] %v6926_v50  ;;  %8992 = vst [vmem:[#allocation90_spill] sm:$0xff] %v6934_v11  ;;  %v6940_v58 = vpop.eup %4787  ;;  %v6954_v11 = vadd.f32 %v8997_v31, %v6300_v45  ;;  %v2173_v2 = vadd.f32 1.0, %v4786_v44  ;;  %v6964_v50 = vadd.f32 %v9000_v15, %v6298_v30  ;;  %v9003_v31 = vld [vmem:[#allocation80_spill] sm:$0xff]  ;;  %4813 = vrcp.f32 %v6714_v1  ;;  %1741 = vmatprep.mubr.bf16.mxu1 %v9006_v17  ;;  %v9009_v33 = vld [vmem:[#allocation69_spill] sm:$0xff] }
 0x28a   : > { %8993 = vst [vmem:[#allocation155_spill] sm:$0xff] %v6940_v58  ;;  %8995 = vst [vmem:[#allocation78_spill] sm:$0xff] %v6945_v47  ;;  %v6949_v21 = vpop.eup %4789  ;;  %v6973_v46 = vadd.f32 %v9003_v31, %v6300_v45  ;;  %v6978_v48 = vadd.f32 %v9005_v54, %v6300_v45  ;;  %v6981_v15 = vmul.f32 1.442695, %v1878_v10  ;;  %v6983_v19 = vmul.f32 1.442695, %v1879_v43 }
 0x28b   : > { %8996 = vst [vmem:[#allocation156_spill] sm:$0xff] %v6949_v21  ;;  %v6956_v34 = vpop.eup %4791  ;;  %8999 = vst [vmem:[#allocation157_spill] sm:$0xff] %v6960_v9  ;;  %v1880_v29 = vsub.f32 0.0, %v6945_v47  ;;  %4815 = vrcp.f32 %v2171_v18  ;;  %v1940_v31 = vmul.f32 1.442695, %v1797_v13  ;;  %v1799_v1 = vsub.f32 0.0, %v6954_v11 }
 0x28c   : > { %8998 = vst [vmem:[#allocation47_spill] sm:$0xff] %v6956_v34  ;;  %v4794_v5 = vpop.eup %4793  ;;  %9002 = vst [vmem:[#allocation48_spill] sm:$0xff] %v6969_v25  ;;  %4817 = vrcp.f32 %v2172_v42  ;;  %v6986_v25 = vmul.f32 1.442695, %v1798_v62  ;;  %v6989_v9 = vpop.f32.mrb[68].mxu1  ;;  %v1800_v10 = vsub.f32 0.0, %v6964_v50 }
 0x28d   : > { %9004 = vst [vmem:[#allocation30_spill] sm:$0xff] %v6973_v46  ;;  %v4796_v44 = vpop.eup %4795  ;;  %9007 = vst [vmem:[#allocation80_spill] sm:$0xff] %v6981_v15  ;;  %v2552_v17 = vmul.f32 %v4794_v5, %v9009_v33  ;;  %4819 = vrcp.f32 %v2173_v2  ;;  %v9010_v43 = vld [vmem:[#allocation45_spill] sm:$0xff]  ;;  %v6994_v47 = vpop.f32.mrb[69].mxu1  ;;  %v1801_v13 = vsub.f32 0.0, %v6978_v48  ;;  %v9011_v42 = vld [vmem:[#allocation51_spill] sm:$0xff] }
 0x28e   : > { %9008 = vst [vmem:[#allocation49_spill] sm:$0xff] %v6983_v19  ;;  %v4798_v57 = vpop.eup %4797  ;;  %v746_v23 = vsub.s32 2, %v9010_v43  ;;  %4821 = vpow2.f32 %v6878_v16  ;;  %v7000_v62 = vadd.f32 %v9011_v42, %v6298_v30  ;;  %v750_v34 = vsub.s32 3, %v9010_v43  ;;  %v7003_v21 = vpop.f32.mrb[70].mxu1  ;;  %v9012_v5 = vld [vmem:[#allocation52_spill] sm:$0xff]  ;;  %v9014_v42 = vld [vmem:[#allocation71_spill] sm:$0xff] }
 0x28f   : > { %v4800_v54 = vpop.eup %4799  ;;  %v2174_v2 = vadd.f32 1.0, %v4798_v57  ;;  %4823 = vpow2.f32 %v6887_v63  ;;  %v7008_v58 = vadd.f32 %v9012_v5, %v6300_v45  ;;  %v5175_v0 = vld [vmem:[%s5756_s4] sm:$0xf]  ;;  %v7013_v7 = vpop.f32.mrb[71].mxu1  ;;  %v2553_v8 = vmul.f32 %v4796_v44, %v9014_v42  ;;  %v9016_v59 = vld [vmem:[#allocation32_spill] sm:$0xff] }
 0x290   : > { %v4802_v18 = vpop.eup %4801  ;;  %v7011_v16 = vrot.slane %v5175_v0, %v746_v23  ;;  %v2175_v43 = vadd.f32 1.0, %v4800_v54  ;;  %4825 = vpow2.f32 %v6928_v4  ;;  %v7019_v40 = vrot.slane %v5175_v0, %v750_v34  ;;  %1742 = vmatmul.mubr.bf16.gmra.mrb[176].mxu1 %v9016_v59  ;;  %v9018_v34 = vld [vmem:[#allocation33_spill] sm:$0xff] }
 0x291   : > { %v4804_v33 = vpop.eup %4803  ;;  %v2176_v63 = vadd.f32 1.0, %v4802_v18  ;;  %4827 = vpow2.f32 %v1940_v31  ;;  %v1802_v54 = vsub.f32 0.0, %v7000_v62  ;;  %1751 = vmatprep.mubr.bf16.mxu1 %v9018_v34 }
 0x292   : > { %v7015_v19 = vpop.eup %4805  ;;  %v1464_v5 = vadd.f32 %v6922_v55, %v7011_v16  ;;  %v1468_v23 = vadd.f32 %v6938_v52, %v7011_v16  ;;  %v2177_v44 = vadd.f32 1.0, %v4804_v33  ;;  %v1466_v0 = vadd.f32 %v6930_v20, %v7019_v40  ;;  %v9020_v33 = vld [vmem:[#allocation53_spill] sm:$0xff]  ;;  %v7053_v34 = vpop.f32.mrb[72].mxu1 }
 0x293   : > { %9013 = vst [vmem:[#allocation31_spill] sm:$0xff] %v7015_v19  ;;  %v7021_v57 = vpop.eup %4807  ;;  %v1470_v4 = vadd.f32 %v6947_v60, %v7019_v40  ;;  %4829 = vrcp.f32 %v2174_v2  ;;  %v1803_v52 = vsub.f32 0.0, %v7008_v58  ;;  %v7046_v20 = vadd.f32 %v9020_v33, %v6298_v30 }
 0x294   : > { %9015 = vst [vmem:[#allocation69_spill] sm:$0xff] %v7021_v57  ;;  %v7028_v19 = vpop.eup %4809  ;;  %v7040_v59 = vmul.f32 %v6829_v3, %v1464_v5  ;;  %v7042_v55 = vmul.f32 %v2552_v17, %v1468_v23  ;;  %4831 = vrcp.f32 %v2175_v43  ;;  %v7049_v60 = vmul.f32 %v6916_v26, %v1466_v0  ;;  %v9021_v3 = vld [vmem:[#allocation55_spill] sm:$0xff]  ;;  %v7061_v5 = vpop.f32.mrb[73].mxu1 }
 0x295   : > { %9017 = vst [vmem:[#allocation45_spill] sm:$0xff] %v7028_v19  ;;  %v7036_v31 = vpop.eup %4811  ;;  %v7051_v42 = vmul.f32 %v2553_v8, %v1470_v4  ;;  %4833 = vrcp.f32 %v2176_v63  ;;  %v7057_v17 = vadd.f32 %v9021_v3, %v6300_v45  ;;  %v7063_v33 = vmul.f32 1.442695, %v1880_v29  ;;  %v7066_v0 = vpop.f32.mrb[74].mxu1  ;;  %v9024_v57 = vld [vmem:[#allocation59_spill] sm:$0xff] }
 0x296   : > { %9019 = vst [vmem:[#allocation51_spill] sm:$0xff] %v7036_v31  ;;  %v4814_v18 = vpop.eup %4813  ;;  %v1944_v31 = vmul.f32 1.442695, %v1799_v1  ;;  %4835 = vrcp.f32 %v2177_v44  ;;  %v1946_v26 = vmul.f32 1.442695, %v1800_v10  ;;  %v9023_v1 = vld [vmem:[#allocation74_spill] sm:$0xff]  ;;  %v7073_v43 = vadd.f32 %v9024_v57, %v6298_v30 }
 0x297   : > { %v4816_v2 = vpop.eup %4815  ;;  %9022 = vst [vmem:[#allocation52_spill] sm:$0xff] %v7063_v33  ;;  %v2554_v4 = vmul.f32 %v4814_v18, %v9023_v1  ;;  %v1948_v19 = vmul.f32 1.442695, %v1801_v13  ;;  %v7069_v3 = vmul.f32 1.442695, %v1802_v54  ;;  %v7075_v15 = vpop.f32.mrb[75].mxu1  ;;  %4837 = vpow2.f32 %v6986_v25 }
 0x298   : > { %v4818_v23 = vpop.eup %4817  ;;  %v7078_v8 = vmul.f32 1.442695, %v1803_v52  ;;  %v1804_v10 = vsub.f32 0.0, %v7046_v20  ;;  %v9025_v44 = vld [vmem:[#allocation60_spill] sm:$0xff]  ;;  %4839 = vpow2.f32 %v1944_v31  ;;  %v1805_v54 = vsub.f32 0.0, %v7057_v17  ;;  %v9026_v57 = vld [vmem:[#allocation61_spill] sm:$0xff] }
 0x299   : > { %v4820_v63 = vpop.eup %4819  ;;  %v7083_v33 = vadd.f32 %v9025_v44, %v6300_v45  ;;  %v7088_v18 = vadd.f32 %v9026_v57, %v6298_v30  ;;  %v1474_v1 = vadd.f32 %v6989_v9, %v7011_v16  ;;  %v9027_v25 = vld [vmem:[#allocation34_spill] sm:$0xff]  ;;  %v2555_v38 = vmul.f32 %v4816_v2, %v6604_v27  ;;  %v9028_v31 = vld [vmem:[#allocation35_spill] sm:$0xff] }
 0x29a   : > { %v4822_v29 = vpop.eup %4821  ;;  %1752 = vmatmul.mubr.bf16.gmra.mrb[180].mxu1 %v9027_v25  ;;  %v2556_v53 = vmul.f32 %v4818_v23, %v6613_v28  ;;  %v2557_v44 = vmul.f32 %v4820_v63, %v6636_v39  ;;  %4841 = vpow2.f32 %v1946_v26  ;;  %v1806_v57 = vsub.f32 0.0, %v7073_v43  ;;  %v7105_v39 = vpop.f32.mrb[76].mxu1 }
 0x29b   : > { %v4824_v13 = vpop.eup %4823  ;;  %1761 = vmatprep.mubr.bf16.mxu1 %v9028_v31  ;;  %v2178_v61 = vadd.f32 1.0, %v4822_v29  ;;  %4843 = vpow2.f32 %v1948_v19  ;;  %v7098_v46 = vmul.f32 %v2554_v4, %v1474_v1  ;;  %v1807_v25 = vsub.f32 0.0, %v7083_v33  ;;  %v7112_v4 = vpop.f32.mrb[77].mxu1 }
 0x29c   : > { %v4826_v52 = vpop.eup %4825  ;;  %v2179_v9 = vadd.f32 1.0, %v4824_v13  ;;  %v1476_v27 = vadd.f32 %v6994_v47, %v7019_v40  ;;  %v1478_v28 = vadd.f32 %v7003_v21, %v7011_v16  ;;  %v1808_v26 = vsub.f32 0.0, %v7088_v18  ;;  %v9029_v47 = vld [vmem:[#allocation63_spill] sm:$0xff] }
 0x29d   : > { %v4828_v24 = vpop.eup %4827  ;;  %v2180_v23 = vadd.f32 1.0, %v4826_v52  ;;  %v2935_v19 = vpack.c.bf16 %v7051_v42, %v7049_v60  ;;  %v1480_v63 = vadd.f32 %v7013_v7, %v7019_v40  ;;  %v7116_v1 = vadd.f32 %v9029_v47, %v6300_v45  ;;  %v7120_v52 = vpop.f32.mrb[78].mxu1  ;;  %v9031_v60 = vld [vmem:[#allocation68_spill] sm:$0xff]  ;;  %v9033_v7 = vld [vmem:[#allocation70_spill] sm:$0xff] }
 0x29e   : > { %v4830_v2 = vpop.eup %4829  ;;  %v2181_v13 = vadd.f32 1.0, %v4828_v24  ;;  %v2683_v21 = vmul.f32 %v2555_v38, %v1476_v27  ;;  %v7118_v31 = vmul.f32 %v2556_v53, %v1478_v28  ;;  %4845 = vrcp.f32 %v2178_v61  ;;  %v7130_v12 = vpop.f32.mrb[79].mxu1  ;;  %v9035_v27 = vld [vmem:[#allocation72_spill] sm:$0xff] }
 0x29f   : > { %v4832_v29 = vpop.eup %4831  ;;  %9030 = vst [vmem:[#allocation71_spill] sm:$0xff] %v7116_v1  ;;  %v7124_v42 = vadd.f32 %v9031_v60, %v6298_v30  ;;  %v7128_v14 = vadd.f32 %v9033_v7, %v6300_v45  ;;  %3222 = vmatprep.mubr.bf16.mxu0 %v2935_v19  ;;  %v2685_v24 = vmul.f32 %v2557_v44, %v1480_v63  ;;  %4847 = vrcp.f32 %v2179_v9  ;;  %v9038_v19 = vld [vmem:[#allocation36_spill] sm:$0xff] }
 0x2a0   : > { %v4834_v22 = vpop.eup %4833  ;;  %v1954_v53 = vmul.f32 1.442695, %v1804_v10  ;;  %v1956_v38 = vmul.f32 1.442695, %v1805_v54  ;;  %v7134_v28 = vadd.f32 %v9035_v27, %v6298_v30  ;;  %v9037_v61 = vpack.c.bf16 %v7042_v55, %v7040_v59  ;;  %v9039_v27 = vld [vmem:[#allocation37_spill] sm:$0xff]  ;;  %v9040_v55 = vld [vmem:[#allocation39_spill] sm:$0xff] }
 0x2a1   : > { %9032 = vst [vmem:[#allocation32_spill] sm:$0xff] %v7124_v42  ;;  %9034 = vst [vmem:[#allocation33_spill] sm:$0xff] %v7128_v14  ;;  %v4836_v47 = vpop.eup %4835  ;;  %4849 = vrcp.f32 %v2180_v23  ;;  %v7139_v60 = vmul.f32 1.442695, %v1806_v57  ;;  %v7141_v7 = vmul.f32 1.442695, %v1807_v25  ;;  %v2558_v10 = vmul.f32 %v4830_v2, %v6666_v35 }
 0x2a2   : > { %9036 = vst [vmem:[#allocation53_spill] sm:$0xff] %v7134_v28  ;;  %3223 = vmatmul.mubr.bf16.vlgmr.msra.gmra.mrb[64].mxu0 %v9037_v61  ;;  %v7143_v44 = vmul.f32 1.442695, %v1808_v26  ;;  %1762 = vmatmul.mubr.bf16.gmra.mrb[184].mxu1 %v9038_v19  ;;  %v4838_v9 = vpop.eup %4837  ;;  %v2559_v54 = vmul.f32 %v4832_v29, %v6701_v51  ;;  %4851 = vrcp.f32 %v2181_v13  ;;  %v1809_v63 = vsub.f32 0.0, %v7116_v1  ;;  %v9041_v23 = vld [vmem:[#allocation40_spill] sm:$0xff]  ;;  %v9042_v51 = vld [vmem:[#allocation75_spill] sm:$0xff] }
 0x2a3   : > { %1771 = vmatprep.mubr.bf16.mxu1 %v9039_v27  ;;  %v4840_v59 = vpop.eup %4839  ;;  %v2560_v57 = vmul.f32 %v4834_v22, %v9040_v55  ;;  %v2561_v25 = vmul.f32 %v4836_v47, %v9041_v23  ;;  %v1810_v26 = vsub.f32 0.0, %v7124_v42  ;;  %v1811_v61 = vsub.f32 0.0, %v7128_v14  ;;  %v9043_v29 = vld [vmem:[#allocation76_spill] sm:$0xff]  ;;  %v7164_v22 = vpop.f32.mrb[80].mxu1  ;;  %v9045_v55 = vld [vmem:[#allocation77_spill] sm:$0xff] }
 0x2a4   : > { %v4842_v19 = vpop.eup %4841  ;;  %4853 = vpow2.f32 %v7069_v3  ;;  %v1812_v35 = vsub.f32 0.0, %v7134_v28  ;;  %v7158_v2 = vadd.f32 %v9042_v51, %v6300_v45  ;;  %v7162_v13 = vadd.f32 %v9043_v29, %v6298_v30  ;;  %v7173_v37 = vpop.f32.mrb[81].mxu1 }
 0x2a5   : > { %v4844_v47 = vpop.eup %4843  ;;  %v2182_v27 = vadd.f32 1.0, %v4838_v9  ;;  %4855 = vpow2.f32 %v7078_v8  ;;  %v7169_v23 = vadd.f32 %v9045_v55, %v6300_v45  ;;  %v1484_v3 = vadd.f32 %v7053_v34, %v7011_v16  ;;  %v7179_v9 = vpop.f32.mrb[82].mxu1 }
 0x2a6   : > { %9044 = vst [vmem:[#allocation55_spill] sm:$0xff] %v7162_v13  ;;  %v2183_v51 = vadd.f32 1.0, %v4840_v59  ;;  %4857 = vpow2.f32 %v1954_v53  ;;  %v1486_v29 = vadd.f32 %v7061_v5, %v7019_v40  ;;  %v1488_v28 = vadd.f32 %v7066_v0, %v7011_v16  ;;  %v7183_v42 = vpop.f32.mrb[83].mxu1 }
 0x2a7   : > { %9046 = vst [vmem:[#allocation74_spill] sm:$0xff] %v7169_v23  ;;  %v2184_v8 = vadd.f32 1.0, %v4842_v19  ;;  %4859 = vpow2.f32 %v1956_v38  ;;  %v7181_v14 = vmul.f32 %v2558_v10, %v1484_v3  ;;  %v2937_v55 = vpack.c.bf16 %v2685_v24, %v2683_v21  ;;  %v9047_v24 = vld [vmem:[#allocation38_spill] sm:$0xff]  ;;  %v9050_v19 = vld [vmem:[#allocation81_spill] sm:$0xff] }
 0x2a8   : > { %v2185_v34 = vadd.f32 1.0, %v4844_v47  ;;  %v1813_v1 = vsub.f32 0.0, %v7158_v2  ;;  %v7186_v59 = vmul.f32 %v2559_v54, %v1486_v29  ;;  %v7188_v53 = vmul.f32 %v2560_v57, %v1488_v28  ;;  %v4846_v5 = vpop.eup %4845  ;;  %v9048_v28 = vld [vmem:[#allocation79_spill] sm:$0xff] }
 0x2a9   : > { %4861 = vrcp.f32 %v2182_v27  ;;  %v1814_v0 = vsub.f32 0.0, %v7162_v13  ;;  %3232 = vmatprep.mubr.bf16.mxu0 %v2937_v55  ;;  %v1490_v38 = vadd.f32 %v7075_v15, %v7019_v40  ;;  %v2936_v21 = vpack.c.bf16 %v7118_v31, %v7098_v46  ;;  %v4848_v10 = vpop.eup %4847 }
 0x2aa   : > { %1772 = vmatmul.mubr.bf16.gmra.mrb[188].mxu1 %v9047_v24  ;;  %4863 = vrcp.f32 %v2183_v51  ;;  %v1815_v54 = vsub.f32 0.0, %v7169_v23  ;;  %v7199_v57 = vadd.f32 %v9048_v28, %v6298_v30  ;;  %v7203_v47 = vadd.f32 %v9050_v19, %v6300_v45  ;;  %v7214_v24 = vpop.f32.mrb[84].mxu1  ;;  %v9058_v23 = vld [vmem:[#allocation89_spill] sm:$0xff] }
 0x2ab   : > { %v4850_v27 = vpop.eup %4849  ;;  %4865 = vrcp.f32 %v2184_v8  ;;  %v1964_v15 = vmul.f32 1.442695, %v1809_v63  ;;  %v7205_v3 = vmul.f32 1.442695, %v1810_v26  ;;  %v2689_v46 = vmul.f32 %v2561_v25, %v1490_v38  ;;  %3233 = vmatmul.mubr.bf16.gmra.mrb[68].mxu0 %v2936_v21  ;;  %v9053_v25 = vld [vmem:[#allocation83_spill] sm:$0xff]  ;;  %v7225_v8 = vpop.f32.mrb[85].mxu1 }
 0x2ac   : > { %9049 = vst [vmem:[#allocation59_spill] sm:$0xff] %v7199_v57  ;;  %9051 = vst [vmem:[#allocation60_spill] sm:$0xff] %v7203_v47  ;;  %v4852_v31 = vpop.eup %4851  ;;  %v7208_v51 = vadd.f32 1.0, %v6849_v6  ;;  %4867 = vrcp.f32 %v2185_v34  ;;  %v7210_v29 = vmul.f32 1.442695, %v1811_v61  ;;  %v2562_v28 = vmul.f32 %v4846_v5, %v6784_v32  ;;  %v7232_v32 = vpop.f32.mrb[86].mxu1 }
 0x2ad   : > { %v7212_v55 = vmul.f32 1.442695, %v1812_v35  ;;  %v7217_v19 = vmul.f32 1.442695, %v1813_v1  ;;  %v7219_v63 = vmul.f32 1.442695, %v1814_v0  ;;  %v7223_v26 = vadd.f32 %v9053_v25, %v6298_v30 }
 0x2ae   : > { %9052 = vst [vmem:[#allocation61_spill] sm:$0xff] %v7208_v51  ;;  %v4854_v6 = vpop.eup %4853  ;;  %v2563_v61 = vmul.f32 %v4848_v10, %v6794_v56  ;;  %v7228_v34 = vmul.f32 1.442695, %v1815_v54  ;;  %v1816_v35 = vsub.f32 0.0, %v7199_v57  ;;  %v1817_v38 = vsub.f32 0.0, %v7203_v47  ;;  %v9055_v21 = vld [vmem:[#allocation85_spill] sm:$0xff] }
 0x2af   : > { %9054 = vst [vmem:[#allocation34_spill] sm:$0xff] %v7223_v26  ;;  %v4856_v1 = vpop.eup %4855  ;;  %v2564_v5 = vmul.f32 %v4850_v27, %v6834_v41  ;;  %v2565_v0 = vmul.f32 %v4852_v31, %v6900_v49  ;;  %4869 = vpow2.f32 %v7139_v60  ;;  %v7239_v25 = vadd.f32 %v9055_v21, %v6300_v45  ;;  %v7241_v56 = vpop.f32.mrb[87].mxu1  ;;  %v9056_v54 = vld [vmem:[#allocation87_spill] sm:$0xff] }
 0x2b0   : > { %v4858_v10 = vpop.eup %4857  ;;  %4871 = vpow2.f32 %v7141_v7  ;;  %v7246_v51 = vadd.f32 %v9056_v54, %v6298_v30  ;;  %v1494_v41 = vadd.f32 %v7105_v39, %v7011_v16  ;;  %v1496_v49 = vadd.f32 %v7112_v4, %v7019_v40 }
 0x2b1   : > { %v4860_v60 = vpop.eup %4859  ;;  %v2186_v27 = vadd.f32 1.0, %v4854_v6  ;;  %4873 = vpow2.f32 %v7143_v44  ;;  %v1818_v31 = vsub.f32 0.0, %v7223_v26  ;;  %v1498_v21 = vadd.f32 %v7120_v52, %v7011_v16 }
 0x2b2   : > { %9057 = vst [vmem:[#allocation35_spill] sm:$0xff] %v7246_v51  ;;  %v2187_v7 = vadd.f32 1.0, %v4856_v1  ;;  %4875 = vpow2.f32 %v1964_v15  ;;  %v7256_v47 = vmul.f32 %v2562_v28, %v1494_v41  ;;  %v7258_v54 = vmul.f32 %v2563_v61, %v1496_v49  ;;  %v7272_v61 = vpop.f32.mrb[88].mxu1 }
 0x2b3   : > { %v4862_v57 = vpop.eup %4861  ;;  %v2188_v39 = vadd.f32 1.0, %v4858_v10  ;;  %v7262_v4 = vadd.f32 %v9058_v23, %v6300_v45  ;;  %v7264_v6 = vmul.f32 %v2564_v5, %v1498_v21  ;;  %v2939_v44 = vpack.c.bf16 %v2689_v46, %v7186_v59  ;;  %v9060_v5 = vld [vmem:[#allocation92_spill] sm:$0xff]  ;;  %v9062_v59 = vld [vmem:[#allocation94_spill] sm:$0xff]  ;;  %v7284_v41 = vpop.f32.mrb[89].mxu1 }
 0x2b4   : > { %v4864_v26 = vpop.eup %4863  ;;  %v2189_v13 = vadd.f32 1.0, %v4860_v60  ;;  %v1819_v52 = vsub.f32 0.0, %v7239_v25  ;;  %v1500_v15 = vadd.f32 %v7130_v12, %v7019_v40  ;;  %v2938_v28 = vpack.c.bf16 %v7188_v53, %v7181_v14  ;;  %v9064_v53 = vld [vmem:[#allocation96_spill] sm:$0xff]  ;;  %v7292_v60 = vpop.f32.mrb[90].mxu1 }
 0x2b5   : > { %9059 = vst [vmem:[#allocation63_spill] sm:$0xff] %v7262_v4  ;;  %v4866_v1 = vpop.eup %4865  ;;  %4877 = vrcp.f32 %v2186_v27  ;;  %v7274_v23 = vmul.f32 1.442695, %v1816_v35  ;;  %v7278_v10 = vadd.f32 %v9060_v5, %v6298_v30  ;;  %v7282_v46 = vadd.f32 %v9062_v59, %v6300_v45  ;;  %3242 = vmatprep.mubr.bf16.mxu0 %v2939_v44  ;;  %v7298_v5 = vpop.f32.mrb[91].mxu1 }
 0x2b6   : > { %v4868_v12 = vpop.eup %4867  ;;  %4879 = vrcp.f32 %v2187_v7  ;;  %v7286_v14 = vmul.f32 1.442695, %v1817_v38  ;;  %v7290_v49 = vadd.f32 %v9064_v53, %v6298_v30  ;;  %v2693_v35 = vmul.f32 %v2565_v0, %v1500_v15  ;;  %3243 = vmatmul.mubr.bf16.gmra.mrb[72].mxu0 %v2938_v28 }
 0x2b7   : > { %9061 = vst [vmem:[#allocation68_spill] sm:$0xff] %v7278_v10  ;;  %9063 = vst [vmem:[#allocation70_spill] sm:$0xff] %v7282_v46  ;;  %4881 = vrcp.f32 %v2188_v39  ;;  %v7294_v27 = vmul.f32 1.442695, %v1818_v31  ;;  %v1820_v21 = vsub.f32 0.0, %v7246_v51  ;;  %v1821_v44 = vsub.f32 0.0, %v7262_v4 }
 0x2b8   : > { %9065 = vst [vmem:[#allocation72_spill] sm:$0xff] %v7290_v49  ;;  %v2566_v38 = vmul.f32 %v4862_v57, %v6920_v36  ;;  %v2567_v7 = vmul.f32 %v4864_v26, %v6954_v11  ;;  %4883 = vrcp.f32 %v2189_v13  ;;  %v7302_v59 = vmul.f32 1.442695, %v1819_v52  ;;  %v9066_v36 = vld [vmem:[#allocation98_spill] sm:$0xff]  ;;  %v9068_v11 = vld [vmem:[#allocation104_spill] sm:$0xff] }
 0x2b9   : > { %v4870_v0 = vpop.eup %4869  ;;  %v2568_v15 = vmul.f32 %v4866_v1, %v6964_v50  ;;  %v2569_v39 = vmul.f32 %v4868_v12, %v6978_v48  ;;  %v1822_v31 = vsub.f32 0.0, %v7278_v10  ;;  %v1823_v28 = vsub.f32 0.0, %v7282_v46 }
 0x2ba   : > { %v4872_v53 = vpop.eup %4871  ;;  %v2190_v4 = vadd.f32 1.0, %v4870_v0  ;;  %v1824_v51 = vsub.f32 0.0, %v7290_v49  ;;  %v7311_v57 = vadd.f32 %v9066_v36, %v6300_v45  ;;  %v7315_v13 = vadd.f32 %v9068_v11, %v6298_v30  ;;  %v9070_v0 = vld [vmem:[#allocation106_spill] sm:$0xff]  ;;  %v7328_v49 = vpop.f32.mrb[92].mxu1 }
 0x2bb   : > { %v4874_v26 = vpop.eup %4873  ;;  %v2191_v50 = vadd.f32 1.0, %v4872_v53  ;;  %4885 = vpow2.f32 %v7205_v3  ;;  %v1504_v48 = vadd.f32 %v7164_v22, %v7011_v16  ;;  %v1506_v52 = vadd.f32 %v7173_v37, %v7019_v40  ;;  %v7334_v46 = vpop.f32.mrb[93].mxu1 }
 0x2bc   : > { %9067 = vst [vmem:[#allocation36_spill] sm:$0xff] %v7311_v57  ;;  %9069 = vst [vmem:[#allocation37_spill] sm:$0xff] %v7315_v13  ;;  %v4876_v1 = vpop.eup %4875  ;;  %4887 = vrcp.f32 %v2190_v4  ;;  %v2192_v12 = vadd.f32 1.0, %v4874_v26  ;;  %v7324_v36 = vadd.f32 %v9070_v0, %v6300_v45  ;;  %v1508_v11 = vadd.f32 %v7179_v9, %v7011_v16  ;;  %v7340_v0 = vpop.f32.mrb[94].mxu1 }
 0x2bd   : > { %4889 = vrcp.f32 %v2191_v50  ;;  %v2193_v3 = vadd.f32 1.0, %v4876_v1  ;;  %v7330_v53 = vmul.f32 %v2566_v38, %v1504_v48  ;;  %v7332_v22 = vmul.f32 %v2567_v7, %v1506_v52  ;;  %v9072_v50 = vld [vmem:[#allocation108_spill] sm:$0xff]  ;;  %v7350_v48 = vpop.f32.mrb[95].mxu1 }
 0x2be   : > { %9071 = vst [vmem:[#allocation39_spill] sm:$0xff] %v7324_v36  ;;  %4891 = vrcp.f32 %v2192_v12  ;;  %v1825_v37 = vsub.f32 0.0, %v7311_v57  ;;  %v7337_v4 = vmul.f32 %v2568_v15, %v1508_v11  ;;  %v2941_v26 = vpack.c.bf16 %v2693_v35, %v7258_v54 }
 0x2bf   : > { %v4878_v9 = vpop.eup %4877  ;;  %4893 = vrcp.f32 %v2193_v3  ;;  %v7344_v1 = vadd.f32 %v9072_v50, %v6298_v30  ;;  %v1510_v38 = vadd.f32 %v7183_v42, %v7019_v40  ;;  %v2940_v7 = vpack.c.bf16 %v7264_v6, %v7256_v47  ;;  %v9078_v50 = vld [vmem:[#allocation114_spill] sm:$0xff] }
 0x2c0   : > { %v4880_v15 = vpop.eup %4879  ;;  %4895 = vpow2.f32 %v7210_v29  ;;  %v7353_v54 = vmul.f32 1.442695, %v1820_v21  ;;  %v7355_v35 = vmul.f32 1.442695, %v1821_v44  ;;  %v7357_v52 = vmul.f32 1.442695, %v1822_v31  ;;  %3252 = vmatprep.mubr.bf16.mxu0 %v2941_v26 }
 0x2c1   : > { %9073 = vst [vmem:[#allocation40_spill] sm:$0xff] %v7344_v1  ;;  %v4882_v12 = vpop.eup %4881  ;;  %4897 = vpow2.f32 %v7212_v55  ;;  %v1826_v42 = vsub.f32 0.0, %v7315_v13  ;;  %v1827_v11 = vsub.f32 0.0, %v7324_v36  ;;  %v2697_v47 = vmul.f32 %v2569_v39, %v1510_v38  ;;  %3253 = vmatmul.mubr.bf16.gmra.mrb[76].mxu0 %v2940_v7  ;;  %v9074_v44 = vld [vmem:[#allocation110_spill] sm:$0xff]  ;;  %v9076_v39 = vld [vmem:[#allocation112_spill] sm:$0xff] }
 0x2c2   : > { %v4884_v6 = vpop.eup %4883  ;;  %4899 = vpow2.f32 %v7217_v19  ;;  %v7363_v29 = vmul.f32 1.442695, %v1823_v28  ;;  %v7365_v21 = vmul.f32 1.442695, %v1824_v51  ;;  %v7369_v31 = vadd.f32 %v9074_v44, %v6300_v45  ;;  %v7386_v7 = vpop.f32.mrb[96].mxu1 }
 0x2c3   : > { %4901 = vpow2.f32 %v7219_v63  ;;  %v7372_v55 = vmul.f32 1.442695, %v1825_v37  ;;  %v1828_v3 = vsub.f32 0.0, %v7344_v1  ;;  %v7377_v26 = vadd.f32 %v9076_v39, %v6298_v30  ;;  %v9079_v39 = vld [vmem:[#allocation117_spill] sm:$0xff] }
 0x2c4   : > { %9075 = vst [vmem:[#allocation75_spill] sm:$0xff] %v7369_v31  ;;  %v2570_v19 = vmul.f32 %v4878_v9, %v7000_v62  ;;  %v2571_v28 = vmul.f32 %v4880_v15, %v7008_v58  ;;  %v2572_v51 = vmul.f32 %v4882_v12, %v7046_v20  ;;  %v7384_v38 = vadd.f32 %v9078_v50, %v6300_v45  ;;  %v7397_v58 = vpop.f32.mrb[97].mxu1 }
 0x2c5   : > { %9077 = vst [vmem:[#allocation76_spill] sm:$0xff] %v7377_v26  ;;  %v4886_v63 = vpop.eup %4885  ;;  %v2573_v37 = vmul.f32 %v4884_v6, %v7057_v17  ;;  %v7389_v44 = vmul.f32 1.442695, %v1826_v42  ;;  %v7391_v1 = vmul.f32 1.442695, %v1827_v11  ;;  %v7395_v62 = vadd.f32 %v9079_v39, %v6298_v30  ;;  %v7404_v42 = vpop.f32.mrb[98].mxu1 }
 0x2c6   : > { %v4888_v20 = vpop.eup %4887  ;;  %v2194_v9 = vadd.f32 1.0, %v4886_v63  ;;  %v1829_v15 = vsub.f32 0.0, %v7369_v31  ;;  %v1514_v12 = vadd.f32 %v7214_v24, %v7011_v16  ;;  %v1516_v17 = vadd.f32 %v7225_v8, %v7019_v40  ;;  %v9080_v39 = vld [vmem:[#allocation120_spill] sm:$0xff]  ;;  %v7415_v31 = vpop.f32.mrb[99].mxu1 }
 0x2c7   : > { %v4890_v11 = vpop.eup %4889  ;;  %v7406_v6 = vmul.f32 1.442695, %v1828_v3  ;;  %v1830_v50 = vsub.f32 0.0, %v7377_v26  ;;  %v7411_v36 = vadd.f32 %v9080_v39, %v6300_v45  ;;  %v1518_v63 = vadd.f32 %v7232_v32, %v7011_v16  ;;  %9082 = vst [vmem:[#allocation38_spill] sm:$0xff] %v7415_v31 }
 0x2c8   : > { %v4892_v24 = vpop.eup %4891  ;;  %4903 = vrcp.f32 %v2194_v9  ;;  %v1831_v8 = vsub.f32 0.0, %v7384_v38  ;;  %v7418_v13 = vmul.f32 %v2570_v19, %v1514_v12  ;;  %v7420_v57 = vmul.f32 %v2571_v28, %v1516_v17 }
 0x2c9   : > { %9081 = vst [vmem:[#allocation77_spill] sm:$0xff] %v7411_v36  ;;  %v4894_v3 = vpop.eup %4893  ;;  %4905 = vpow2.f32 %v7228_v34  ;;  %v1832_v26 = vsub.f32 0.0, %v7395_v62  ;;  %v7424_v39 = vmul.f32 %v2572_v51, %v1518_v63  ;;  %v2943_v10 = vpack.c.bf16 %v2697_v47, %v7332_v22 }
 0x2ca   : > { %v4896_v32 = vpop.eup %4895  ;;  %4907 = vpow2.f32 %v7274_v23  ;;  %v7428_v31 = vmul.f32 1.442695, %v1829_v15  ;;  %v1520_v19 = vadd.f32 %v7241_v56, %v7019_v40  ;;  %v2942_v28 = vpack.c.bf16 %v7337_v4, %v7330_v53  ;;  %v7441_v56 = vpop.f32.mrb[100].mxu1 }
 0x2cb   : > { %v4898_v9 = vpop.eup %4897  ;;  %v2195_v12 = vadd.f32 1.0, %v4896_v32  ;;  %4909 = vpow2.f32 %v7286_v14  ;;  %v7435_v34 = vmul.f32 1.442695, %v1830_v50  ;;  %v1833_v51 = vsub.f32 0.0, %v7411_v36  ;;  %3262 = vmatprep.mubr.bf16.mxu0 %v2943_v10  ;;  %v9083_v14 = vld [vmem:[#allocation124_spill] sm:$0xff]  ;;  %v7449_v10 = vpop.f32.mrb[101].mxu1 }
 0x2cc   : > { %v4900_v22 = vpop.eup %4899  ;;  %v2196_v47 = vadd.f32 1.0, %v4898_v9  ;;  %4911 = vpow2.f32 %v7294_v27  ;;  %v7439_v23 = vmul.f32 1.442695, %v1831_v8  ;;  %v2701_v15 = vmul.f32 %v2573_v37, %v1520_v19  ;;  %3263 = vmatmul.mubr.bf16.gmra.mrb[80].mxu0 %v2942_v28  ;;  %v9085_v27 = vld [vmem:[#allocation126_spill] sm:$0xff]  ;;  %v9087_v37 = vld [vmem:[#allocation128_spill] sm:$0xff]  ;;  %v7459_v19 = vpop.f32.mrb[102].mxu1 }
 0x2cd   : > { %v4902_v53 = vpop.eup %4901  ;;  %4913 = vrcp.f32 %v2195_v12  ;;  %v2197_v4 = vadd.f32 1.0, %v4900_v22  ;;  %v7443_v17 = vmul.f32 1.442695, %v1832_v26  ;;  %v7447_v50 = vadd.f32 %v9083_v14, %v6298_v30  ;;  %v9089_v9 = vld [vmem:[#allocation130_spill] sm:$0xff]  ;;  %v7468_v22 = vpop.f32.mrb[103].mxu1  ;;  %v9091_v14 = vld [vmem:[#allocation71_spill] sm:$0xff] }
 0x2ce   : > { %4915 = vrcp.f32 %v2196_v47  ;;  %v2198_v63 = vadd.f32 1.0, %v4902_v53  ;;  %v7453_v8 = vadd.f32 %v9085_v27, %v6300_v45  ;;  %v7457_v32 = vadd.f32 %v9087_v37, %v6298_v30 }
 0x2cf   : > { %9084 = vst [vmem:[#allocation79_spill] sm:$0xff] %v7447_v50  ;;  %v2574_v26 = vmul.f32 %v4888_v20, %v7073_v43  ;;  %4917 = vrcp.f32 %v2197_v4  ;;  %v7462_v28 = vmul.f32 1.442695, %v1833_v51  ;;  %v7466_v12 = vadd.f32 %v9089_v9, %v6300_v45 }
 0x2d0   : > { %9086 = vst [vmem:[#allocation81_spill] sm:$0xff] %v7453_v8  ;;  %9088 = vst [vmem:[#allocation83_spill] sm:$0xff] %v7457_v32  ;;  %v2575_v47 = vmul.f32 %v4890_v11, %v7083_v33  ;;  %v2576_v53 = vmul.f32 %v4892_v24, %v7088_v18  ;;  %v2577_v27 = vmul.f32 %v4894_v3, %v9091_v14  ;;  %4919 = vrcp.f32 %v2198_v63 }
 0x2d1   : > { %9090 = vst [vmem:[#allocation85_spill] sm:$0xff] %v7466_v12  ;;  %4921 = vpow2.f32 %v7302_v59  ;;  %v1834_v43 = vsub.f32 0.0, %v7447_v50  ;;  %v1524_v20 = vadd.f32 %v7272_v61, %v7011_v16  ;;  %v1526_v51 = vadd.f32 %v7284_v41, %v7019_v40 }
 0x2d2   : > { %v4904_v4 = vpop.eup %4903  ;;  %4923 = vpow2.f32 %v7353_v54  ;;  %v1835_v33 = vsub.f32 0.0, %v7453_v8  ;;  %v1836_v18 = vsub.f32 0.0, %v7457_v32  ;;  %v1528_v11 = vadd.f32 %v7292_v60, %v7011_v16  ;;  %v7494_v9 = vpop.f32.mrb[104].mxu1 }
 0x2d3   : > { %v4906_v24 = vpop.eup %4905  ;;  %4925 = vpow2.f32 %v7355_v35  ;;  %v1837_v59 = vsub.f32 0.0, %v7466_v12  ;;  %v7486_v3 = vmul.f32 %v2574_v26, %v1524_v20  ;;  %v7488_v61 = vmul.f32 %v2575_v47, %v1526_v51  ;;  %v7501_v47 = vpop.f32.mrb[105].mxu1  ;;  %v9098_v12 = vld [vmem:[#allocation32_spill] sm:$0xff] }
 0x2d4   : > { %v4908_v41 = vpop.eup %4907  ;;  %v2199_v63 = vadd.f32 1.0, %v4906_v24  ;;  %4927 = vpow2.f32 %v7357_v52  ;;  %v7491_v54 = vmul.f32 %v2576_v53, %v1528_v11  ;;  %v2945_v37 = vpack.c.bf16 %v2701_v15, %v7420_v57  ;;  %v9092_v57 = vld [vmem:[#allocation135_spill] sm:$0xff]  ;;  %v9094_v53 = vld [vmem:[#allocation137_spill] sm:$0xff] }
 0x2d5   : > { %v4910_v60 = vpop.eup %4909  ;;  %v2200_v14 = vadd.f32 1.0, %v4908_v41  ;;  %4929 = vpow2.f32 %v7363_v29  ;;  %v1530_v35 = vadd.f32 %v7298_v5, %v7019_v40  ;;  %v2944_v26 = vpack.c.bf16 %v7424_v39, %v7418_v13  ;;  %v7511_v29 = vpop.f32.mrb[106].mxu1  ;;  %v9096_v39 = vld [vmem:[#allocation139_spill] sm:$0xff] }
 0x2d6   : > { %v4912_v20 = vpop.eup %4911  ;;  %4931 = vrcp.f32 %v2199_v63  ;;  %v2201_v52 = vadd.f32 1.0, %v4910_v60  ;;  %3272 = vmatprep.mubr.bf16.mxu0 %v2945_v37  ;;  %v7505_v15 = vadd.f32 %v9092_v57, %v6298_v30  ;;  %v7509_v51 = vadd.f32 %v9094_v53, %v6300_v45  ;;  %v7517_v41 = vpop.f32.mrb[107].mxu1 }
 0x2d7   : > { %v4914_v5 = vpop.eup %4913  ;;  %4933 = vrcp.f32 %v2200_v14  ;;  %v2202_v11 = vadd.f32 1.0, %v4912_v20  ;;  %v2705_v13 = vmul.f32 %v2577_v27, %v1530_v35  ;;  %3273 = vmatmul.mubr.bf16.gmra.mrb[84].mxu0 %v2944_v26  ;;  %v7515_v24 = vadd.f32 %v9096_v39, %v6298_v30  ;;  %v9099_v35 = vld [vmem:[#allocation141_spill] sm:$0xff] }
 0x2d8   : > { %9093 = vst [vmem:[#allocation87_spill] sm:$0xff] %v7505_v15  ;;  %9095 = vst [vmem:[#allocation89_spill] sm:$0xff] %v7509_v51  ;;  %v4916_v63 = vpop.eup %4915  ;;  %4935 = vrcp.f32 %v2201_v52  ;;  %v7519_v37 = vmul.f32 1.442695, %v1834_v43  ;;  %v7521_v60 = vmul.f32 1.442695, %v1835_v33  ;;  %v2578_v14 = vmul.f32 %v4904_v4, %v9098_v12 }
 0x2d9   : > { %9097 = vst [vmem:[#allocation92_spill] sm:$0xff] %v7515_v24  ;;  %v7523_v57 = vmul.f32 1.442695, %v1836_v18  ;;  %v4918_v53 = vpop.eup %4917  ;;  %4937 = vrcp.f32 %v2202_v11  ;;  %v7526_v27 = vmul.f32 1.442695, %v1837_v59  ;;  %v7530_v26 = vadd.f32 %v9099_v35, %v6300_v45  ;;  %v9101_v39 = vld [vmem:[#allocation33_spill] sm:$0xff] }
 0x2da   : > { %v4920_v20 = vpop.eup %4919  ;;  %v2579_v32 = vmul.f32 %v4914_v5, %v9101_v39  ;;  %4939 = vpow2.f32 %v7365_v21  ;;  %v1838_v43 = vsub.f32 0.0, %v7505_v15  ;;  %v1839_v33 = vsub.f32 0.0, %v7509_v51  ;;  %v9102_v52 = vld [vmem:[#allocation53_spill] sm:$0xff]  ;;  %v7545_v35 = vpop.f32.mrb[108].mxu1 }
 0x2db   : > { %9100 = vst [vmem:[#allocation94_spill] sm:$0xff] %v7530_v26  ;;  %v4922_v18 = vpop.eup %4921  ;;  %v2580_v8 = vmul.f32 %v4916_v63, %v9102_v52  ;;  %v2581_v12 = vmul.f32 %v4918_v53, %v7158_v2  ;;  %4941 = vpow2.f32 %v7372_v55  ;;  %v1840_v4 = vsub.f32 0.0, %v7515_v24  ;;  %v7551_v53 = vpop.f32.mrb[109].mxu1 }
 0x2dc   : > { %v4924_v59 = vpop.eup %4923  ;;  %v2203_v11 = vadd.f32 1.0, %v4922_v18  ;;  %4943 = vpow2.f32 %v7389_v44  ;;  %v1534_v21 = vadd.f32 %v7328_v49, %v7011_v16  ;;  %v1536_v5 = vadd.f32 %v7334_v46, %v7019_v40  ;;  %v7557_v46 = vpop.f32.mrb[110].mxu1 }
 0x2dd   : > { %v4926_v39 = vpop.eup %4925  ;;  %v2204_v63 = vadd.f32 1.0, %v4924_v59  ;;  %4945 = vpow2.f32 %v7391_v1  ;;  %v1841_v2 = vsub.f32 0.0, %v7530_v26  ;;  %v1538_v55 = vadd.f32 %v7340_v0, %v7011_v16  ;;  %v7562_v51 = vpop.f32.mrb[111].mxu1 }
 0x2de   : > { %v4928_v44 = vpop.eup %4927  ;;  %4947 = vrcp.f32 %v2203_v11  ;;  %v2205_v18 = vadd.f32 1.0, %v4926_v39  ;;  %v7553_v49 = vmul.f32 %v2578_v14, %v1534_v21  ;;  %v7555_v52 = vmul.f32 %v2579_v32, %v1536_v5 }
 0x2df   : > { %v4930_v24 = vpop.eup %4929  ;;  %4949 = vrcp.f32 %v2204_v63  ;;  %v2206_v59 = vadd.f32 1.0, %v4928_v44  ;;  %v7559_v1 = vmul.f32 %v2580_v8, %v1538_v55  ;;  %v2947_v26 = vpack.c.bf16 %v2705_v13, %v7488_v61  ;;  %v9103_v8 = vld [vmem:[#allocation64_spill] sm:$0xff]  ;;  %v9104_v61 = vld [vmem:[#allocation66_spill] sm:$0xff] }
 0x2e0   : > { %v4932_v0 = vpop.eup %4931  ;;  %4951 = vrcp.f32 %v2205_v18  ;;  %v2207_v15 = vadd.f32 1.0, %v4930_v24  ;;  %v1540_v14 = vadd.f32 %v7350_v48, %v7019_v40  ;;  %v2946_v32 = vpack.c.bf16 %v7491_v54, %v7486_v3  ;;  %v9105_v3 = vld [vmem:[#allocation142_spill] sm:$0xff] }
 0x2e1   : > { %v4934_v11 = vpop.eup %4933  ;;  %4953 = vrcp.f32 %v2206_v59  ;;  %v7568_v21 = vmul.f32 1.442695, %v1838_v43  ;;  %3282 = vmatprep.mubr.bf16.mxu0 %v2947_v26  ;;  %v7572_v5 = vadd.f32 %v9103_v8, %v6298_v30  ;;  %v7576_v13 = vadd.f32 %v9104_v61, %v6300_v45  ;;  %v9106_v26 = vld [vmem:[#allocation55_spill] sm:$0xff]  ;;  %v9107_v59 = vld [vmem:[#allocation74_spill] sm:$0xff] }
 0x2e2   : > { %v4936_v24 = vpop.eup %4935  ;;  %4955 = vrcp.f32 %v2207_v15  ;;  %v7578_v39 = vmul.f32 1.442695, %v1839_v33  ;;  %v2709_v48 = vmul.f32 %v2581_v12, %v1540_v14  ;;  %3283 = vmatmul.mubr.bf16.gmra.mrb[88].mxu0 %v2946_v32  ;;  %v7582_v54 = vadd.f32 %v9105_v3, %v6298_v30  ;;  %v9108_v33 = vld [vmem:[#allocation59_spill] sm:$0xff]  ;;  %v9109_v12 = vld [vmem:[#allocation60_spill] sm:$0xff]  ;;  %v7594_v32 = vpop.f32.mrb[112].mxu1 }
 0x2e3   : > { %v4938_v43 = vpop.eup %4937  ;;  %v2582_v63 = vmul.f32 %v4920_v20, %v9106_v26  ;;  %4957 = vpow2.f32 %v7406_v6  ;;  %v7586_v55 = vmul.f32 1.442695, %v1840_v4  ;;  %v7588_v44 = vmul.f32 1.442695, %v1841_v2  ;;  %v7599_v4 = vpop.f32.mrb[113].mxu1  ;;  %v9112_v6 = vld [vmem:[#allocation35_spill] sm:$0xff] }
 0x2e4   : > { %v4940_v18 = vpop.eup %4939  ;;  %v2583_v15 = vmul.f32 %v4932_v0, %v9107_v59  ;;  %v2584_v8 = vmul.f32 %v4934_v11, %v9108_v33  ;;  %v2585_v14 = vmul.f32 %v4936_v24, %v9109_v12  ;;  %4959 = vpow2.f32 %v7428_v31  ;;  %v9110_v0 = vld [vmem:[#allocation34_spill] sm:$0xff]  ;;  %v7604_v24 = vpop.f32.mrb[114].mxu1 }
 0x2e5   : > { %v4942_v61 = vpop.eup %4941  ;;  %v2208_v3 = vadd.f32 1.0, %v4940_v18  ;;  %4961 = vpow2.f32 %v7435_v34  ;;  %v2586_v26 = vmul.f32 %v4938_v43, %v9110_v0  ;;  %v1544_v34 = vadd.f32 %v7386_v7, %v7011_v16  ;;  %v7610_v12 = vpop.f32.mrb[115].mxu1 }
 0x2e6   : > { %v4944_v2 = vpop.eup %4943  ;;  %v2209_v11 = vadd.f32 1.0, %v4942_v61  ;;  %4963 = vpow2.f32 %v7439_v23  ;;  %v1546_v33 = vadd.f32 %v7397_v58, %v7019_v40  ;;  %v9111_v23 = vld [vmem:[#allocation147_spill] sm:$0xff]  ;;  %v1548_v0 = vadd.f32 %v7404_v42, %v7011_v16  ;;  %v9114_v42 = vld [vmem:[#allocation38_spill] sm:$0xff] }
 0x2e7   : > { %v4946_v59 = vpop.eup %4945  ;;  %4965 = vrcp.f32 %v2208_v3  ;;  %v2210_v18 = vadd.f32 1.0, %v4944_v2  ;;  %v7614_v61 = vadd.f32 %v9111_v23, %v6300_v45  ;;  %v7619_v7 = vmul.f32 %v2582_v63, %v1544_v34  ;;  %v9113_v45 = vld [vmem:[#allocation63_spill] sm:$0xff] }
 0x2e8   : > { %v4948_v20 = vpop.eup %4947  ;;  %4967 = vrcp.f32 %v2209_v11  ;;  %v2211_v43 = vadd.f32 1.0, %v4946_v59  ;;  %v2711_v31 = vmul.f32 %v2583_v15, %v1546_v33  ;;  %v7622_v11 = vmul.f32 %v2584_v8, %v1548_v0  ;;  %v9116_v8 = vld [vmem:[#allocation70_spill] sm:$0xff] }
 0x2e9   : > { %v4950_v3 = vpop.eup %4949  ;;  %v2587_v2 = vmul.f32 %v4948_v20, %v7239_v25  ;;  %4969 = vrcp.f32 %v2210_v18  ;;  %v2949_v59 = vpack.c.bf16 %v2709_v48, %v7555_v52  ;;  %v1550_v25 = vadd.f32 %v9114_v42, %v7019_v40  ;;  %v9115_v20 = vld [vmem:[#allocation68_spill] sm:$0xff] }
 0x2ea   : > { %v4952_v58 = vpop.eup %4951  ;;  %v2588_v50 = vmul.f32 %v4950_v3, %v9112_v6  ;;  %4971 = vrcp.f32 %v2211_v43  ;;  %v2948_v63 = vpack.c.bf16 %v7559_v1, %v7553_v49  ;;  %v1554_v52 = vadd.f32 %v7441_v56, %v7011_v16  ;;  %v7637_v48 = vpop.f32.mrb[116].mxu1  ;;  %v9117_v42 = vld [vmem:[#allocation72_spill] sm:$0xff] }
 0x2eb   : > { %v4954_v23 = vpop.eup %4953  ;;  %v2589_v36 = vmul.f32 %v4952_v58, %v9113_v45  ;;  %4973 = vpow2.f32 %v7443_v17  ;;  %3292 = vmatprep.mubr.bf16.mxu0 %v2949_v59  ;;  %v1556_v45 = vadd.f32 %v7449_v10, %v7019_v40  ;;  %v2713_v49 = vmul.f32 %v2585_v14, %v1550_v25 }
 0x2ec   : > { %v4956_v15 = vpop.eup %4955  ;;  %v2590_v18 = vmul.f32 %v4954_v23, %v9115_v20  ;;  %4975 = vpow2.f32 %v7462_v28  ;;  %3293 = vmatmul.mubr.bf16.gmra.mrb[92].mxu0 %v2948_v63  ;;  %v1558_v1 = vadd.f32 %v7459_v19, %v7011_v16  ;;  %v7643_v28 = vpop.f32.mrb[117].mxu1  ;;  %v7646_v56 = vmul.f32 %v2586_v26, %v1554_v52 }
 0x2ed   : > { %v4958_v17 = vpop.eup %4957  ;;  %v2591_v6 = vmul.f32 %v4956_v15, %v9116_v8  ;;  %4977 = vpow2.f32 %v7519_v37  ;;  %v2715_v10 = vmul.f32 %v2587_v2, %v1556_v45  ;;  %v7648_v43 = vpop.f32.mrb[118].mxu1  ;;  %v2951_v14 = vpack.c.bf16 %v2713_v49, %v2711_v31  ;;  %v9119_v45 = vld [vmem:[#allocation37_spill] sm:$0xff] }
 0x2ee   : > { %v4960_v34 = vpop.eup %4959  ;;  %v2212_v33 = vadd.f32 1.0, %v4958_v17  ;;  %4979 = vpow2.f32 %v7521_v60  ;;  %v7651_v37 = vmul.f32 %v2588_v50, %v1558_v1  ;;  %v7653_v58 = vpop.f32.mrb[119].mxu1  ;;  %v1560_v60 = vadd.f32 %v7468_v22, %v7019_v40 }
 0x2ef   : > { %v4962_v0 = vpop.eup %4961  ;;  %v2213_v3 = vadd.f32 1.0, %v4960_v34  ;;  %4981 = vpow2.f32 %v7523_v57  ;;  %v2950_v26 = vpack.c.bf16 %v7622_v11, %v7619_v7  ;;  %3302 = vmatprep.mubr.bf16.mxu0 %v2951_v14  ;;  %v1564_v50 = vadd.f32 %v7494_v9, %v7011_v16  ;;  %v9118_v7 = vld [vmem:[#allocation36_spill] sm:$0xff] }
 0x2f0   : > { %v4964_v19 = vpop.eup %4963  ;;  %4983 = vrcp.f32 %v2212_v33  ;;  %v2214_v59 = vadd.f32 1.0, %v4962_v0  ;;  %v1566_v57 = vadd.f32 %v7501_v47, %v7019_v40  ;;  %v2717_v63 = vmul.f32 %v2589_v36, %v1560_v60 }
 0x2f1   : > { %v4966_v2 = vpop.eup %4965  ;;  %4985 = vrcp.f32 %v2213_v3  ;;  %v2215_v23 = vadd.f32 1.0, %v4964_v19  ;;  %v1568_v22 = vadd.f32 %v7511_v29, %v7011_v16  ;;  %v7667_v20 = vmul.f32 %v2590_v18, %v1564_v50  ;;  %v9120_v29 = vld [vmem:[#allocation39_spill] sm:$0xff] }
 0x2f2   : > { %v4968_v31 = vpop.eup %4967  ;;  %v2592_v25 = vmul.f32 %v4966_v2, %v9117_v42  ;;  %4987 = vrcp.f32 %v2214_v59  ;;  %v7669_v52 = vmul.f32 %v2591_v6, %v1566_v57  ;;  %v2953_v8 = vpack.c.bf16 %v2717_v63, %v2715_v10  ;;  %v7675_v36 = vpop.f32.mrb[120].mxu1 }
 0x2f3   : > { %v4970_v15 = vpop.eup %4969  ;;  %v2593_v11 = vmul.f32 %v4968_v31, %v9118_v7  ;;  %4989 = vrcp.f32 %v2215_v23  ;;  %v1570_v18 = vadd.f32 %v7517_v41, %v7019_v40  ;;  %v2952_v6 = vpack.c.bf16 %v7651_v37, %v7646_v56  ;;  %v7683_v34 = vpop.f32.mrb[121].mxu1 }
 0x2f4   : > { %v4972_v9 = vpop.eup %4971  ;;  %v2594_v17 = vmul.f32 %v4970_v15, %v9119_v45  ;;  %4991 = vpow2.f32 %v7526_v27  ;;  %v7673_v47 = vmul.f32 %v2592_v25, %v1568_v22  ;;  %3303 = vmatmul.mubr.bf16.gmra.mrb[96].mxu0 %v2950_v26  ;;  %v1574_v10 = vadd.f32 %v7545_v35, %v7011_v16  ;;  %v7690_v0 = vpop.f32.mrb[122].mxu1  ;;  %v9122_v25 = vld [vmem:[#allocation40_spill] sm:$0xff] }
 0x2f5   : > { %v4974_v49 = vpop.eup %4973  ;;  %v2595_v1 = vmul.f32 %v4972_v9, %v9120_v29  ;;  %4993 = vpow2.f32 %v7568_v21  ;;  %3312 = vmatprep.mubr.bf16.mxu0 %v2953_v8  ;;  %v1576_v21 = vadd.f32 %v7551_v53, %v7019_v40  ;;  %v9121_v56 = vsub.f32 0.0, %v7572_v5  ;;  %v7695_v19 = vpop.f32.mrb[123].mxu1 }
 0x2f6   : > { %v4976_v27 = vpop.eup %4975  ;;  %v2216_v33 = vadd.f32 1.0, %v4974_v49  ;;  %4995 = vpow2.f32 %v7578_v39  ;;  %v2721_v14 = vmul.f32 %v2593_v11, %v1570_v18  ;;  %v7697_v60 = vmul.f32 %v2594_v17, %v1574_v10  ;;  %v9124_v11 = vld [vmem:[#allocation75_spill] sm:$0xff]  ;;  %v9127_v18 = vld [vmem:[#allocation30_spill] sm:$0xff] }
 0x2f7   : > { %v4978_v3 = vpop.eup %4977  ;;  %v2217_v41 = vadd.f32 1.0, %v4976_v27  ;;  %4997 = vpow2.f32 %v7586_v55  ;;  %v2030_v37 = vmul.f32 1.442695, %v9121_v56  ;;  %v7699_v35 = vmul.f32 %v2595_v1, %v1576_v21 }
 0x2f8   : > { %v4980_v39 = vpop.eup %4979  ;;  %4999 = vrcp.f32 %v2216_v33  ;;  %v2218_v59 = vadd.f32 1.0, %v4978_v3  ;;  %v1578_v2 = vadd.f32 %v7557_v46, %v7011_v16  ;;  %v2955_v55 = vpack.c.bf16 %v2721_v14, %v7669_v52 }
 0x2f9   : > { %v4982_v53 = vpop.eup %4981  ;;  %5001 = vrcp.f32 %v2217_v41  ;;  %v2219_v26 = vadd.f32 1.0, %v4980_v39  ;;  %v1580_v57 = vadd.f32 %v7562_v51, %v7019_v40  ;;  %v2954_v31 = vpack.c.bf16 %v7673_v47, %v7667_v20  ;;  %v9126_v47 = vld [vmem:[#allocation76_spill] sm:$0xff] }
 0x2fa   : > { %v4984_v23 = vpop.eup %4983  ;;  %5003 = vrcp.f32 %v2218_v59  ;;  %v2220_v50 = vadd.f32 1.0, %v4982_v53  ;;  %v9123_v22 = vsub.f32 0.0, %v7576_v13  ;;  %v1584_v46 = vadd.f32 %v7594_v32, %v7011_v16  ;;  %v7718_v45 = vpop.f32.mrb[124].mxu1 }
 0x2fb   : > { %v4986_v42 = vpop.eup %4985  ;;  %v2596_v63 = vmul.f32 %v4984_v23, %v9122_v25  ;;  %5005 = vrcp.f32 %v2219_v26  ;;  %v9125_v9 = vsub.f32 0.0, %v7582_v54  ;;  %v1586_v20 = vadd.f32 %v7599_v4, %v7019_v40  ;;  %v7725_v29 = vpop.f32.mrb[125].mxu1  ;;  %v9129_v23 = vld [vmem:[#allocation99_spill] sm:$0xff] }
 0x2fc   : > { %v2032_v15 = vmul.f32 1.442695, %v9123_v22  ;;  %v4988_v7 = vpop.eup %4987  ;;  %v2597_v52 = vmul.f32 %v4986_v42, %v9124_v11  ;;  %5007 = vrcp.f32 %v2220_v50  ;;  %v1845_v49 = vsub.f32 0.0, %v7614_v61  ;;  %3313 = vmatmul.mubr.bf16.gmra.mrb[100].mxu0 %v2952_v6  ;;  %v7732_v21 = vpop.f32.mrb[126].mxu1  ;;  %v9130_v50 = vld [vmem:[#allocation148_spill] sm:$0xff] }
 0x2fd   : > { %v2034_v51 = vmul.f32 1.442695, %v9125_v9  ;;  %v4990_v17 = vpop.eup %4989  ;;  %v2598_v8 = vmul.f32 %v4988_v7, %v9126_v47  ;;  %5009 = vpow2.f32 %v7588_v44  ;;  %v7723_v32 = vmul.f32 %v2596_v63, %v1578_v2  ;;  %3322 = vmatprep.mubr.bf16.mxu0 %v2955_v55  ;;  %v7738_v56 = vpop.f32.mrb[127].mxu1  ;;  %v9132_v7 = vld [vmem:[#allocation77_spill] sm:$0xff] }
 0x2fe   : > { %v4992_v1 = vpop.eup %4991  ;;  %v9128_v27 = vsub.f32 0.0, %v9127_v18  ;;  %v2599_v4 = vmul.f32 %v4990_v17, %v7384_v38  ;;  %5011 = vpow2.f32 %v2030_v37  ;;  %v2725_v10 = vmul.f32 %v2597_v52, %v1580_v57 }
 0x2ff   : > { %v4994_v44 = vpop.eup %4993  ;;  %v2221_v3 = vadd.f32 1.0, %v4992_v1  ;;  %5013 = vpow2.f32 %v2032_v15  ;;  %v7734_v6 = vmul.f32 %v2598_v8, %v1584_v46  ;;  %v2956_v41 = vpack.c.bf16 %v7723_v32, %v7697_v60  ;;  %v9143_v60 = vld [vmem:[#allocation92_spill] sm:$0xff] }
 0x300   : > { %v7729_v33 = vmul.f32 1.442695, %v9128_v27  ;;  %v4996_v14 = vpop.eup %4995  ;;  %v2222_v39 = vadd.f32 1.0, %v4994_v44  ;;  %5015 = vpow2.f32 %v2034_v51  ;;  %v7740_v59 = vmul.f32 %v2599_v4, %v1586_v20  ;;  %v9133_v20 = vld [vmem:[#allocation79_spill] sm:$0xff] }
 0x301   : > { %v2957_v38 = vpack.c.bf16 %v2725_v10, %v7699_v35  ;;  %v4998_v37 = vpop.eup %4997  ;;  %5017 = vrcp.f32 %v2221_v3  ;;  %v2223_v53 = vadd.f32 1.0, %v4996_v14  ;;  %v2036_v26 = vmul.f32 1.442695, %v1845_v49  ;;  %v9131_v35 = vld [vmem:[#allocation82_spill] sm:$0xff]  ;;  %v9134_v49 = vld [vmem:[#allocation81_spill] sm:$0xff]  ;;  %v9135_v44 = vld [vmem:[#allocation83_spill] sm:$0xff] }
 0x302   : > { %v1588_v2 = vadd.f32 %v7604_v24, %v7011_v16  ;;  %v5000_v55 = vpop.eup %4999  ;;  %v7747_v57 = vmul.f32 %v9130_v50, %v9129_v23  ;;  %5019 = vrcp.f32 %v2222_v39  ;;  %v2224_v42 = vadd.f32 1.0, %v4998_v37  ;;  %v1623_v9 = vpop.f32.mrb[128].mxu1 }
 0x303   : > { %v1590_v25 = vadd.f32 %v7610_v12, %v7019_v40  ;;  %v5002_v63 = vpop.eup %5001  ;;  %v7753_v22 = vadd.f32 %v9131_v35, %v6298_v30  ;;  %v2600_v15 = vmul.f32 %v5000_v55, %v7395_v62  ;;  %5021 = vrcp.f32 %v2223_v53  ;;  %v1625_v47 = vpop.f32.mrb[129].mxu1  ;;  %v9138_v35 = vld [vmem:[#allocation57_spill] sm:$0xff] }
 0x304   : > { %v1594_v24 = vadd.f32 %v7637_v48, %v7011_v16  ;;  %v5004_v46 = vpop.eup %5003  ;;  %v2601_v11 = vmul.f32 %v5002_v63, %v9132_v7  ;;  %5023 = vrcp.f32 %v2224_v42  ;;  %v1596_v52 = vadd.f32 %v7643_v28, %v7019_v40  ;;  %3323 = vmatmul.mubr.bf16.gmra.mrb[104].mxu0 %v2954_v31  ;;  %v1627_v4 = vpop.f32.mrb[130].mxu1 }
 0x305   : > { %v1598_v12 = vadd.f32 %v7648_v43, %v7011_v16  ;;  %v5006_v51 = vpop.eup %5005  ;;  %v2602_v17 = vmul.f32 %v5004_v46, %v9133_v20  ;;  %5025 = vpow2.f32 %v2036_v26  ;;  %v7764_v62 = vmul.f32 %v2600_v15, %v1588_v2  ;;  %3332 = vmatprep.mubr.bf16.mxu0 %v2957_v38  ;;  %v1629_v39 = vpop.f32.mrb[131].mxu1  ;;  %v9136_v2 = vld [vmem:[#allocation54_spill] sm:$0xff]  ;;  %v9139_v20 = vld [vmem:[#allocation85_spill] sm:$0xff] }
 0x306   : > { %v1600_v48 = vadd.f32 %v7653_v58, %v7019_v40  ;;  %v5008_v8 = vpop.eup %5007  ;;  %v2603_v1 = vmul.f32 %v5006_v51, %v9134_v49  ;;  %v2729_v28 = vmul.f32 %v2601_v11, %v1590_v25  ;;  %v1624_v27 = vadd.f32 %v1623_v9, %v7011_v16  ;;  %v9137_v25 = vld [vmem:[#allocation56_spill] sm:$0xff] }
 0x307   : > { %v1626_v43 = vadd.f32 %v1625_v47, %v7019_v40  ;;  %v5010_v10 = vpop.eup %5009  ;;  %v2604_v3 = vmul.f32 %v5008_v8, %v9135_v44  ;;  %v7772_v31 = vmul.f32 %v2602_v17, %v1594_v24  ;;  %v2958_v14 = vpack.c.bf16 %v7764_v62, %v7734_v6  ;;  %v9140_v8 = vld [vmem:[#allocation58_spill] sm:$0xff] }
 0x308   : > { %v1628_v58 = vadd.f32 %v1627_v4, %v7011_v16  ;;  %v5012_v37 = vpop.eup %5011  ;;  %v2225_v53 = vadd.f32 1.0, %v5010_v10  ;;  %v7777_v38 = vmul.f32 %v2603_v1, %v1596_v52  ;;  %v2959_v26 = vpack.c.bf16 %v2729_v28, %v7740_v59  ;;  %v9141_v28 = vld [vmem:[#allocation87_spill] sm:$0xff] }
 0x309   : > { %v7781_v55 = vmul.f32 %v9136_v2, %v1624_v27  ;;  %v5014_v23 = vpop.eup %5013  ;;  %v2226_v50 = vadd.f32 1.0, %v5012_v37  ;;  %v7783_v42 = vmul.f32 %v2604_v3, %v1598_v12  ;;  %v7786_v63 = vmul.f32 %v9137_v25, %v1626_v43 }
 0x30a   : > { %v7789_v15 = vmul.f32 %v9138_v35, %v1628_v58  ;;  %v5016_v24 = vpop.eup %5015  ;;  %5027 = vrcp.f32 %v2225_v53  ;;  %v2227_v46 = vadd.f32 1.0, %v5014_v23  ;;  %v1604_v7 = vadd.f32 %v7675_v36, %v7011_v16  ;;  %v1633_v49 = vpop.f32.mrb[132].mxu1 }
 0x30b   : > { %v1630_v59 = vadd.f32 %v1629_v39, %v7019_v40  ;;  %v5018_v11 = vpop.eup %5017  ;;  %5029 = vrcp.f32 %v2226_v50  ;;  %v2228_v52 = vadd.f32 1.0, %v5016_v24  ;;  %v2960_v12 = vpack.c.bf16 %v7783_v42, %v7772_v31  ;;  %v1635_v10 = vpop.f32.mrb[133].mxu1  ;;  %v9145_v24 = vld [vmem:[#allocation42_spill] sm:$0xff] }
 0x30c   : > { %v5020_v51 = vpop.eup %5019  ;;  %v2605_v17 = vmul.f32 %v5018_v11, %v9139_v20  ;;  %5031 = vrcp.f32 %v2227_v46  ;;  %v1606_v47 = vadd.f32 %v7683_v34, %v7019_v40  ;;  %3333 = vmatmul.mubr.bf16.gmra.mrb[108].mxu0 %v2956_v41  ;;  %v1608_v43 = vadd.f32 %v7690_v0, %v7011_v16  ;;  %v9142_v34 = vld [vmem:[#allocation89_spill] sm:$0xff]  ;;  %v1637_v37 = vpop.f32.mrb[134].mxu1  ;;  %v9148_v20 = vld [vmem:[#allocation100_spill] sm:$0xff] }
 0x30d   : > { %v7802_v36 = vmul.f32 %v9140_v8, %v1630_v59  ;;  %v5022_v1 = vpop.eup %5021  ;;  %v2606_v27 = vmul.f32 %v5020_v51, %v9141_v28  ;;  %5033 = vrcp.f32 %v2228_v52  ;;  %v1634_v4 = vadd.f32 %v1633_v49, %v7011_v16  ;;  %3342 = vmatprep.mubr.bf16.mxu0 %v2959_v26  ;;  %v9144_v0 = vld [vmem:[#allocation41_spill] sm:$0xff]  ;;  %v1639_v25 = vpop.f32.mrb[135].mxu1  ;;  %v9151_v49 = vld [vmem:[#allocation28_spill] sm:$0xff] }
 0x30e   : > { %v5024_v44 = vpop.eup %5023  ;;  %v2607_v3 = vmul.f32 %v5022_v1, %v9142_v34  ;;  %v2733_v58 = vmul.f32 %v2605_v17, %v1600_v48  ;;  %v1636_v39 = vadd.f32 %v1635_v10, %v7019_v40  ;;  %v1638_v50 = vadd.f32 %v1637_v37, %v7011_v16  ;;  %v9146_v59 = vld [vmem:[#allocation61_spill] sm:$0xff]  ;;  %v9149_v17 = vld [vmem:[#allocation151_spill] sm:$0xff]  ;;  %v9153_v28 = vld [vmem:[#allocation84_spill] sm:$0xff] }
 0x30f   : > { %v5026_v2 = vpop.eup %5025  ;;  %v2608_v32 = vmul.f32 %v5024_v44, %v9143_v60  ;;  %v7816_v41 = vmul.f32 %v2606_v27, %v1604_v7  ;;  %v7819_v23 = vmul.f32 %v9144_v0, %v1634_v4  ;;  %5035 = vrcp.f32 %v9146_v59  ;;  %v9147_v7 = vld [vmem:[#allocation26_spill] sm:$0xff]  ;;  %v9154_v10 = vld [vmem:[#allocation73_spill] sm:$0xff] }
 0x310   : > { %v2229_v35 = vadd.f32 1.0, %v5026_v2  ;;  %v7822_v26 = vmul.f32 %v2607_v3, %v1606_v47  ;;  %v2961_v48 = vpack.c.bf16 %v2733_v58, %v7777_v38  ;;  %v7826_v46 = vmul.f32 %v9145_v24, %v1636_v39  ;;  %v9150_v47 = vld [vmem:[#allocation101_spill] sm:$0xff]  ;;  %v9152_v38 = vld [vmem:[#allocation50_spill] sm:$0xff]  ;;  %v9155_v58 = vld [vmem:[#allocation80_spill] sm:$0xff] }
 0x311   : > { %v7829_v11 = vmul.f32 %v2608_v32, %v1608_v43  ;;  %v7832_v52 = vmul.f32 %v9147_v7, %v1638_v50  ;;  %v1640_v51 = vadd.f32 %v1639_v25, %v7019_v40  ;;  %v7837_v8 = vmul.f32 %v9149_v17, %v9148_v20  ;;  %v9156_v37 = vld [vmem:[#allocation86_spill] sm:$0xff] }
 0x312   : > { %v7841_v1 = vmul.f32 %v9151_v49, %v9150_v47  ;;  %v7845_v27 = vadd.f32 %v9153_v28, %v9152_v38  ;;  %5037 = vrcp.f32 %v2229_v35  ;;  %v1610_v43 = vadd.f32 %v7695_v19, %v7019_v40  ;;  %v1643_v60 = vpop.f32.mrb[136].mxu1  ;;  %v9157_v0 = vld [vmem:[#allocation94_spill] sm:$0xff]  ;;  %v9160_v28 = vld [vmem:[#allocation67_spill] sm:$0xff] }
 0x313   : > { %v2962_v4 = vpack.c.bf16 %v7829_v11, %v7816_v41  ;;  %v7852_v44 = vmul.f32 %v9154_v10, %v1640_v51  ;;  %5039 = vpow2.f32 %v9155_v58  ;;  %v1882_v39 = vsub.f32 0.0, %v7753_v22  ;;  %v1645_v24 = vpop.f32.mrb[137].mxu1  ;;  %v9158_v51 = vld [vmem:[#allocation102_spill] sm:$0xff] }
 0x314   : > { %v5028_v3 = vpop.eup %5027  ;;  %v7860_v2 = vadd.f32 %v9156_v37, %v6298_v30  ;;  %v1614_v19 = vadd.f32 %v7718_v45, %v7011_v16  ;;  %3343 = vmatmul.mubr.bf16.gmra.mrb[112].mxu0 %v2958_v14  ;;  %v1616_v25 = vadd.f32 %v7725_v29, %v7019_v40  ;;  %v1644_v35 = vadd.f32 %v1643_v60, %v7011_v16  ;;  %v9159_v45 = vld [vmem:[#allocation44_spill] sm:$0xff]  ;;  %v1647_v29 = vpop.f32.mrb[138].mxu1  ;;  %v9187_v34 = vld [vmem:[#allocation46_spill] sm:$0xff] }
 0x315   : > { %v5030_v32 = vpop.eup %5029  ;;  %v2609_v50 = vmul.f32 %v5028_v3, %v9157_v0  ;;  %v7875_v20 = vmul.f32 %v9159_v45, %v9158_v51  ;;  %3352 = vmatprep.mubr.bf16.mxu0 %v2961_v48  ;;  %v1618_v6 = vadd.f32 %v7732_v21, %v7011_v16  ;;  %v1646_v62 = vadd.f32 %v1645_v24, %v7019_v40  ;;  %v1649_v58 = vpop.f32.mrb[139].mxu1  ;;  %v9161_v48 = vld [vmem:[#allocation143_spill] sm:$0xff] }
 0x316   : > { %v5032_v7 = vpop.eup %5031  ;;  %v2610_v17 = vmul.f32 %v5030_v32, %v7572_v5  ;;  %v7883_v10 = vmul.f32 %v9160_v28, %v1644_v35  ;;  %v1648_v3 = vadd.f32 %v1647_v29, %v7011_v16  ;;  %v1650_v21 = vadd.f32 %v1649_v58, %v7019_v40  ;;  %v9162_v32 = vld [vmem:[#allocation49_spill] sm:$0xff] }
 0x317   : > { %v5034_v14 = vpop.eup %5033  ;;  %v2611_v47 = vmul.f32 %v5032_v7, %v7576_v13  ;;  %v2737_v49 = vmul.f32 %v2609_v50, %v1610_v43  ;;  %v7890_v60 = vmul.f32 %v9161_v48, %v1646_v62  ;;  %5041 = vpow2.f32 %v9162_v32  ;;  %v9163_v43 = vld [vmem:[#allocation144_spill] sm:$0xff]  ;;  %v9165_v7 = vld [vmem:[#allocation145_spill] sm:$0xff] }
 0x318   : > { %v2612_v37 = vmul.f32 %v5034_v14, %v7582_v54  ;;  %v7887_v5 = vmul.f32 %v2610_v17, %v1614_v19  ;;  %v7898_v50 = vmul.f32 %v9163_v43, %v1648_v3  ;;  %v1883_v35 = vsub.f32 0.0, %v7845_v27  ;;  %v9164_v54 = vld [vmem:[#allocation88_spill] sm:$0xff] }
 0x319   : > { %v7894_v0 = vmul.f32 %v2611_v47, %v1616_v25  ;;  %v2963_v13 = vpack.c.bf16 %v2737_v49, %v7822_v26  ;;  %v7903_v19 = vadd.f32 %v9164_v54, %v9152_v38  ;;  %v7908_v51 = vmul.f32 %v9165_v7, %v1650_v21  ;;  %v7910_v45 = vpop.eup %5035  ;;  %v9166_v25 = vld [vmem:[#allocation155_spill] sm:$0xff]  ;;  %v9167_v62 = vld [vmem:[#allocation52_spill] sm:$0xff] }
 0x31a   : > { %v7905_v24 = vmul.f32 %v2612_v37, %v1618_v6  ;;  %v2258_v17 = vadd.f32 1.0, %v9166_v25  ;;  %5043 = vpow2.f32 %v9167_v62  ;;  %v1620_v26 = vadd.f32 %v7738_v56, %v7019_v40  ;;  %v9168_v47 = vld [vmem:[#allocation156_spill] sm:$0xff]  ;;  %v1653_v3 = vpop.f32.mrb[140].mxu1  ;;  %v9169_v37 = vld [vmem:[#allocation47_spill] sm:$0xff] }
 0x31b   : > { %v2259_v49 = vadd.f32 1.0, %v9168_v47  ;;  %v2110_v6 = vmul.f32 1.442695, %v1882_v39  ;;  %v2260_v48 = vadd.f32 1.0, %v9169_v37  ;;  %5045 = vpow2.f32 %v7729_v33  ;;  %v1655_v39 = vpop.f32.mrb[141].mxu1 }
 0x31c   : > { %v5038_v14 = vpop.eup %5037  ;;  %3353 = vmatmul.mubr.bf16.gmra.mrb[116].mxu0 %v2960_v12  ;;  %v1654_v21 = vadd.f32 %v1653_v3, %v7011_v16  ;;  %v2112_v43 = vmul.f32 1.442695, %v1883_v35  ;;  %v1884_v54 = vsub.f32 0.0, %v7860_v2  ;;  %v1885_v7 = vsub.f32 0.0, %v7903_v19  ;;  %v1657_v62 = vpop.f32.mrb[142].mxu1  ;;  %v9171_v12 = vld [vmem:[#allocation31_spill] sm:$0xff] }
 0x31d   : > { %v2613_v56 = vmul.f32 %v5038_v14, %v7614_v61  ;;  %v5040_v32 = vpop.eup %5039  ;;  %3362 = vmatprep.mubr.bf16.mxu0 %v2963_v13  ;;  %v1656_v25 = vadd.f32 %v1655_v39, %v7019_v40  ;;  %5047 = vrcp.f32 %v2258_v17  ;;  %v9170_v61 = vld [vmem:[#allocation149_spill] sm:$0xff]  ;;  %v1658_v31 = vadd.f32 %v1657_v62, %v7011_v16  ;;  %v1659_v42 = vpop.f32.mrb[143].mxu1  ;;  %v9172_v35 = vld [vmem:[#allocation150_spill] sm:$0xff]  ;;  %v9173_v13 = vld [vmem:[#allocation91_spill] sm:$0xff] }
 0x31e   : > { %v7934_v14 = vmul.f32 %v9170_v61, %v1654_v21  ;;  %5049 = vrcp.f32 %v2259_v49  ;;  %v2261_v47 = vadd.f32 1.0, %v9171_v12  ;;  %v1660_v37 = vadd.f32 %v1659_v42, %v7019_v40  ;;  %v9175_v49 = vld [vmem:[#allocation93_spill] sm:$0xff] }
 0x31f   : > { %v2741_v33 = vmul.f32 %v2613_v56, %v1620_v26  ;;  %v7939_v3 = vmul.f32 %v9172_v35, %v1656_v25  ;;  %5051 = vrcp.f32 %v2260_v48  ;;  %v7944_v39 = vadd.f32 %v9173_v13, %v6298_v30  ;;  %v9174_v26 = vld [vmem:[#allocation152_spill] sm:$0xff]  ;;  %v9176_v25 = vld [vmem:[#allocation95_spill] sm:$0xff]  ;;  %v9178_v61 = vld [vmem:[#allocation29_spill] sm:$0xff] }
 0x320   : > { %v7948_v56 = vmul.f32 %v9174_v26, %v1658_v31  ;;  %5053 = vpow2.f32 %v2110_v6  ;;  %v7952_v21 = vadd.f32 %v9175_v49, %v9152_v38  ;;  %v7956_v62 = vadd.f32 %v9176_v25, %v6298_v30  ;;  %v9180_v6 = vld [vmem:[#allocation69_spill] sm:$0xff] }
 0x321   : > { %v2965_v17 = vpack.c.bf16 %v2741_v33, %v7894_v0  ;;  %v7959_v48 = vmul.f32 %v9178_v61, %v1660_v37  ;;  %v5042_v42 = vpop.eup %5041  ;;  %5055 = vpow2.f32 %v2112_v43  ;;  %v2114_v12 = vmul.f32 1.442695, %v1884_v54  ;;  %v9179_v33 = vld [vmem:[#allocation115_spill] sm:$0xff]  ;;  %v9181_v13 = vld [vmem:[#allocation97_spill] sm:$0xff]  ;;  %v9183_v43 = vld [vmem:[#allocation118_spill] sm:$0xff] }
 0x322   : > { %9177 = vst [vmem:[#allocation96_spill] sm:$0xff] %v7956_v62  ;;  %v2116_v35 = vmul.f32 1.442695, %v1885_v7  ;;  %v7965_v31 = vmul.f32 %v9180_v6, %v9179_v33  ;;  %5057 = vrcp.f32 %v2261_v47  ;;  %v7969_v26 = vadd.f32 %v9181_v13, %v9152_v38  ;;  %v1663_v49 = vpop.f32.mrb[144].mxu1  ;;  %v9184_v54 = vld [vmem:[#allocation45_spill] sm:$0xff]  ;;  %v9186_v0 = vld [vmem:[#allocation51_spill] sm:$0xff] }
 0x323   : > { %v7975_v7 = vmul.f32 %v9184_v54, %v9183_v43  ;;  %v9185_v61 = vld [vmem:[#allocation121_spill] sm:$0xff]  ;;  %v1886_v33 = vsub.f32 0.0, %v7944_v39  ;;  %v1664_v47 = vadd.f32 %v1663_v49, %v7011_v16  ;;  %v1665_v6 = vpop.f32.mrb[145].mxu1  ;;  %v2262_v13 = vadd.f32 1.0, %v5040_v32  ;;  %v9189_v49 = vld [vmem:[#allocation90_spill] sm:$0xff] }
 0x324   : > { %9182 = vst [vmem:[#allocation98_spill] sm:$0xff] %v7969_v26  ;;  %v5044_v25 = vpop.eup %5043  ;;  %v7979_v29 = vmul.f32 %v9186_v0, %v9185_v61  ;;  %3363 = vmatmul.mubr.bf16.gmra.mrb[120].mxu0 %v2962_v4  ;;  %v1887_v37 = vsub.f32 0.0, %v7952_v21  ;;  %v1888_v58 = vsub.f32 0.0, %v7956_v62  ;;  %v1666_v43 = vadd.f32 %v1665_v6, %v7019_v40  ;;  %v1667_v54 = vpop.f32.mrb[146].mxu1  ;;  %v9190_v6 = vld [vmem:[#allocation122_spill] sm:$0xff] }
 0x325   : > { %3372 = vmatprep.mubr.bf16.mxu0 %v2965_v17  ;;  %v5046_v0 = vpop.eup %5045  ;;  %v2263_v61 = vadd.f32 1.0, %v5042_v42  ;;  %5059 = vpow2.f32 %v2114_v12  ;;  %v7990_v59 = vmul.f32 %v9187_v34, %v1664_v47  ;;  %v1668_v41 = vadd.f32 %v1667_v54, %v7011_v16  ;;  %v1669_v11 = vpop.f32.mrb[147].mxu1  ;;  %v9191_v34 = vld [vmem:[#allocation157_spill] sm:$0xff]  ;;  %v9192_v54 = vld [vmem:[#allocation103_spill] sm:$0xff] }
 0x326   : > { %v2264_v4 = vadd.f32 1.0, %v5044_v25  ;;  %v1889_v32 = vsub.f32 0.0, %v7969_v26  ;;  %v7995_v9 = vmul.f32 %v9189_v49, %v1666_v43  ;;  %v1670_v17 = vadd.f32 %v1669_v11, %v7019_v40  ;;  %v9194_v43 = vld [vmem:[#allocation48_spill] sm:$0xff] }
 0x327   : > { %9188 = vst [vmem:[#allocation104_spill] sm:$0xff] %v7990_v59  ;;  %v5048_v53 = vpop.eup %5047  ;;  %v8000_v28 = vmul.f32 %v7910_v45, %v9190_v6  ;;  %5061 = vpow2.f32 %v2116_v35  ;;  %v2118_v42 = vmul.f32 1.442695, %v1886_v33  ;;  %v8003_v12 = vmul.f32 %v9191_v34, %v1668_v41  ;;  %v9195_v45 = vld [vmem:[#allocation105_spill] sm:$0xff] }
 0x328   : > { %v5050_v47 = vpop.eup %5049  ;;  %5063 = vrcp.f32 %v2262_v13  ;;  %v2265_v25 = vadd.f32 1.0, %v5046_v0  ;;  %v8007_v26 = vadd.f32 %v9192_v54, %v6298_v30  ;;  %v8010_v49 = vmul.f32 %v9194_v43, %v1670_v17  ;;  %v9197_v54 = vld [vmem:[#allocation131_spill] sm:$0xff]  ;;  %v9201_v34 = vld [vmem:[#allocation109_spill] sm:$0xff] }
 0x329   : > { %v5052_v11 = vpop.eup %5051  ;;  %5065 = vrcp.f32 %v2263_v61  ;;  %v2120_v62 = vmul.f32 1.442695, %v1887_v37  ;;  %v8014_v35 = vadd.f32 %v9195_v45, %v9152_v38  ;;  %v2122_v13 = vmul.f32 1.442695, %v1888_v58  ;;  %v9198_v37 = vld [vmem:[#allocation107_spill] sm:$0xff] }
 0x32a   : > { %9193 = vst [vmem:[#allocation106_spill] sm:$0xff] %v8007_v26  ;;  %v5054_v41 = vpop.eup %5053  ;;  %5067 = vrcp.f32 %v2264_v4  ;;  %v2124_v0 = vmul.f32 1.442695, %v1889_v32  ;;  %v1673_v6 = vpop.f32.mrb[148].mxu1  ;;  %v8021_v43 = vmul.f32 %v5048_v53, %v9197_v54  ;;  %v8025_v61 = vadd.f32 %v9198_v37, %v6298_v30 }
 0x32b   : > { %9196 = vst [vmem:[#allocation108_spill] sm:$0xff] %v8014_v35  ;;  %v5056_v17 = vpop.eup %5055  ;;  %5069 = vpow2.f32 %v2118_v42  ;;  %v9200_v45 = vpack.c.bf16 %v7905_v24, %v7887_v5  ;;  %v1674_v58 = vadd.f32 %v1673_v6, %v7011_v16  ;;  %v1675_v4 = vpop.f32.mrb[149].mxu1  ;;  %v1890_v33 = vsub.f32 0.0, %v8007_v26 }
 0x32c   : > { %9199 = vst [vmem:[#allocation110_spill] sm:$0xff] %v8025_v61  ;;  %v5058_v32 = vpop.eup %5057  ;;  %5071 = vrcp.f32 %v2265_v25  ;;  %v8034_v53 = vadd.f32 %v9201_v34, %v9152_v38  ;;  %v9203_v42 = vpack.c.bf16 %v7802_v36, %v7786_v63  ;;  %v1676_v54 = vadd.f32 %v1675_v4, %v7019_v40  ;;  %v1677_v37 = vpop.f32.mrb[150].mxu1 }
 0x32d   : > { %3373 = vmatmul.mubr.bf16.gmra.mrb[124].mxu0 %v9200_v45  ;;  %v2266_v5 = vadd.f32 1.0, %v5054_v41  ;;  %v1891_v24 = vsub.f32 0.0, %v8014_v35  ;;  %v8042_v6 = vmul.f32 %v7747_v57, %v1674_v58  ;;  %v1678_v25 = vadd.f32 %v1677_v37, %v7011_v16  ;;  %v1679_v45 = vpop.f32.mrb[151].mxu1  ;;  %v9206_v41 = vld [vmem:[#allocation133_spill] sm:$0xff]  ;;  %v9207_v37 = vld [vmem:[#allocation62_spill] sm:$0xff] }
 0x32e   : > { %9202 = vst [vmem:[#allocation112_spill] sm:$0xff] %v8034_v53  ;;  %3382 = vmatprep.mubr.bf16.mxu0 %v9203_v42  ;;  %v2267_v26 = vadd.f32 1.0, %v5056_v17  ;;  %5073 = vpow2.f32 %v2120_v62  ;;  %v8046_v34 = vmul.f32 %v7837_v8, %v1676_v54  ;;  %v1680_v63 = vadd.f32 %v1679_v45, %v7019_v40  ;;  %v9205_v42 = vld [vmem:[#allocation132_spill] sm:$0xff] }
 0x32f   : > { %9204 = vst [vmem:[#allocation114_spill] sm:$0xff] %v8042_v6  ;;  %v5060_v36 = vpop.eup %5059  ;;  %v8050_v4 = vmul.f32 %v5050_v47, %v9205_v42  ;;  %v8053_v59 = vmul.f32 %v5052_v11, %v9206_v41  ;;  %v1892_v57 = vsub.f32 0.0, %v8025_v61  ;;  %v8057_v58 = vmul.f32 %v7841_v1, %v1678_v25  ;;  %v9208_v11 = vld [vmem:[#allocation111_spill] sm:$0xff] }
 0x330   : > { %v8060_v17 = vmul.f32 %v5058_v32, %v9207_v37  ;;  %v2126_v62 = vmul.f32 1.442695, %v1890_v33  ;;  %v1893_v8 = vsub.f32 0.0, %v8034_v53  ;;  %v8064_v54 = vmul.f32 %v7875_v20, %v1680_v63  ;;  %v9210_v33 = vld [vmem:[#allocation113_spill] sm:$0xff]  ;;  %v9212_v20 = vld [vmem:[#allocation116_spill] sm:$0xff] }
 0x331   : > { %v5062_v45 = vpop.eup %5061  ;;  %5075 = vrcp.f32 %v2266_v5  ;;  %v8066_v47 = vmul.f32 1.442695, %v1891_v24  ;;  %v8070_v42 = vadd.f32 %v9208_v11, %v6298_v30  ;;  %v8076_v32 = vadd.f32 %v9210_v33, %v9152_v38 }
 0x332   : > { %v5064_v25 = vpop.eup %5063  ;;  %5077 = vrcp.f32 %v2267_v26  ;;  %v8080_v63 = vadd.f32 %v9212_v20, %v6298_v30  ;;  %v1683_v5 = vpop.f32.mrb[152].mxu1  ;;  %v2268_v37 = vadd.f32 1.0, %v5060_v36  ;;  %v2130_v11 = vmul.f32 1.442695, %v1892_v57  ;;  %v9215_v20 = vld [vmem:[#allocation119_spill] sm:$0xff] }
 0x333   : > { %9209 = vst [vmem:[#allocation117_spill] sm:$0xff] %v8070_v42  ;;  %9211 = vst [vmem:[#allocation120_spill] sm:$0xff] %v8076_v32  ;;  %v5066_v41 = vpop.eup %5065  ;;  %5079 = vpow2.f32 %v2122_v13  ;;  %v9214_v1 = vpack.c.bf16 %v7789_v15, %v7781_v55  ;;  %v1684_v26 = vadd.f32 %v1683_v5, %v7011_v16  ;;  %v1685_v33 = vpop.f32.mrb[153].mxu1  ;;  %v8088_v61 = vmul.f32 1.442695, %v1893_v8 }
 0x334   : > { %9213 = vst [vmem:[#allocation124_spill] sm:$0xff] %v8080_v63  ;;  %v5068_v53 = vpop.eup %5067  ;;  %5081 = vpow2.f32 %v2124_v0  ;;  %v8092_v35 = vadd.f32 %v9215_v20, %v9152_v38  ;;  %v9216_v36 = vpack.c.bf16 %v7852_v44, %v7826_v46  ;;  %v1686_v13 = vadd.f32 %v1685_v33, %v7019_v40  ;;  %v1687_v57 = vpop.f32.mrb[154].mxu1  ;;  %v9217_v33 = vld [vmem:[#allocation153_spill] sm:$0xff] }
 0x335   : > { %3383 = vmatmul.mubr.bf16.gmra.mrb[128].mxu0 %v9214_v1  ;;  %v5070_v55 = vpop.eup %5069  ;;  %v2269_v15 = vadd.f32 1.0, %v5062_v45  ;;  %v1894_v1 = vsub.f32 0.0, %v8070_v42  ;;  %v8100_v5 = vmul.f32 %v7965_v31, %v1684_v26  ;;  %v1688_v0 = vadd.f32 %v1687_v57, %v7011_v16  ;;  %v1689_v8 = vpop.f32.mrb[155].mxu1 }
 0x336   : > { %3392 = vmatprep.mubr.bf16.mxu0 %v9216_v36  ;;  %v5072_v24 = vpop.eup %5071  ;;  %v1895_v20 = vsub.f32 0.0, %v8076_v32  ;;  %v1896_v6 = vsub.f32 0.0, %v8080_v63  ;;  %v8106_v46 = vmul.f32 %v7975_v7, %v1686_v13  ;;  %v1690_v44 = vadd.f32 %v1689_v8, %v7019_v40  ;;  %v9218_v36 = vld [vmem:[#allocation154_spill] sm:$0xff]  ;;  %v9219_v63 = vld [vmem:[#allocation123_spill] sm:$0xff] }
 0x337   : > { %v8110_v45 = vmul.f32 %v5064_v25, %v9217_v33  ;;  %v8113_v42 = vmul.f32 %v5066_v41, %v9218_v36  ;;  %5083 = vrcp.f32 %v2268_v37  ;;  %v8116_v31 = vmul.f32 %v7979_v29, %v1688_v0  ;;  %v9220_v25 = vld [vmem:[#allocation78_spill] sm:$0xff] }
 0x338   : > { %v5074_v26 = vpop.eup %5073  ;;  %v2270_v57 = vadd.f32 1.0, %v5070_v55  ;;  %v1897_v32 = vsub.f32 0.0, %v8092_v35  ;;  %v8121_v7 = vadd.f32 %v9219_v63, %v6298_v30  ;;  %v8124_v13 = vmul.f32 %v8000_v28, %v1690_v44 }
 0x339   : > { %v8127_v8 = vmul.f32 %v5068_v53, %v9220_v25  ;;  %5085 = vrcp.f32 %v2269_v15  ;;  %v2134_v41 = vmul.f32 1.442695, %v1894_v1  ;;  %v2978_v29 = vpack.c.bf16 %v8116_v31, %v8100_v5  ;;  %v9221_v53 = vld [vmem:[#allocation125_spill] sm:$0xff] }
 0x33a   : > { %v8132_v37 = vmul.f32 %v5072_v24, %v9127_v18  ;;  %v2136_v55 = vmul.f32 1.442695, %v1895_v20  ;;  %v2138_v0 = vmul.f32 1.442695, %v1896_v6  ;;  %v1693_v33 = vpop.f32.mrb[156].mxu1  ;;  %v2979_v63 = vpack.c.bf16 %v8124_v13, %v8106_v46 }
 0x33b   : > { %v5076_v36 = vpop.eup %5075  ;;  %v2271_v28 = vadd.f32 1.0, %v5074_v26  ;;  %5087 = vpow2.f32 %v2126_v62  ;;  %v8138_v44 = vadd.f32 %v9221_v53, %v9152_v38  ;;  %v9222_v15 = vpack.c.bf16 %v7832_v52, %v7819_v23  ;;  %v1695_v24 = vpop.f32.mrb[157].mxu1  ;;  %v9224_v23 = vld [vmem:[#allocation127_spill] sm:$0xff] }
 0x33c   : > { %v1694_v18 = vadd.f32 %v1693_v33, %v7011_v16  ;;  %v5078_v1 = vpop.eup %5077  ;;  %5089 = vrcp.f32 %v2270_v57  ;;  %v8144_v6 = vmul.f32 1.442695, %v1897_v32  ;;  %v1898_v20 = vsub.f32 0.0, %v8121_v7  ;;  %v1697_v25 = vpop.f32.mrb[158].mxu1 }
 0x33d   : > { %3393 = vmatmul.mubr.bf16.gmra.mrb[132].mxu0 %v9222_v15  ;;  %v9223_v62 = vpack.c.bf16 %v7908_v51, %v7890_v60  ;;  %v1696_v26 = vadd.f32 %v1695_v24, %v7019_v40  ;;  %v5080_v53 = vpop.eup %5079  ;;  %5091 = vpow2.f32 %v8066_v47  ;;  %v8154_v52 = vadd.f32 %v9224_v23, %v6298_v30  ;;  %v1699_v33 = vpop.f32.mrb[159].mxu1 }
 0x33e   : > { %v8157_v57 = vmul.f32 %v8021_v43, %v1694_v18  ;;  %v1698_v32 = vadd.f32 %v1697_v25, %v7011_v16  ;;  %v5082_v15 = vpop.eup %5081  ;;  %v8161_v60 = vmul.f32 %v5076_v36, %v7753_v22  ;;  %5093 = vpow2.f32 %v2130_v11 }
 0x33f   : > { %3402 = vmatprep.mubr.bf16.mxu0 %v9223_v62  ;;  %v8164_v51 = vmul.f32 %v8050_v4, %v1696_v26  ;;  %v1700_v47 = vadd.f32 %v1699_v33, %v7019_v40  ;;  %5095 = vrcp.f32 %v2271_v28  ;;  %v1899_v24 = vsub.f32 0.0, %v8138_v44  ;;  %v9225_v62 = vld [vmem:[#allocation129_spill] sm:$0xff]  ;;  %v9226_v28 = vld [vmem:[#allocation134_spill] sm:$0xff] }
 0x340   : > { %v8170_v43 = vadd.f32 %v9225_v62, %v9152_v38  ;;  %v8173_v18 = vmul.f32 %v8053_v59, %v1698_v32  ;;  %v8176_v25 = vmul.f32 %v5078_v1, %v7845_v27  ;;  %v2272_v22 = vadd.f32 1.0, %v5080_v53  ;;  %v9227_v27 = vld [vmem:[#allocation136_spill] sm:$0xff]  ;;  %v9228_v32 = vld [vmem:[#allocation138_spill] sm:$0xff] }
 0x341   : > { %5097 = vpow2.f32 %v8088_v61  ;;  %v8180_v4 = vmul.f32 %v8060_v17, %v1700_v47  ;;  %v5084_v11 = vpop.eup %5083  ;;  %v2273_v36 = vadd.f32 1.0, %v5082_v15  ;;  %v8184_v26 = vadd.f32 %v9226_v28, %v6298_v30 }
 0x342   : > { %5099 = vpow2.f32 %v2134_v41  ;;  %v2142_v23 = vmul.f32 1.442695, %v1898_v20  ;;  %v8190_v1 = vadd.f32 %v9227_v27, %v9152_v38  ;;  %v1703_v61 = vpop.f32.mrb[160].mxu1  ;;  %v1900_v41 = vsub.f32 0.0, %v8154_v52 }
 0x343   : > { %5101 = vpow2.f32 %v2136_v55  ;;  %v5086_v53 = vpop.eup %5085  ;;  %v8197_v33 = vadd.f32 %v9228_v32, %v6298_v30  ;;  %v9229_v55 = vpack.c.bf16 %v7898_v50, %v7883_v10  ;;  %v1704_v20 = vadd.f32 %v1703_v61, %v7011_v16  ;;  %v1705_v15 = vpop.f32.mrb[161].mxu1 }
 0x344   : > { %5103 = vpow2.f32 %v2138_v0  ;;  %v8204_v47 = vmul.f32 %v5084_v11, %v7860_v2  ;;  %v1901_v62 = vsub.f32 0.0, %v8170_v43  ;;  %v9230_v0 = vpack.c.bf16 %v7959_v48, %v7939_v3  ;;  %v1707_v27 = vpop.f32.mrb[162].mxu1 }
 0x345   : > { %3403 = vmatmul.mubr.bf16.gmra.mrb[136].mxu0 %v9229_v55  ;;  %5105 = vrcp.f32 %v2272_v22  ;;  %v1706_v28 = vadd.f32 %v1705_v15, %v7019_v40  ;;  %v5088_v32 = vpop.eup %5087  ;;  %v1902_v10 = vsub.f32 0.0, %v8184_v26  ;;  %v8213_v50 = vmul.f32 %v8110_v45, %v1704_v20  ;;  %v1709_v11 = vpop.f32.mrb[163].mxu1 }
 0x346   : > { %3412 = vmatprep.mubr.bf16.mxu0 %v9230_v0  ;;  %5107 = vrcp.f32 %v2273_v36  ;;  %v1708_v2 = vadd.f32 %v1707_v27, %v7011_v16  ;;  %v5090_v22 = vpop.eup %5089  ;;  %v2144_v61 = vmul.f32 1.442695, %v1899_v24  ;;  %v1903_v55 = vsub.f32 0.0, %v8190_v1  ;;  %v9231_v24 = vld [vmem:[#allocation140_spill] sm:$0xff] }
 0x347   : > { %v8218_v3 = vmul.f32 %v8113_v42, %v1706_v28  ;;  %v1710_v48 = vadd.f32 %v1709_v11, %v7019_v40  ;;  %v5092_v15 = vpop.eup %5091  ;;  %v2653_v36 = vmul.f32 %v5086_v53, %v7903_v19  ;;  %v2146_v0 = vmul.f32 1.442695, %v1900_v41 }
 0x348   : > { %v1904_v59 = vsub.f32 0.0, %v8197_v33  ;;  %v8224_v45 = vmul.f32 %v8127_v8, %v1708_v2  ;;  %v5094_v20 = vpop.eup %5093  ;;  %v2274_v27 = vadd.f32 1.0, %v5088_v32  ;;  %5109 = vpow2.f32 %v8144_v6 }
 0x349   : > { %v8229_v17 = vadd.f32 %v9231_v24, %v9152_v38  ;;  %v8232_v42 = vmul.f32 %v8132_v37, %v1710_v48  ;;  %v5096_v28 = vpop.eup %5095  ;;  %5111 = vpow2.f32 %v2142_v23  ;;  %v2148_v19 = vmul.f32 1.442695, %v1901_v62 }
 0x34a   : > { %v8234_v53 = vmul.f32 1.442695, %v1902_v10  ;;  %v2275_v2 = vadd.f32 1.0, %v5092_v15  ;;  %5113 = vpow2.f32 %v2144_v61  ;;  %v8238_v32 = vmul.f32 1.442695, %v1903_v55 }
 0x34b   : > { %v5098_v41 = vpop.eup %5097  ;;  %v1713_v6 = vpop.f32.mrb[164].mxu1  ;;  %v2276_v37 = vadd.f32 1.0, %v5094_v20  ;;  %5115 = vpow2.f32 %v2146_v0  ;;  %v8242_v48 = vmul.f32 1.442695, %v1904_v59  ;;  %v9232_v23 = vpack.c.bf16 %v7948_v56, %v7934_v14  ;;  %v9234_v14 = vld [vmem:[#allocation27_spill] sm:$0xff] }
 0x34c   : > { %v5100_v24 = vpop.eup %5099  ;;  %v1714_v62 = vadd.f32 %v1713_v6, %v7011_v16  ;;  %v1715_v10 = vpop.f32.mrb[165].mxu1  ;;  %v2654_v61 = vmul.f32 %v5090_v22, %v7944_v39  ;;  %5117 = vrcp.f32 %v2274_v27  ;;  %v1905_v55 = vsub.f32 0.0, %v8229_v17 }
 0x34d   : > { %3413 = vmatmul.mubr.bf16.gmra.mrb[140].mxu0 %v9232_v23  ;;  %v5102_v15 = vpop.eup %5101  ;;  %v9233_v8 = vpack.c.bf16 %v8010_v49, %v7995_v9  ;;  %v1716_v59 = vadd.f32 %v1715_v10, %v7019_v40  ;;  %v1717_v0 = vpop.f32.mrb[166].mxu1  ;;  %v2277_v11 = vadd.f32 1.0, %v5098_v41  ;;  %v8256_v56 = vadd.f32 %v9234_v14, %v6298_v30  ;;  %v9235_v10 = vld [vmem:[#allocation65_spill] sm:$0xff] }
 0x34e   : > { %v5104_v20 = vpop.eup %5103  ;;  %v8259_v6 = vmul.f32 %v8161_v60, %v1714_v62  ;;  %v1718_v39 = vadd.f32 %v1717_v0, %v7011_v16  ;;  %v1719_v22 = vpop.f32.mrb[167].mxu1  ;;  %5119 = vrcp.f32 %v2275_v2  ;;  %v2278_v23 = vadd.f32 1.0, %v5100_v24  ;;  %v9236_v2 = vld [vmem:[#allocation43_spill] sm:$0xff] }
 0x34f   : > { %3422 = vmatprep.mubr.bf16.mxu0 %v9233_v8  ;;  %v5106_v27 = vpop.eup %5105  ;;  %v8263_v9 = vmul.f32 %v8176_v25, %v1716_v59  ;;  %v1720_v49 = vadd.f32 %v1719_v22, %v7019_v40  ;;  %5121 = vrcp.f32 %v2276_v37  ;;  %v2279_v41 = vadd.f32 1.0, %v5102_v15  ;;  %v9237_v22 = vld [vmem:[#allocation96_spill] sm:$0xff] }
 0x350   : > { %v5108_v8 = vpop.eup %5107  ;;  %v8268_v14 = vadd.f32 %v9235_v10, %v9152_v38  ;;  %v8271_v60 = vmul.f32 %v8204_v47, %v1718_v39  ;;  %v2280_v62 = vadd.f32 1.0, %v5104_v20  ;;  %5123 = vpow2.f32 %v2148_v19  ;;  %v9238_v47 = vld [vmem:[#allocation98_spill] sm:$0xff] }
 0x351   : > { %v8275_v24 = vadd.f32 %v9236_v2, %v6298_v30  ;;  %v8277_v25 = vmul.f32 %v2653_v36, %v1720_v49  ;;  %v2655_v59 = vmul.f32 %v5096_v28, %v7952_v21  ;;  %5125 = vrcp.f32 %v2277_v11  ;;  %v9239_v21 = vld [vmem:[#allocation146_spill] sm:$0xff]  ;;  %v9240_v11 = vld [vmem:[#allocation104_spill] sm:$0xff] }
 0x352   : > { %v2156_v37 = vmul.f32 1.442695, %v1905_v55  ;;  %v5110_v0 = vpop.eup %5109  ;;  %v2656_v10 = vmul.f32 %v5106_v27, %v9237_v22  ;;  %v2657_v39 = vmul.f32 %v5108_v8, %v9238_v47  ;;  %5127 = vrcp.f32 %v2278_v23 }
 0x353   : > { %v1723_v19 = vpop.f32.mrb[168].mxu1  ;;  %v2985_v30 = vpack.c.bf16 %v8277_v25, %v8263_v9  ;;  %v5112_v20 = vpop.eup %5111  ;;  %5129 = vrcp.f32 %v2279_v41  ;;  %v1906_v36 = vsub.f32 0.0, %v8256_v56  ;;  %v8289_v28 = vadd.f32 %v9239_v21, %v9152_v38 }
 0x354   : > { %v9241_v55 = vpack.c.bf16 %v8003_v12, %v9240_v11  ;;  %v1724_v27 = vadd.f32 %v1723_v19, %v7011_v16  ;;  %v1725_v49 = vpop.f32.mrb[169].mxu1  ;;  %v5114_v23 = vpop.eup %5113  ;;  %5131 = vrcp.f32 %v2280_v62  ;;  %v1907_v8 = vsub.f32 0.0, %v8268_v14 }
 0x355   : > { %v1908_v2 = vsub.f32 0.0, %v8275_v24  ;;  %v9242_v41 = vpack.c.bf16 %v8064_v54, %v8046_v34  ;;  %v1726_v38 = vadd.f32 %v1725_v49, %v7019_v40  ;;  %v1727_v22 = vpop.f32.mrb[170].mxu1  ;;  %v5116_v47 = vpop.eup %5115  ;;  %v2281_v21 = vadd.f32 1.0, %v5110_v0 }
 0x356   : > { %3423 = vmatmul.mubr.bf16.gmra.mrb[144].mxu0 %v9241_v55  ;;  %5133 = vpow2.f32 %v8234_v53  ;;  %v8302_v12 = vmul.f32 %v2654_v61, %v1724_v27  ;;  %v1728_v19 = vadd.f32 %v1727_v22, %v7011_v16  ;;  %v1729_v62 = vpop.f32.mrb[171].mxu1  ;;  %v5118_v11 = vpop.eup %5117  ;;  %v2282_v55 = vadd.f32 1.0, %v5112_v20 }
 0x357   : > { %3432 = vmatprep.mubr.bf16.mxu0 %v9242_v41  ;;  %5135 = vpow2.f32 %v8238_v32  ;;  %v8306_v15 = vmul.f32 %v2655_v59, %v1726_v38  ;;  %v1730_v34 = vadd.f32 %v1729_v62, %v7019_v40  ;;  %v2283_v54 = vadd.f32 1.0, %v5114_v23 }
 0x358   : > { %5137 = vpow2.f32 %v8242_v48  ;;  %v1909_v0 = vsub.f32 0.0, %v8289_v28  ;;  %v8311_v49 = vmul.f32 %v2656_v10, %v1728_v19  ;;  %v5120_v53 = vpop.eup %5119  ;;  %v2284_v61 = vadd.f32 1.0, %v5116_v47  ;;  %v9243_v19 = vld [vmem:[#allocation106_spill] sm:$0xff] }
 0x359   : > { %5139 = vpow2.f32 %v2156_v37  ;;  %v8313_v27 = vmul.f32 %v2657_v39, %v1730_v34  ;;  %v5122_v41 = vpop.eup %5121  ;;  %v2158_v20 = vmul.f32 1.442695, %v1906_v36  ;;  %v2160_v23 = vmul.f32 1.442695, %v1907_v8  ;;  %v9244_v39 = vld [vmem:[#allocation114_spill] sm:$0xff] }
 0x35a   : > { %5141 = vrcp.f32 %v2281_v21  ;;  %v5124_v59 = vpop.eup %5123  ;;  %v2162_v38 = vmul.f32 1.442695, %v1908_v2  ;;  %v2658_v47 = vmul.f32 %v5118_v11, %v9243_v19  ;;  %v2164_v37 = vmul.f32 1.442695, %v1909_v0  ;;  %v9247_v2 = vld [vmem:[#allocation110_spill] sm:$0xff] }
 0x35b   : > { %5143 = vrcp.f32 %v2282_v55  ;;  %v1733_v48 = vpop.f32.mrb[172].mxu1  ;;  %v2987_v10 = vpack.c.bf16 %v8313_v27, %v8306_v15  ;;  %v5126_v22 = vpop.eup %5125  ;;  %v9245_v21 = vpack.c.bf16 %v8057_v58, %v9244_v39  ;;  %v9246_v55 = vld [vmem:[#allocation108_spill] sm:$0xff]  ;;  %v2660_v32 = vmul.f32 %v5122_v41, %v9247_v2  ;;  %v9249_v2 = vld [vmem:[#allocation117_spill] sm:$0xff] }
 0x35c   : > { %5145 = vrcp.f32 %v2283_v54  ;;  %v1734_v36 = vadd.f32 %v1733_v48, %v7011_v16  ;;  %v1735_v62 = vpop.f32.mrb[173].mxu1  ;;  %v5128_v34 = vpop.eup %5127  ;;  %v2659_v8 = vmul.f32 %v5120_v53, %v9246_v55  ;;  %v2285_v19 = vadd.f32 1.0, %v5124_v59  ;;  %v9248_v53 = vld [vmem:[#allocation112_spill] sm:$0xff] }
 0x35d   : > { %5147 = vrcp.f32 %v2284_v61  ;;  %v1736_v11 = vadd.f32 %v1735_v62, %v7019_v40  ;;  %v1737_v54 = vpop.f32.mrb[174].mxu1  ;;  %v5130_v0 = vpop.eup %5129  ;;  %v2661_v55 = vmul.f32 %v5126_v22, %v9248_v53  ;;  %v9251_v53 = vpack.c.bf16 %v8180_v4, %v8164_v51 }
 0x35e   : > { %3433 = vmatmul.mubr.bf16.gmra.mrb[148].mxu0 %v9245_v21  ;;  %5149 = vpow2.f32 %v2158_v20  ;;  %v8330_v58 = vmul.f32 %v2658_v47, %v1734_v36  ;;  %v1738_v48 = vadd.f32 %v1737_v54, %v7011_v16  ;;  %v1739_v39 = vpop.f32.mrb[175].mxu1  ;;  %v5132_v21 = vpop.eup %5131 }
 0x35f   : > { %3442 = vmatprep.mubr.bf16.mxu0 %v2979_v63  ;;  %5151 = vpow2.f32 %v2160_v23  ;;  %v8334_v61 = vmul.f32 %v2659_v8, %v1736_v11  ;;  %v1740_v46 = vadd.f32 %v1739_v39, %v7019_v40 }
 0x360   : > { %v5134_v13 = vpop.eup %5133  ;;  %5153 = vpow2.f32 %v2162_v38  ;;  %v8337_v63 = vmul.f32 %v2660_v32, %v1738_v48  ;;  %v2662_v38 = vmul.f32 %v5128_v34, %v9249_v2 }
 0x361   : > { %v5136_v41 = vpop.eup %5135  ;;  %5155 = vpow2.f32 %v2164_v37  ;;  %v8339_v20 = vmul.f32 %v2661_v55, %v1740_v46  ;;  %v2286_v22 = vadd.f32 1.0, %v5134_v13  ;;  %v9252_v13 = vld [vmem:[#allocation124_spill] sm:$0xff] }
 0x362   : > { %v5138_v59 = vpop.eup %5137  ;;  %5157 = vrcp.f32 %v2285_v19  ;;  %v2988_v47 = vpack.c.bf16 %v8337_v63, %v8330_v58  ;;  %v2287_v32 = vadd.f32 1.0, %v5136_v41  ;;  %v9250_v19 = vld [vmem:[#allocation120_spill] sm:$0xff]  ;;  %v2664_v41 = vmul.f32 %v5132_v21, %v9252_v13 }
 0x363   : > { %v5140_v36 = vpop.eup %5139  ;;  %v1743_v23 = vpop.f32.mrb[176].mxu1  ;;  %v2989_v62 = vpack.c.bf16 %v8339_v20, %v8334_v61  ;;  %v2663_v48 = vmul.f32 %v5130_v0, %v9250_v19  ;;  %v2288_v39 = vadd.f32 1.0, %v5138_v59  ;;  %5159 = vrcp.f32 %v2286_v22  ;;  %v2819_v61 = vld [vmem:[#allocation2 + $0x68] sm:$0xff]  ;;  %v2821_v58 = vld [vmem:[#allocation2 + $0x78] sm:$0xff] }
 0x364   : > { %v5142_v8 = vpop.eup %5141  ;;  %v1744_v37 = vadd.f32 %v1743_v23, %v7011_v16  ;;  %v1745_v11 = vpop.f32.mrb[177].mxu1  ;;  %v2289_v2 = vadd.f32 1.0, %v5140_v36  ;;  %5161 = vrcp.f32 %v2287_v32 }
 0x365   : > { %v5144_v54 = vpop.eup %5143  ;;  %v1746_v55 = vadd.f32 %v1745_v11, %v7019_v40  ;;  %v1747_v46 = vpop.f32.mrb[178].mxu1  ;;  %v2665_v0 = vmul.f32 %v5142_v8, %v8092_v35  ;;  %5163 = vrcp.f32 %v2288_v39  ;;  %v9253_v39 = vpack.c.bf16 %v8173_v18, %v8157_v57 }
 0x366   : > { %3443 = vmatmul.mubr.bf16.gmra.mrb[152].mxu0 %v2978_v29  ;;  %v5146_v34 = vpop.eup %5145  ;;  %v8356_v5 = vmul.f32 %v2662_v38, %v1744_v37  ;;  %v1748_v31 = vadd.f32 %v1747_v46, %v7011_v16  ;;  %v1749_v29 = vpop.f32.mrb[179].mxu1  ;;  %5165 = vrcp.f32 %v2289_v2  ;;  %v2666_v32 = vmul.f32 %v5144_v54, %v8121_v7 }
 0x367   : > { %3452 = vmatprep.mubr.bf16.mxu0 %v9251_v53  ;;  %v5148_v23 = vpop.eup %5147  ;;  %v8360_v59 = vmul.f32 %v2663_v48, %v1746_v55  ;;  %v1750_v51 = vadd.f32 %v1749_v29, %v7019_v40  ;;  %v2667_v13 = vmul.f32 %v5146_v34, %v8138_v44  ;;  %v9254_v2 = vpack.c.bf16 %v8232_v42, %v8218_v3  ;;  %v2806_v3 = vld [vmem:[#allocation2] sm:$0xff] }
 0x368   : > { %v5150_v4 = vpop.eup %5149  ;;  %v8363_v11 = vmul.f32 %v2664_v41, %v1748_v31  ;;  %v2668_v7 = vmul.f32 %v5148_v23, %v8154_v52  ;;  %v2807_v52 = vld [vmem:[#allocation2 + $0x8] sm:$0xff] }
 0x369   : > { %v5152_v19 = vpop.eup %5151  ;;  %v8365_v21 = vmul.f32 %v2665_v0, %v1750_v51  ;;  %v2290_v35 = vadd.f32 1.0, %v5150_v4 }
 0x36a   : > { %v5154_v36 = vpop.eup %5153  ;;  %v2990_v38 = vpack.c.bf16 %v8363_v11, %v8356_v5  ;;  %v2291_v53 = vadd.f32 1.0, %v5152_v19  ;;  %v2822_v5 = vld [vmem:[#allocation2 + $0x80] sm:$0xff]  ;;  %v2823_v11 = vld [vmem:[#allocation2 + $0x88] sm:$0xff] }
 0x36b   : > { %v5156_v37 = vpop.eup %5155  ;;  %v2991_v8 = vpack.c.bf16 %v8365_v21, %v8360_v59  ;;  %v2292_v41 = vadd.f32 1.0, %v5154_v36  ;;  %5167 = vrcp.f32 %v2290_v35 }
 0x36c   : > { %v5158_v48 = vpop.eup %5157  ;;  %v2293_v54 = vadd.f32 1.0, %v5156_v37  ;;  %5169 = vrcp.f32 %v2291_v53  ;;  %v2808_v37 = vld [vmem:[#allocation2 + $0x10] sm:$0xff] }
 0x36d   : > { %v1753_v22 = vpop.f32.mrb[180].mxu1  ;;  %v2669_v51 = vmul.f32 %v5158_v48, %v8170_v43  ;;  %v5160_v4 = vpop.eup %5159  ;;  %5171 = vrcp.f32 %v2292_v41 }
 0x36e   : > { %3453 = vmatmul.mubr.bf16.gmra.mrb[156].mxu0 %v9253_v39  ;;  %v1754_v55 = vadd.f32 %v1753_v22, %v7011_v16  ;;  %v1755_v46 = vpop.f32.mrb[181].mxu1  ;;  %v5162_v19 = vpop.eup %5161  ;;  %5173 = vrcp.f32 %v2293_v54 }
 0x36f   : > { %3462 = vmatprep.mubr.bf16.mxu0 %v9254_v2  ;;  %v1756_v31 = vadd.f32 %v1755_v46, %v7019_v40  ;;  %v1757_v29 = vpop.f32.mrb[182].mxu1  ;;  %v5164_v35 = vpop.eup %5163  ;;  %v2670_v46 = vmul.f32 %v5160_v4, %v8184_v26 }
 0x370   : > { %v8382_v0 = vmul.f32 %v2666_v32, %v1754_v55  ;;  %v1758_v57 = vadd.f32 %v1757_v29, %v7011_v16  ;;  %v1759_v18 = vpop.f32.mrb[183].mxu1  ;;  %v2809_v32 = vld [vmem:[#allocation2 + $0x18] sm:$0xff]  ;;  %v5166_v55 = vpop.eup %5165 }
 0x371   : > { %v8386_v44 = vmul.f32 %v2667_v13, %v1756_v31  ;;  %v1760_v34 = vadd.f32 %v1759_v18, %v7019_v40  ;;  %v9255_v13 = vpack.c.bf16 %v8224_v45, %v8213_v50  ;;  %v2672_v50 = vmul.f32 %v5164_v35, %v8197_v33 }
 0x372   : > { %v8389_v42 = vmul.f32 %v2668_v7, %v1758_v57  ;;  %v2671_v7 = vmul.f32 %v5162_v19, %v8190_v1  ;;  %v2673_v1 = vmul.f32 %v5166_v55, %v8229_v17 }
 0x373   : > { %v8391_v23 = vmul.f32 %v2669_v51, %v1760_v34 }
 0x374   : > { %v2992_v43 = vpack.c.bf16 %v8389_v42, %v8382_v0  ;;  %v2826_v0 = vld [vmem:[#allocation2 + $0xa0] sm:$0xff]  ;;  %v2827_v42 = vld [vmem:[#allocation2 + $0xa8] sm:$0xff] }
 0x375   : > { %v3224_v36 = vpop.f32.mrb[64].mxu0  ;;  %v1763_v53 = vpop.f32.mrb[184].mxu1  ;;  %v2993_v39 = vpack.c.bf16 %v8391_v23, %v8386_v44  ;;  %v2824_v44 = vld [vmem:[#allocation2 + $0x90] sm:$0xff] }
 0x376   : > { %v3543_v22 = vadd.f32 %v3224_v36, %v2806_v3  ;;  %v3226_v48 = vpop.f32.mrb[65].mxu0  ;;  %3463 = vmatmul.mubr.bf16.gmra.mrb[160].mxu0 %v9255_v13  ;;  %v1764_v31 = vadd.f32 %v1763_v53, %v7011_v16  ;;  %v1765_v29 = vpop.f32.mrb[185].mxu1  ;;  %v2811_v53 = vld [vmem:[#allocation2 + $0x28] sm:$0xff] }
 0x377   : > { %v3544_v41 = vadd.f32 %v3226_v48, %v2807_v52  ;;  %v3228_v2 = vpop.f32.mrb[66].mxu0  ;;  %3472 = vmatprep.mubr.bf16.mxu0 %v2985_v30  ;;  %v1766_v26 = vadd.f32 %v1765_v29, %v7019_v40  ;;  %v1767_v18 = vpop.f32.mrb[186].mxu1 }
 0x378   : > { %3671 = vst [vmem:[#allocation2] sm:$0xff] %v3543_v22  ;;  %v3545_v54 = vadd.f32 %v3228_v2, %v2808_v37  ;;  %v3230_v57 = vpop.f32.mrb[67].mxu0  ;;  %v8408_v51 = vmul.f32 %v2670_v46, %v1764_v31  ;;  %v1768_v34 = vadd.f32 %v1767_v18, %v7011_v16  ;;  %v1769_v3 = vpop.f32.mrb[187].mxu1  ;;  %v2810_v37 = vld [vmem:[#allocation2 + $0x20] sm:$0xff]  ;;  %v2812_v2 = vld [vmem:[#allocation2 + $0x30] sm:$0xff] }
 0x379   : > { %3672 = vst [vmem:[#allocation2 + $0x8] sm:$0xff] %v3544_v41  ;;  %v3546_v45 = vadd.f32 %v3230_v57, %v2809_v32  ;;  %v8412_v9 = vmul.f32 %v2671_v7, %v1766_v26  ;;  %v1770_v25 = vadd.f32 %v1769_v3, %v7019_v40  ;;  %v5168_v4 = vpop.eup %5167  ;;  %v9256_v32 = vpack.c.bf16 %v8271_v60, %v8259_v6  ;;  %v2813_v60 = vld [vmem:[#allocation2 + $0x38] sm:$0xff] }
 0x37a   : > { %3673 = vst [vmem:[#allocation2 + $0x10] sm:$0xff] %v3545_v54  ;;  %v8415_v30 = vmul.f32 %v2672_v50, %v1768_v34  ;;  %v5170_v33 = vpop.eup %5169  ;;  %v2674_v48 = vmul.f32 %v5168_v4, %v8256_v56 }
 0x37b   : > { %3674 = vst [vmem:[#allocation2 + $0x18] sm:$0xff] %v3546_v45  ;;  %v8417_v52 = vmul.f32 %v2673_v1, %v1770_v25  ;;  %v5172_v36 = vpop.eup %5171  ;;  %v2675_v13 = vmul.f32 %v5170_v33, %v8268_v14  ;;  %v9257_v1 = vpack.c.bf16 %v8311_v49, %v8302_v12  ;;  %v2815_v25 = vld [vmem:[#allocation2 + $0x48] sm:$0xff]  ;;  %v2816_v33 = vld [vmem:[#allocation2 + $0x50] sm:$0xff]  ;;  %v2818_v49 = vld [vmem:[#allocation2 + $0x60] sm:$0xff] }
 0x37c   : > { %v2994_v19 = vpack.c.bf16 %v8415_v30, %v8408_v51  ;;  %v5174_v22 = vpop.eup %5173  ;;  %v2676_v56 = vmul.f32 %v5172_v36, %v8275_v24  ;;  %v2830_v30 = vld [vmem:[#allocation2 + $0xc0] sm:$0xff] }
 0x37d   : > { %v1773_v35 = vpop.f32.mrb[188].mxu1  ;;  %v2995_v17 = vpack.c.bf16 %v8417_v52, %v8412_v9  ;;  %v2677_v14 = vmul.f32 %v5174_v22, %v8289_v28  ;;  %v2828_v9 = vld [vmem:[#allocation2 + $0xb0] sm:$0xff] }
 0x37e   : > { %3473 = vmatmul.mubr.bf16.gmra.mrb[164].mxu0 %v9256_v32  ;;  %v1774_v55 = vadd.f32 %v1773_v35, %v7011_v16  ;;  %v1775_v46 = vpop.f32.mrb[189].mxu1  ;;  %v3234_v41 = vpop.f32.mrb[68].mxu0  ;;  %v2817_v35 = vld [vmem:[#allocation2 + $0x58] sm:$0xff] }
 0x37f   : > { %3482 = vmatprep.mubr.bf16.mxu0 %v2987_v10  ;;  %v1776_v31 = vadd.f32 %v1775_v46, %v7019_v40  ;;  %v1777_v29 = vpop.f32.mrb[190].mxu1  ;;  %v3547_v7 = vadd.f32 %v3234_v41, %v2810_v37  ;;  %v3236_v6 = vpop.f32.mrb[69].mxu0 }
 0x380   : > { %v8434_v54 = vmul.f32 %v2674_v48, %v1774_v55  ;;  %v1778_v57 = vadd.f32 %v1777_v29, %v7011_v16  ;;  %v1779_v26 = vpop.f32.mrb[191].mxu1  ;;  %v3548_v18 = vadd.f32 %v3236_v6, %v2811_v53  ;;  %v3238_v15 = vpop.f32.mrb[70].mxu0 }
 0x381   : > { %v8438_v27 = vmul.f32 %v2675_v13, %v1776_v31  ;;  %v1780_v10 = vadd.f32 %v1779_v26, %v7019_v40  ;;  %3675 = vst [vmem:[#allocation2 + $0x20] sm:$0xff] %v3547_v7  ;;  %v3549_v50 = vadd.f32 %v3238_v15, %v2812_v2  ;;  %v3240_v45 = vpop.f32.mrb[71].mxu0  ;;  %v2814_v40 = vld [vmem:[#allocation2 + $0x40] sm:$0xff]  ;;  %v2825_v13 = vld [vmem:[#allocation2 + $0x98] sm:$0xff] }
 0x382   : > { %v8441_v24 = vmul.f32 %v2676_v56, %v1778_v57  ;;  %3676 = vst [vmem:[#allocation2 + $0x28] sm:$0xff] %v3548_v18  ;;  %v3550_v34 = vadd.f32 %v3240_v45, %v2813_v60  ;;  %v2829_v7 = vld [vmem:[#allocation2 + $0xb8] sm:$0xff]  ;;  %v2832_v18 = vld [vmem:[#allocation2 + $0xd0] sm:$0xff] }
 0x383   : > { %v2805_v3 = vmul.f32 %v2677_v14, %v1780_v10  ;;  %3677 = vst [vmem:[#allocation2 + $0x30] sm:$0xff] %v3549_v50  ;;  %v2833_v10 = vld [vmem:[#allocation2 + $0xd8] sm:$0xff] }
 0x384   : > { %v2996_v16 = vpack.c.bf16 %v8441_v24, %v8434_v54  ;;  %3678 = vst [vmem:[#allocation2 + $0x38] sm:$0xff] %v3550_v34 }
 0x385   : > { %v2997_v28 = vpack.c.bf16 %v2805_v3, %v8438_v27  ;;  %v2834_v3 = vld [vmem:[#allocation2 + $0xe0] sm:$0xff] }
 0x386   : > { %3483 = vmatmul.mubr.bf16.gmra.mrb[168].mxu0 %v9257_v1  ;;  %v2836_v1 = vld [vmem:[#allocation2 + $0xf0] sm:$0xff] }
 0x387   : > { %3492 = vmatprep.mubr.bf16.mxu0 %v2989_v62  ;;  %v2820_v62 = vld [vmem:[#allocation2 + $0x70] sm:$0xff] }
 0x389   : > { %v3244_v4 = vpop.f32.mrb[72].mxu0 }
 0x38a   : > { %v3551_v36 = vadd.f32 %v3244_v4, %v2814_v40  ;;  %v3246_v37 = vpop.f32.mrb[73].mxu0  ;;  %v2837_v4 = vld [vmem:[#allocation2 + $0xf8] sm:$0xff] }
 0x38b   : > { %v3552_v22 = vadd.f32 %v3246_v37, %v2815_v25  ;;  %v3248_v48 = vpop.f32.mrb[74].mxu0 }
 0x38c   : > { %3679 = vst [vmem:[#allocation2 + $0x40] sm:$0xff] %v3551_v36  ;;  %v3553_v32 = vadd.f32 %v3248_v48, %v2816_v33  ;;  %v3250_v53 = vpop.f32.mrb[75].mxu0  ;;  %v2838_v48 = vld [vmem:[#allocation2 + $0x100] sm:$0xff] }
 0x38d   : > { %3680 = vst [vmem:[#allocation2 + $0x48] sm:$0xff] %v3552_v22  ;;  %v3554_v12 = vadd.f32 %v3250_v53, %v2817_v35 }
 0x38e   : > { %3493 = vmatmul.mubr.bf16.gmra.mrb[172].mxu0 %v2988_v47  ;;  %3681 = vst [vmem:[#allocation2 + $0x50] sm:$0xff] %v3553_v32  ;;  %v2839_v32 = vld [vmem:[#allocation2 + $0x108] sm:$0xff] }
 0x38f   : > { %3502 = vmatprep.mubr.bf16.mxu0 %v2991_v8  ;;  %3682 = vst [vmem:[#allocation2 + $0x58] sm:$0xff] %v3554_v12  ;;  %v2840_v12 = vld [vmem:[#allocation2 + $0x110] sm:$0xff] }
 0x394   : > { %v3254_v20 = vpop.f32.mrb[76].mxu0 }
 0x395   : > { %v3555_v55 = vadd.f32 %v3254_v20, %v2818_v49  ;;  %v3256_v46 = vpop.f32.mrb[77].mxu0  ;;  %v2841_v20 = vld [vmem:[#allocation2 + $0x118] sm:$0xff] }
 0x396   : > { %3503 = vmatmul.mubr.bf16.gmra.mrb[176].mxu0 %v2990_v38  ;;  %v3556_v63 = vadd.f32 %v3256_v46, %v2819_v61  ;;  %v3258_v47 = vpop.f32.mrb[78].mxu0 }
 0x397   : > { %3512 = vmatprep.mubr.bf16.mxu0 %v2993_v39  ;;  %3683 = vst [vmem:[#allocation2 + $0x60] sm:$0xff] %v3555_v55  ;;  %v3557_v59 = vadd.f32 %v3258_v47, %v2820_v62  ;;  %v3260_v21 = vpop.f32.mrb[79].mxu0  ;;  %v2842_v47 = vld [vmem:[#allocation2 + $0x120] sm:$0xff] }
 0x398   : > { %3684 = vst [vmem:[#allocation2 + $0x68] sm:$0xff] %v3556_v63  ;;  %v3558_v8 = vadd.f32 %v3260_v21, %v2821_v58 }
 0x399   : > { %3685 = vst [vmem:[#allocation2 + $0x70] sm:$0xff] %v3557_v59  ;;  %v2843_v59 = vld [vmem:[#allocation2 + $0x128] sm:$0xff] }
 0x39a   : > { %3686 = vst [vmem:[#allocation2 + $0x78] sm:$0xff] %v3558_v8  ;;  %v2844_v8 = vld [vmem:[#allocation2 + $0x130] sm:$0xff] }
 0x39e   : > { %3513 = vmatmul.mubr.bf16.gmra.mrb[180].mxu0 %v2992_v43 }
 0x39f   : > { %3522 = vmatprep.mubr.bf16.mxu0 %v2995_v17  ;;  %v3264_v38 = vpop.f32.mrb[80].mxu0 }
 0x3a0   : > { %v3559_v23 = vadd.f32 %v3264_v38, %v2822_v5  ;;  %v3266_v39 = vpop.f32.mrb[81].mxu0  ;;  %v2845_v38 = vld [vmem:[#allocation2 + $0x138] sm:$0xff] }
 0x3a1   : > { %v3560_v41 = vadd.f32 %v3266_v39, %v2823_v11  ;;  %v3268_v2 = vpop.f32.mrb[82].mxu0 }
 0x3a2   : > { %3687 = vst [vmem:[#allocation2 + $0x80] sm:$0xff] %v3559_v23  ;;  %v3561_v31 = vadd.f32 %v3268_v2, %v2824_v44  ;;  %v3270_v29 = vpop.f32.mrb[83].mxu0  ;;  %v2846_v2 = vld [vmem:[#allocation2 + $0x140] sm:$0xff] }
 0x3a3   : > { %3688 = vst [vmem:[#allocation2 + $0x88] sm:$0xff] %v3560_v41  ;;  %v3562_v56 = vadd.f32 %v3270_v29, %v2825_v13 }
 0x3a4   : > { %3689 = vst [vmem:[#allocation2 + $0x90] sm:$0xff] %v3561_v31  ;;  %v2847_v31 = vld [vmem:[#allocation2 + $0x148] sm:$0xff] }
 0x3a5   : > { %3690 = vst [vmem:[#allocation2 + $0x98] sm:$0xff] %v3562_v56  ;;  %v2848_v56 = vld [vmem:[#allocation2 + $0x150] sm:$0xff] }
 0x3a6   : > { %3523 = vmatmul.mubr.bf16.gmra.mrb[184].mxu0 %v2994_v19  ;;  %v2831_v19 = vld [vmem:[#allocation2 + $0xc8] sm:$0xff] }
 0x3a7   : > { %3532 = vmatprep.mubr.bf16.mxu0 %v2997_v28 }
 0x3aa   : > { %v3274_v43 = vpop.f32.mrb[84].mxu0 }
 0x3ab   : > { %v3563_v52 = vadd.f32 %v3274_v43, %v2826_v0  ;;  %v3276_v17 = vpop.f32.mrb[85].mxu0  ;;  %v2849_v43 = vld [vmem:[#allocation2 + $0x158] sm:$0xff] }
 0x3ac   : > { %v3564_v6 = vadd.f32 %v3276_v17, %v2827_v42  ;;  %v3278_v60 = vpop.f32.mrb[86].mxu0 }
 0x3ad   : > { %3691 = vst [vmem:[#allocation2 + $0xa0] sm:$0xff] %v3563_v52  ;;  %v3565_v57 = vadd.f32 %v3278_v60, %v2828_v9  ;;  %v3280_v26 = vpop.f32.mrb[87].mxu0  ;;  %v2850_v60 = vld [vmem:[#allocation2 + $0x160] sm:$0xff] }
 0x3ae   : > { %3533 = vmatmul.mubr.bf16.gmra.mrb[188].mxu0 %v2996_v16  ;;  %3692 = vst [vmem:[#allocation2 + $0xa8] sm:$0xff] %v3564_v6  ;;  %v3566_v51 = vadd.f32 %v3280_v26, %v2829_v7  ;;  %v2835_v16 = vld [vmem:[#allocation2 + $0xe8] sm:$0xff] }
 0x3af   : > { %3693 = vst [vmem:[#allocation2 + $0xb0] sm:$0xff] %v3565_v57  ;;  %v2851_v57 = vld [vmem:[#allocation2 + $0x168] sm:$0xff] }
 0x3b0   : > { %3694 = vst [vmem:[#allocation2 + $0xb8] sm:$0xff] %v3566_v51  ;;  %v2852_v51 = vld [vmem:[#allocation2 + $0x170] sm:$0xff] }
 0x3b5   : > { %v3284_v14 = vpop.f32.mrb[88].mxu0 }
 0x3b6   : > { %v3567_v15 = vadd.f32 %v3284_v14, %v2830_v30  ;;  %v3286_v27 = vpop.f32.mrb[89].mxu0  ;;  %v2853_v14 = vld [vmem:[#allocation2 + $0x178] sm:$0xff] }
 0x3b7   : > { %v3568_v50 = vadd.f32 %v3286_v27, %v2831_v19  ;;  %v3288_v45 = vpop.f32.mrb[90].mxu0 }
 0x3b8   : > { %3695 = vst [vmem:[#allocation2 + $0xc0] sm:$0xff] %v3567_v15  ;;  %v3569_v34 = vadd.f32 %v3288_v45, %v2832_v18  ;;  %v3290_v54 = vpop.f32.mrb[91].mxu0  ;;  %v2854_v45 = vld [vmem:[#allocation2 + $0x180] sm:$0xff] }
 0x3b9   : > { %3696 = vst [vmem:[#allocation2 + $0xc8] sm:$0xff] %v3568_v50  ;;  %v3570_v24 = vadd.f32 %v3290_v54, %v2833_v10 }
 0x3ba   : > { %3697 = vst [vmem:[#allocation2 + $0xd0] sm:$0xff] %v3569_v34  ;;  %v2855_v34 = vld [vmem:[#allocation2 + $0x188] sm:$0xff] }
 0x3bb   : > { %3698 = vst [vmem:[#allocation2 + $0xd8] sm:$0xff] %v3570_v24  ;;  %v2856_v24 = vld [vmem:[#allocation2 + $0x190] sm:$0xff] }
 0x3bf   : > { %v3294_v28 = vpop.f32.mrb[92].mxu0 }
 0x3c0   : > { %v3571_v40 = vadd.f32 %v3294_v28, %v2834_v3  ;;  %v3296_v25 = vpop.f32.mrb[93].mxu0  ;;  %v2857_v28 = vld [vmem:[#allocation2 + $0x198] sm:$0xff] }
 0x3c1   : > { %v3572_v33 = vadd.f32 %v3296_v25, %v2835_v16  ;;  %v3298_v36 = vpop.f32.mrb[94].mxu0 }
 0x3c2   : > { %3699 = vst [vmem:[#allocation2 + $0xe0] sm:$0xff] %v3571_v40  ;;  %v3573_v37 = vadd.f32 %v3298_v36, %v2836_v1  ;;  %v3300_v35 = vpop.f32.mrb[95].mxu0  ;;  %v2858_v36 = vld [vmem:[#allocation2 + $0x1a0] sm:$0xff] }
 0x3c3   : > { %3700 = vst [vmem:[#allocation2 + $0xe8] sm:$0xff] %v3572_v33  ;;  %v3574_v22 = vadd.f32 %v3300_v35, %v2837_v4 }
 0x3c4   : > { %3701 = vst [vmem:[#allocation2 + $0xf0] sm:$0xff] %v3573_v37  ;;  %v2859_v37 = vld [vmem:[#allocation2 + $0x1a8] sm:$0xff] }
 0x3c5   : > { %3702 = vst [vmem:[#allocation2 + $0xf8] sm:$0xff] %v3574_v22  ;;  %v2860_v22 = vld [vmem:[#allocation2 + $0x1b0] sm:$0xff] }
 0x3c7   : > { %v3304_v53 = vpop.f32.mrb[96].mxu0 }
 0x3c8   : > { %v3575_v49 = vadd.f32 %v3304_v53, %v2838_v48  ;;  %v3306_v61 = vpop.f32.mrb[97].mxu0  ;;  %v2861_v53 = vld [vmem:[#allocation2 + $0x1b8] sm:$0xff] }
 0x3c9   : > { %v3576_v62 = vadd.f32 %v3306_v61, %v2839_v32  ;;  %v3308_v55 = vpop.f32.mrb[98].mxu0 }
 0x3ca   : > { %3703 = vst [vmem:[#allocation2 + $0x100] sm:$0xff] %v3575_v49  ;;  %v3577_v46 = vadd.f32 %v3308_v55, %v2840_v12  ;;  %v3310_v58 = vpop.f32.mrb[99].mxu0  ;;  %v2862_v55 = vld [vmem:[#allocation2 + $0x1c0] sm:$0xff] }
 0x3cb   : > { %3704 = vst [vmem:[#allocation2 + $0x108] sm:$0xff] %v3576_v62  ;;  %v3578_v63 = vadd.f32 %v3310_v58, %v2841_v20 }
 0x3cc   : > { %3705 = vst [vmem:[#allocation2 + $0x110] sm:$0xff] %v3577_v46  ;;  %v2863_v46 = vld [vmem:[#allocation2 + $0x1c8] sm:$0xff] }
 0x3cd   : > { %3706 = vst [vmem:[#allocation2 + $0x118] sm:$0xff] %v3578_v63  ;;  %v2864_v63 = vld [vmem:[#allocation2 + $0x1d0] sm:$0xff] }
 0x3cf   : > { %v3314_v21 = vpop.f32.mrb[100].mxu0 }
 0x3d0   : > { %v3579_v5 = vadd.f32 %v3314_v21, %v2842_v47  ;;  %v3316_v11 = vpop.f32.mrb[101].mxu0  ;;  %v2865_v21 = vld [vmem:[#allocation2 + $0x1d8] sm:$0xff] }
 0x3d1   : > { %v3580_v44 = vadd.f32 %v3316_v11, %v2843_v59  ;;  %v3318_v23 = vpop.f32.mrb[102].mxu0 }
 0x3d2   : > { %3707 = vst [vmem:[#allocation2 + $0x120] sm:$0xff] %v3579_v5  ;;  %v3581_v39 = vadd.f32 %v3318_v23, %v2844_v8  ;;  %v3320_v13 = vpop.f32.mrb[103].mxu0  ;;  %v2866_v23 = vld [vmem:[#allocation2 + $0x1e0] sm:$0xff] }
 0x3d3   : > { %3708 = vst [vmem:[#allocation2 + $0x128] sm:$0xff] %v3580_v44  ;;  %v3582_v41 = vadd.f32 %v3320_v13, %v2845_v38 }
 0x3d4   : > { %3709 = vst [vmem:[#allocation2 + $0x130] sm:$0xff] %v3581_v39  ;;  %v2867_v39 = vld [vmem:[#allocation2 + $0x1e8] sm:$0xff] }
 0x3d5   : > { %3710 = vst [vmem:[#allocation2 + $0x138] sm:$0xff] %v3582_v41  ;;  %v2868_v41 = vld [vmem:[#allocation2 + $0x1f0] sm:$0xff] }
 0x3d7   : > { %v3324_v29 = vpop.f32.mrb[104].mxu0 }
 0x3d8   : > { %v3583_v0 = vadd.f32 %v3324_v29, %v2846_v2  ;;  %v3326_v42 = vpop.f32.mrb[105].mxu0  ;;  %v2869_v29 = vld [vmem:[#allocation2 + $0x1f8] sm:$0xff] }
 0x3d9   : > { %v3584_v9 = vadd.f32 %v3326_v42, %v2847_v31  ;;  %v3328_v52 = vpop.f32.mrb[106].mxu0 }
 0x3da   : > { %3711 = vst [vmem:[#allocation2 + $0x140] sm:$0xff] %v3583_v0  ;;  %v3585_v17 = vadd.f32 %v3328_v52, %v2848_v56  ;;  %v3330_v7 = vpop.f32.mrb[107].mxu0  ;;  %v2870_v52 = vld [vmem:[#allocation2 + $0x200] sm:$0xff] }
 0x3db   : > { %3712 = vst [vmem:[#allocation2 + $0x148] sm:$0xff] %v3584_v9  ;;  %v3586_v6 = vadd.f32 %v3330_v7, %v2849_v43 }
 0x3dc   : > { %3713 = vst [vmem:[#allocation2 + $0x150] sm:$0xff] %v3585_v17  ;;  %v2871_v17 = vld [vmem:[#allocation2 + $0x208] sm:$0xff] }
 0x3dd   : > { %3714 = vst [vmem:[#allocation2 + $0x158] sm:$0xff] %v3586_v6  ;;  %v2872_v6 = vld [vmem:[#allocation2 + $0x210] sm:$0xff] }
 0x3df   : > { %v3334_v26 = vpop.f32.mrb[108].mxu0 }
 0x3e0   : > { %v3587_v30 = vadd.f32 %v3334_v26, %v2850_v60  ;;  %v3336_v19 = vpop.f32.mrb[109].mxu0  ;;  %v2873_v26 = vld [vmem:[#allocation2 + $0x218] sm:$0xff] }
 0x3e1   : > { %v3588_v18 = vadd.f32 %v3336_v19, %v2851_v57  ;;  %v3338_v15 = vpop.f32.mrb[110].mxu0 }
 0x3e2   : > { %3715 = vst [vmem:[#allocation2 + $0x160] sm:$0xff] %v3587_v30  ;;  %v3589_v27 = vadd.f32 %v3338_v15, %v2852_v51  ;;  %v3340_v10 = vpop.f32.mrb[111].mxu0  ;;  %v2874_v15 = vld [vmem:[#allocation2 + $0x220] sm:$0xff] }
 0x3e3   : > { %3716 = vst [vmem:[#allocation2 + $0x168] sm:$0xff] %v3588_v18  ;;  %v3590_v50 = vadd.f32 %v3340_v10, %v2853_v14 }
 0x3e4   : > { %3717 = vst [vmem:[#allocation2 + $0x170] sm:$0xff] %v3589_v27  ;;  %v2875_v27 = vld [vmem:[#allocation2 + $0x228] sm:$0xff] }
 0x3e5   : > { %3718 = vst [vmem:[#allocation2 + $0x178] sm:$0xff] %v3590_v50  ;;  %v2876_v50 = vld [vmem:[#allocation2 + $0x230] sm:$0xff] }
 0x3e7   : > { %v3344_v54 = vpop.f32.mrb[112].mxu0 }
 0x3e8   : > { %v3591_v3 = vadd.f32 %v3344_v54, %v2854_v45  ;;  %v3346_v16 = vpop.f32.mrb[113].mxu0  ;;  %v2877_v54 = vld [vmem:[#allocation2 + $0x238] sm:$0xff] }
 0x3e9   : > { %v3592_v1 = vadd.f32 %v3346_v16, %v2855_v34  ;;  %v3348_v40 = vpop.f32.mrb[114].mxu0 }
 0x3ea   : > { %3719 = vst [vmem:[#allocation2 + $0x180] sm:$0xff] %v3591_v3  ;;  %v3593_v25 = vadd.f32 %v3348_v40, %v2856_v24  ;;  %v3350_v4 = vpop.f32.mrb[115].mxu0  ;;  %v2878_v40 = vld [vmem:[#allocation2 + $0x240] sm:$0xff] }
 0x3eb   : > { %3720 = vst [vmem:[#allocation2 + $0x188] sm:$0xff] %v3592_v1  ;;  %v3594_v33 = vadd.f32 %v3350_v4, %v2857_v28 }
 0x3ec   : > { %3721 = vst [vmem:[#allocation2 + $0x190] sm:$0xff] %v3593_v25  ;;  %v2879_v25 = vld [vmem:[#allocation2 + $0x248] sm:$0xff] }
 0x3ed   : > { %3722 = vst [vmem:[#allocation2 + $0x198] sm:$0xff] %v3594_v33  ;;  %v2880_v33 = vld [vmem:[#allocation2 + $0x250] sm:$0xff] }
 0x3ef   : > { %v3354_v35 = vpop.f32.mrb[116].mxu0 }
 0x3f0   : > { %v3595_v48 = vadd.f32 %v3354_v35, %v2858_v36  ;;  %v3356_v32 = vpop.f32.mrb[117].mxu0  ;;  %v2881_v35 = vld [vmem:[#allocation2 + $0x258] sm:$0xff] }
 0x3f1   : > { %v3596_v12 = vadd.f32 %v3356_v32, %v2859_v37  ;;  %v3358_v49 = vpop.f32.mrb[118].mxu0 }
 0x3f2   : > { %3723 = vst [vmem:[#allocation2 + $0x1a0] sm:$0xff] %v3595_v48  ;;  %v3597_v61 = vadd.f32 %v3358_v49, %v2860_v22  ;;  %v3360_v20 = vpop.f32.mrb[119].mxu0  ;;  %v2882_v49 = vld [vmem:[#allocation2 + $0x260] sm:$0xff] }
 0x3f3   : > { %3724 = vst [vmem:[#allocation2 + $0x1a8] sm:$0xff] %v3596_v12  ;;  %v3598_v62 = vadd.f32 %v3360_v20, %v2861_v53 }
 0x3f4   : > { %3725 = vst [vmem:[#allocation2 + $0x1b0] sm:$0xff] %v3597_v61  ;;  %v2883_v61 = vld [vmem:[#allocation2 + $0x268] sm:$0xff] }
 0x3f5   : > { %3726 = vst [vmem:[#allocation2 + $0x1b8] sm:$0xff] %v3598_v62  ;;  %v2884_v62 = vld [vmem:[#allocation2 + $0x270] sm:$0xff] }
 0x3f7   : > { %v3364_v58 = vpop.f32.mrb[120].mxu0 }
 0x3f8   : > { %v3599_v47 = vadd.f32 %v3364_v58, %v2862_v55  ;;  %v3366_v59 = vpop.f32.mrb[121].mxu0  ;;  %v2885_v58 = vld [vmem:[#allocation2 + $0x278] sm:$0xff] }
 0x3f9   : > { %v3600_v8 = vadd.f32 %v3366_v59, %v2863_v46  ;;  %v3368_v5 = vpop.f32.mrb[122].mxu0 }
 0x3fa   : > { %3727 = vst [vmem:[#allocation2 + $0x1c0] sm:$0xff] %v3599_v47  ;;  %v3601_v11 = vadd.f32 %v3368_v5, %v2864_v63  ;;  %v3370_v38 = vpop.f32.mrb[123].mxu0  ;;  %v2886_v5 = vld [vmem:[#allocation2 + $0x280] sm:$0xff] }
 0x3fb   : > { %3728 = vst [vmem:[#allocation2 + $0x1c8] sm:$0xff] %v3600_v8  ;;  %v3602_v44 = vadd.f32 %v3370_v38, %v2865_v21 }
 0x3fc   : > { %3729 = vst [vmem:[#allocation2 + $0x1d0] sm:$0xff] %v3601_v11  ;;  %v2887_v11 = vld [vmem:[#allocation2 + $0x288] sm:$0xff] }
 0x3fd   : > { %3730 = vst [vmem:[#allocation2 + $0x1d8] sm:$0xff] %v3602_v44  ;;  %v2888_v44 = vld [vmem:[#allocation2 + $0x290] sm:$0xff] }
 0x400   : > { %v3374_v13 = vpop.f32.mrb[124].mxu0 }
 0x401   : > { %v3603_v2 = vadd.f32 %v3374_v13, %v2866_v23  ;;  %v3376_v31 = vpop.f32.mrb[125].mxu0  ;;  %v2889_v13 = vld [vmem:[#allocation2 + $0x298] sm:$0xff] }
 0x402   : > { %v3604_v56 = vadd.f32 %v3376_v31, %v2867_v39  ;;  %v3378_v0 = vpop.f32.mrb[126].mxu0 }
 0x403   : > { %3731 = vst [vmem:[#allocation2 + $0x1e0] sm:$0xff] %v3603_v2  ;;  %v3605_v42 = vadd.f32 %v3378_v0, %v2868_v41  ;;  %v3380_v43 = vpop.f32.mrb[127].mxu0  ;;  %v2890_v0 = vld [vmem:[#allocation2 + $0x2a0] sm:$0xff] }
 0x404   : > { %3732 = vst [vmem:[#allocation2 + $0x1e8] sm:$0xff] %v3604_v56  ;;  %v3606_v9 = vadd.f32 %v3380_v43, %v2869_v29 }
 0x405   : > { %3733 = vst [vmem:[#allocation2 + $0x1f0] sm:$0xff] %v3605_v42  ;;  %v2891_v42 = vld [vmem:[#allocation2 + $0x2a8] sm:$0xff] }
 0x406   : > { %3734 = vst [vmem:[#allocation2 + $0x1f8] sm:$0xff] %v3606_v9  ;;  %v2892_v9 = vld [vmem:[#allocation2 + $0x2b0] sm:$0xff] }
 0x408   : > { %v3384_v7 = vpop.f32.mrb[128].mxu0 }
 0x409   : > { %v3607_v60 = vadd.f32 %v3384_v7, %v2870_v52  ;;  %v3386_v57 = vpop.f32.mrb[129].mxu0  ;;  %v2893_v7 = vld [vmem:[#allocation2 + $0x2b8] sm:$0xff] }
 0x40a   : > { %v3608_v51 = vadd.f32 %v3386_v57, %v2871_v17  ;;  %v3388_v30 = vpop.f32.mrb[130].mxu0 }
 0x40b   : > { %3735 = vst [vmem:[#allocation2 + $0x200] sm:$0xff] %v3607_v60  ;;  %v3609_v19 = vadd.f32 %v3388_v30, %v2872_v6  ;;  %v3390_v14 = vpop.f32.mrb[131].mxu0  ;;  %v2894_v30 = vld [vmem:[#allocation2 + $0x2c0] sm:$0xff] }
 0x40c   : > { %3736 = vst [vmem:[#allocation2 + $0x208] sm:$0xff] %v3608_v51  ;;  %v3610_v18 = vadd.f32 %v3390_v14, %v2873_v26 }
 0x40d   : > { %3737 = vst [vmem:[#allocation2 + $0x210] sm:$0xff] %v3609_v19  ;;  %v2895_v19 = vld [vmem:[#allocation2 + $0x2c8] sm:$0xff] }
 0x40e   : > { %3738 = vst [vmem:[#allocation2 + $0x218] sm:$0xff] %v3610_v18  ;;  %v2896_v18 = vld [vmem:[#allocation2 + $0x2d0] sm:$0xff] }
 0x410   : > { %v3394_v10 = vpop.f32.mrb[132].mxu0 }
 0x411   : > { %v3611_v45 = vadd.f32 %v3394_v10, %v2874_v15  ;;  %v3396_v34 = vpop.f32.mrb[133].mxu0  ;;  %v2897_v10 = vld [vmem:[#allocation2 + $0x2d8] sm:$0xff] }
 0x412   : > { %v3612_v24 = vadd.f32 %v3396_v34, %v2875_v27  ;;  %v3398_v3 = vpop.f32.mrb[134].mxu0 }
 0x413   : > { %3739 = vst [vmem:[#allocation2 + $0x220] sm:$0xff] %v3611_v45  ;;  %v3613_v16 = vadd.f32 %v3398_v3, %v2876_v50  ;;  %v3400_v28 = vpop.f32.mrb[135].mxu0  ;;  %v2898_v3 = vld [vmem:[#allocation2 + $0x2e0] sm:$0xff] }
 0x414   : > { %3740 = vst [vmem:[#allocation2 + $0x228] sm:$0xff] %v3612_v24  ;;  %v3614_v1 = vadd.f32 %v3400_v28, %v2877_v54 }
 0x415   : > { %3741 = vst [vmem:[#allocation2 + $0x230] sm:$0xff] %v3613_v16  ;;  %v2899_v16 = vld [vmem:[#allocation2 + $0x2e8] sm:$0xff] }
 0x416   : > { %3742 = vst [vmem:[#allocation2 + $0x238] sm:$0xff] %v3614_v1  ;;  %v2900_v1 = vld [vmem:[#allocation2 + $0x2f0] sm:$0xff] }
 0x418   : > { %v3404_v4 = vpop.f32.mrb[136].mxu0 }
 0x419   : > { %v3615_v36 = vadd.f32 %v3404_v4, %v2878_v40  ;;  %v3406_v37 = vpop.f32.mrb[137].mxu0  ;;  %v2901_v4 = vld [vmem:[#allocation2 + $0x2f8] sm:$0xff] }
 0x41a   : > { %v3616_v22 = vadd.f32 %v3406_v37, %v2879_v25  ;;  %v3408_v48 = vpop.f32.mrb[138].mxu0 }
 0x41b   : > { %3743 = vst [vmem:[#allocation2 + $0x240] sm:$0xff] %v3615_v36  ;;  %v3617_v32 = vadd.f32 %v3408_v48, %v2880_v33  ;;  %v3410_v53 = vpop.f32.mrb[139].mxu0  ;;  %v2902_v48 = vld [vmem:[#allocation2 + $0x300] sm:$0xff] }
 0x41c   : > { %3744 = vst [vmem:[#allocation2 + $0x248] sm:$0xff] %v3616_v22  ;;  %v3618_v12 = vadd.f32 %v3410_v53, %v2881_v35 }
 0x41d   : > { %3745 = vst [vmem:[#allocation2 + $0x250] sm:$0xff] %v3617_v32  ;;  %v2903_v32 = vld [vmem:[#allocation2 + $0x308] sm:$0xff] }
 0x41e   : > { %3746 = vst [vmem:[#allocation2 + $0x258] sm:$0xff] %v3618_v12  ;;  %v2904_v12 = vld [vmem:[#allocation2 + $0x310] sm:$0xff] }
 0x420   : > { %v3414_v20 = vpop.f32.mrb[140].mxu0 }
 0x421   : > { %v3619_v55 = vadd.f32 %v3414_v20, %v2882_v49  ;;  %v3416_v46 = vpop.f32.mrb[141].mxu0  ;;  %v2905_v20 = vld [vmem:[#allocation2 + $0x318] sm:$0xff] }
 0x422   : > { %v3620_v63 = vadd.f32 %v3416_v46, %v2883_v61  ;;  %v3418_v47 = vpop.f32.mrb[142].mxu0 }
 0x423   : > { %3747 = vst [vmem:[#allocation2 + $0x260] sm:$0xff] %v3619_v55  ;;  %v3621_v59 = vadd.f32 %v3418_v47, %v2884_v62  ;;  %v3420_v21 = vpop.f32.mrb[143].mxu0  ;;  %v2906_v47 = vld [vmem:[#allocation2 + $0x320] sm:$0xff] }
 0x424   : > { %3748 = vst [vmem:[#allocation2 + $0x268] sm:$0xff] %v3620_v63  ;;  %v3622_v8 = vadd.f32 %v3420_v21, %v2885_v58 }
 0x425   : > { %3749 = vst [vmem:[#allocation2 + $0x270] sm:$0xff] %v3621_v59  ;;  %v2907_v59 = vld [vmem:[#allocation2 + $0x328] sm:$0xff] }
 0x426   : > { %3750 = vst [vmem:[#allocation2 + $0x278] sm:$0xff] %v3622_v8  ;;  %v2908_v8 = vld [vmem:[#allocation2 + $0x330] sm:$0xff] }
 0x429   : > { %v3424_v38 = vpop.f32.mrb[144].mxu0 }
 0x42a   : > { %v3623_v23 = vadd.f32 %v3424_v38, %v2886_v5  ;;  %v3426_v39 = vpop.f32.mrb[145].mxu0  ;;  %v2909_v38 = vld [vmem:[#allocation2 + $0x338] sm:$0xff] }
 0x42b   : > { %v3624_v41 = vadd.f32 %v3426_v39, %v2887_v11  ;;  %v3428_v2 = vpop.f32.mrb[146].mxu0 }
 0x42c   : > { %3751 = vst [vmem:[#allocation2 + $0x280] sm:$0xff] %v3623_v23  ;;  %v3625_v31 = vadd.f32 %v3428_v2, %v2888_v44  ;;  %v3430_v29 = vpop.f32.mrb[147].mxu0  ;;  %v2910_v2 = vld [vmem:[#allocation2 + $0x340] sm:$0xff] }
 0x42d   : > { %3752 = vst [vmem:[#allocation2 + $0x288] sm:$0xff] %v3624_v41  ;;  %v3626_v56 = vadd.f32 %v3430_v29, %v2889_v13 }
 0x42e   : > { %3753 = vst [vmem:[#allocation2 + $0x290] sm:$0xff] %v3625_v31  ;;  %v2911_v31 = vld [vmem:[#allocation2 + $0x348] sm:$0xff] }
 0x42f   : > { %3754 = vst [vmem:[#allocation2 + $0x298] sm:$0xff] %v3626_v56  ;;  %v2912_v56 = vld [vmem:[#allocation2 + $0x350] sm:$0xff] }
 0x431   : > { %v3434_v43 = vpop.f32.mrb[148].mxu0 }
 0x432   : > { %v3627_v52 = vadd.f32 %v3434_v43, %v2890_v0  ;;  %v3436_v17 = vpop.f32.mrb[149].mxu0  ;;  %v2913_v43 = vld [vmem:[#allocation2 + $0x358] sm:$0xff] }
 0x433   : > { %v3628_v6 = vadd.f32 %v3436_v17, %v2891_v42  ;;  %v3438_v60 = vpop.f32.mrb[150].mxu0 }
 0x434   : > { %3755 = vst [vmem:[#allocation2 + $0x2a0] sm:$0xff] %v3627_v52  ;;  %v3629_v57 = vadd.f32 %v3438_v60, %v2892_v9  ;;  %v3440_v26 = vpop.f32.mrb[151].mxu0  ;;  %v2914_v60 = vld [vmem:[#allocation2 + $0x360] sm:$0xff] }
 0x435   : > { %3756 = vst [vmem:[#allocation2 + $0x2a8] sm:$0xff] %v3628_v6  ;;  %v3630_v51 = vadd.f32 %v3440_v26, %v2893_v7 }
 0x436   : > { %3757 = vst [vmem:[#allocation2 + $0x2b0] sm:$0xff] %v3629_v57  ;;  %v2915_v57 = vld [vmem:[#allocation2 + $0x368] sm:$0xff] }
 0x437   : > { %3758 = vst [vmem:[#allocation2 + $0x2b8] sm:$0xff] %v3630_v51  ;;  %v2916_v51 = vld [vmem:[#allocation2 + $0x370] sm:$0xff] }
 0x439   : > { %v3444_v14 = vpop.f32.mrb[152].mxu0 }
 0x43a   : > { %v3631_v15 = vadd.f32 %v3444_v14, %v2894_v30  ;;  %v3446_v27 = vpop.f32.mrb[153].mxu0  ;;  %v2917_v14 = vld [vmem:[#allocation2 + $0x378] sm:$0xff] }
 0x43b   : > { %v3632_v50 = vadd.f32 %v3446_v27, %v2895_v19  ;;  %v3448_v45 = vpop.f32.mrb[154].mxu0 }
 0x43c   : > { %3759 = vst [vmem:[#allocation2 + $0x2c0] sm:$0xff] %v3631_v15  ;;  %v3633_v34 = vadd.f32 %v3448_v45, %v2896_v18  ;;  %v3450_v54 = vpop.f32.mrb[155].mxu0  ;;  %v2918_v45 = vld [vmem:[#allocation2 + $0x380] sm:$0xff] }
 0x43d   : > { %3760 = vst [vmem:[#allocation2 + $0x2c8] sm:$0xff] %v3632_v50  ;;  %v3634_v24 = vadd.f32 %v3450_v54, %v2897_v10 }
 0x43e   : > { %3761 = vst [vmem:[#allocation2 + $0x2d0] sm:$0xff] %v3633_v34  ;;  %v2919_v34 = vld [vmem:[#allocation2 + $0x388] sm:$0xff] }
 0x43f   : > { %3762 = vst [vmem:[#allocation2 + $0x2d8] sm:$0xff] %v3634_v24  ;;  %v2920_v24 = vld [vmem:[#allocation2 + $0x390] sm:$0xff] }
 0x441   : > { %v3454_v28 = vpop.f32.mrb[156].mxu0 }
 0x442   : > { %v3635_v40 = vadd.f32 %v3454_v28, %v2898_v3  ;;  %v3456_v25 = vpop.f32.mrb[157].mxu0  ;;  %v2921_v28 = vld [vmem:[#allocation2 + $0x398] sm:$0xff] }
 0x443   : > { %v3636_v33 = vadd.f32 %v3456_v25, %v2899_v16  ;;  %v3458_v36 = vpop.f32.mrb[158].mxu0 }
 0x444   : > { %3763 = vst [vmem:[#allocation2 + $0x2e0] sm:$0xff] %v3635_v40  ;;  %v3637_v37 = vadd.f32 %v3458_v36, %v2900_v1  ;;  %v3460_v35 = vpop.f32.mrb[159].mxu0  ;;  %v2922_v36 = vld [vmem:[#allocation2 + $0x3a0] sm:$0xff] }
 0x445   : > { %3764 = vst [vmem:[#allocation2 + $0x2e8] sm:$0xff] %v3636_v33  ;;  %v3638_v22 = vadd.f32 %v3460_v35, %v2901_v4 }
 0x446   : > { %3765 = vst [vmem:[#allocation2 + $0x2f0] sm:$0xff] %v3637_v37  ;;  %v2923_v37 = vld [vmem:[#allocation2 + $0x3a8] sm:$0xff] }
 0x447   : > { %3766 = vst [vmem:[#allocation2 + $0x2f8] sm:$0xff] %v3638_v22  ;;  %v2924_v22 = vld [vmem:[#allocation2 + $0x3b0] sm:$0xff] }
 0x449   : > { %v3464_v53 = vpop.f32.mrb[160].mxu0 }
 0x44a   : > { %v3639_v49 = vadd.f32 %v3464_v53, %v2902_v48  ;;  %v3466_v61 = vpop.f32.mrb[161].mxu0  ;;  %v2925_v53 = vld [vmem:[#allocation2 + $0x3b8] sm:$0xff] }
 0x44b   : > { %v3640_v62 = vadd.f32 %v3466_v61, %v2903_v32  ;;  %v3468_v55 = vpop.f32.mrb[162].mxu0 }
 0x44c   : > { %3767 = vst [vmem:[#allocation2 + $0x300] sm:$0xff] %v3639_v49  ;;  %v3641_v46 = vadd.f32 %v3468_v55, %v2904_v12  ;;  %v3470_v58 = vpop.f32.mrb[163].mxu0  ;;  %v2926_v55 = vld [vmem:[#allocation2 + $0x3c0] sm:$0xff] }
 0x44d   : > { %3768 = vst [vmem:[#allocation2 + $0x308] sm:$0xff] %v3640_v62  ;;  %v3642_v63 = vadd.f32 %v3470_v58, %v2905_v20 }
 0x44e   : > { %3769 = vst [vmem:[#allocation2 + $0x310] sm:$0xff] %v3641_v46  ;;  %v2927_v46 = vld [vmem:[#allocation2 + $0x3c8] sm:$0xff] }
 0x44f   : > { %3770 = vst [vmem:[#allocation2 + $0x318] sm:$0xff] %v3642_v63  ;;  %v2928_v63 = vld [vmem:[#allocation2 + $0x3d0] sm:$0xff] }
 0x451   : > { %v3474_v21 = vpop.f32.mrb[164].mxu0 }
 0x452   : > { %v3643_v5 = vadd.f32 %v3474_v21, %v2906_v47  ;;  %v3476_v11 = vpop.f32.mrb[165].mxu0  ;;  %v2929_v21 = vld [vmem:[#allocation2 + $0x3d8] sm:$0xff] }
 0x453   : > { %v3644_v44 = vadd.f32 %v3476_v11, %v2907_v59  ;;  %v3478_v23 = vpop.f32.mrb[166].mxu0 }
 0x454   : > { %3771 = vst [vmem:[#allocation2 + $0x320] sm:$0xff] %v3643_v5  ;;  %v3645_v39 = vadd.f32 %v3478_v23, %v2908_v8  ;;  %v3480_v13 = vpop.f32.mrb[167].mxu0  ;;  %v2930_v23 = vld [vmem:[#allocation2 + $0x3e0] sm:$0xff] }
 0x455   : > { %3772 = vst [vmem:[#allocation2 + $0x328] sm:$0xff] %v3644_v44  ;;  %v3646_v41 = vadd.f32 %v3480_v13, %v2909_v38 }
 0x456   : > { %3773 = vst [vmem:[#allocation2 + $0x330] sm:$0xff] %v3645_v39  ;;  %v2931_v39 = vld [vmem:[#allocation2 + $0x3e8] sm:$0xff] }
 0x457   : > { %3774 = vst [vmem:[#allocation2 + $0x338] sm:$0xff] %v3646_v41  ;;  %v2932_v41 = vld [vmem:[#allocation2 + $0x3f0] sm:$0xff] }
 0x459   : > { %v3484_v29 = vpop.f32.mrb[168].mxu0 }
 0x45a   : > { %v3647_v0 = vadd.f32 %v3484_v29, %v2910_v2  ;;  %v3486_v42 = vpop.f32.mrb[169].mxu0  ;;  %v2933_v29 = vld [vmem:[#allocation2 + $0x3f8] sm:$0xff] }
 0x45b   : > { %v3648_v9 = vadd.f32 %v3486_v42, %v2911_v31  ;;  %v3488_v52 = vpop.f32.mrb[170].mxu0 }
 0x45c   : > { %3775 = vst [vmem:[#allocation2 + $0x340] sm:$0xff] %v3647_v0  ;;  %v3649_v17 = vadd.f32 %v3488_v52, %v2912_v56  ;;  %v3490_v7 = vpop.f32.mrb[171].mxu0  ;;  %v3803_v52 = vld [vmem:[#allocation2] sm:$0xff] (!%p4345_p13) }
 0x45d   : > { %3776 = vst [vmem:[#allocation2 + $0x348] sm:$0xff] %v3648_v9  ;;  %v3650_v6 = vadd.f32 %v3490_v7, %v2913_v43  ;;  %v3805_v7 = vld [vmem:[#allocation2 + $0x10] sm:$0xff] (!%p4345_p13)  ;;  %3931 = vst [vmem:[%s5767_s14] sm:$0xff] (!%p4345_p13), %v3803_v52  ;;  %v3867_v52 = vld [vmem:[#allocation2 + $0x200] sm:$0xff] (!%p4345_p13) }
 0x45e   : > { %3777 = vst [vmem:[#allocation2 + $0x350] sm:$0xff] %v3649_v17  ;;  %v3804_v17 = vld [vmem:[#allocation2 + $0x8] sm:$0xff] (!%p4345_p13)  ;;  %3933 = vst [vmem:[%s5767_s14 + $0x10] sm:$0xff] (!%p4345_p13), %v3805_v7  ;;  %v3869_v7 = vld [vmem:[#allocation2 + $0x210] sm:$0xff] (!%p4345_p13) }
 0x45f   : > { %3778 = vst [vmem:[#allocation2 + $0x358] sm:$0xff] %v3650_v6  ;;  %3932 = vst [vmem:[%s5767_s14 + $0x8] sm:$0xff] (!%p4345_p13), %v3804_v17  ;;  %v3806_v6 = vld [vmem:[#allocation2 + $0x18] sm:$0xff] (!%p4345_p13)  ;;  %v3868_v17 = vld [vmem:[#allocation2 + $0x208] sm:$0xff] (!%p4345_p13) }
 0x460   : > { %3934 = vst [vmem:[%s5767_s14 + $0x18] sm:$0xff] (!%p4345_p13), %v3806_v6  ;;  %3995 = vst [vmem:[%s5767_s14 + $0x200] sm:$0xff] (!%p4345_p13), %v3867_v52  ;;  %v3870_v6 = vld [vmem:[#allocation2 + $0x218] sm:$0xff] (!%p4345_p13) }
 0x461   : > { %v3494_v26 = vpop.f32.mrb[172].mxu0  ;;  %3996 = vst [vmem:[%s5767_s14 + $0x208] sm:$0xff] (!%p4345_p13), %v3868_v17  ;;  %3997 = vst [vmem:[%s5767_s14 + $0x210] sm:$0xff] (!%p4345_p13), %v3869_v7 }
 0x462   : > { %v3651_v30 = vadd.f32 %v3494_v26, %v2914_v60  ;;  %v3496_v19 = vpop.f32.mrb[173].mxu0  ;;  %v3807_v60 = vld [vmem:[#allocation2 + $0x20] sm:$0xff] (!%p4345_p13)  ;;  %v3809_v26 = vld [vmem:[#allocation2 + $0x30] sm:$0xff] (!%p4345_p13)  ;;  %3998 = vst [vmem:[%s5767_s14 + $0x218] sm:$0xff] (!%p4345_p13), %v3870_v6 }
 0x463   : > { %v3652_v18 = vadd.f32 %v3496_v19, %v2915_v57  ;;  %v3498_v15 = vpop.f32.mrb[174].mxu0  ;;  %v3808_v57 = vld [vmem:[#allocation2 + $0x28] sm:$0xff] (!%p4345_p13)  ;;  %3935 = vst [vmem:[%s5767_s14 + $0x20] sm:$0xff] (!%p4345_p13), %v3807_v60  ;;  %3937 = vst [vmem:[%s5767_s14 + $0x30] sm:$0xff] (!%p4345_p13), %v3809_v26  ;;  %v3871_v60 = vld [vmem:[#allocation2 + $0x220] sm:$0xff] (!%p4345_p13) }
 0x464   : > { %3779 = vst [vmem:[#allocation2 + $0x360] sm:$0xff] %v3651_v30  ;;  %v3653_v27 = vadd.f32 %v3498_v15, %v2916_v51  ;;  %v3500_v10 = vpop.f32.mrb[175].mxu0  ;;  %3936 = vst [vmem:[%s5767_s14 + $0x28] sm:$0xff] (!%p4345_p13), %v3808_v57  ;;  %v3810_v51 = vld [vmem:[#allocation2 + $0x38] sm:$0xff] (!%p4345_p13)  ;;  %v3811_v30 = vld [vmem:[#allocation2 + $0x40] sm:$0xff] (!%p4345_p13) }
 0x465   : > { %3780 = vst [vmem:[#allocation2 + $0x368] sm:$0xff] %v3652_v18  ;;  %v3654_v50 = vadd.f32 %v3500_v10, %v2917_v14  ;;  %3938 = vst [vmem:[%s5767_s14 + $0x38] sm:$0xff] (!%p4345_p13), %v3810_v51  ;;  %v3812_v19 = vld [vmem:[#allocation2 + $0x48] sm:$0xff] (!%p4345_p13)  ;;  %v3813_v14 = vld [vmem:[#allocation2 + $0x50] sm:$0xff] (!%p4345_p13) }
 0x466   : > { %3781 = vst [vmem:[#allocation2 + $0x370] sm:$0xff] %v3653_v27  ;;  %3939 = vst [vmem:[%s5767_s14 + $0x40] sm:$0xff] (!%p4345_p13), %v3811_v30  ;;  %v3814_v18 = vld [vmem:[#allocation2 + $0x58] sm:$0xff] (!%p4345_p13)  ;;  %v3815_v15 = vld [vmem:[#allocation2 + $0x60] sm:$0xff] (!%p4345_p13) }
 0x467   : > { %3782 = vst [vmem:[#allocation2 + $0x378] sm:$0xff] %v3654_v50  ;;  %3940 = vst [vmem:[%s5767_s14 + $0x48] sm:$0xff] (!%p4345_p13), %v3812_v19  ;;  %v3816_v27 = vld [vmem:[#allocation2 + $0x68] sm:$0xff] (!%p4345_p13)  ;;  %v3817_v10 = vld [vmem:[#allocation2 + $0x70] sm:$0xff] (!%p4345_p13) }
 0x468   : > { %3941 = vst [vmem:[%s5767_s14 + $0x50] sm:$0xff] (!%p4345_p13), %v3813_v14  ;;  %3942 = vst [vmem:[%s5767_s14 + $0x58] sm:$0xff] (!%p4345_p13), %v3814_v18  ;;  %v3818_v50 = vld [vmem:[#allocation2 + $0x78] sm:$0xff] (!%p4345_p13)  ;;  %v3872_v57 = vld [vmem:[#allocation2 + $0x228] sm:$0xff] (!%p4345_p13) }
 0x469   : > { %v3504_v54 = vpop.f32.mrb[176].mxu0  ;;  %3943 = vst [vmem:[%s5767_s14 + $0x60] sm:$0xff] (!%p4345_p13), %v3815_v15  ;;  %3944 = vst [vmem:[%s5767_s14 + $0x68] sm:$0xff] (!%p4345_p13), %v3816_v27  ;;  %v3873_v26 = vld [vmem:[#allocation2 + $0x230] sm:$0xff] (!%p4345_p13)  ;;  %v3874_v51 = vld [vmem:[#allocation2 + $0x238] sm:$0xff] (!%p4345_p13) }
 0x46a   : > { %v3655_v3 = vadd.f32 %v3504_v54, %v2918_v45  ;;  %v3506_v16 = vpop.f32.mrb[177].mxu0  ;;  %3945 = vst [vmem:[%s5767_s14 + $0x70] sm:$0xff] (!%p4345_p13), %v3817_v10  ;;  %v3819_v45 = vld [vmem:[#allocation2 + $0x80] sm:$0xff] (!%p4345_p13)  ;;  %3946 = vst [vmem:[%s5767_s14 + $0x78] sm:$0xff] (!%p4345_p13), %v3818_v50  ;;  %v3821_v54 = vld [vmem:[#allocation2 + $0x90] sm:$0xff] (!%p4345_p13) }
 0x46b   : > { %v3656_v1 = vadd.f32 %v3506_v16, %v2919_v34  ;;  %v3508_v40 = vpop.f32.mrb[178].mxu0  ;;  %v3820_v34 = vld [vmem:[#allocation2 + $0x88] sm:$0xff] (!%p4345_p13)  ;;  %3947 = vst [vmem:[%s5767_s14 + $0x80] sm:$0xff] (!%p4345_p13), %v3819_v45  ;;  %3949 = vst [vmem:[%s5767_s14 + $0x90] sm:$0xff] (!%p4345_p13), %v3821_v54  ;;  %v3875_v30 = vld [vmem:[#allocation2 + $0x240] sm:$0xff] (!%p4345_p13) }
 0x46c   : > { %3783 = vst [vmem:[#allocation2 + $0x380] sm:$0xff] %v3655_v3  ;;  %v3657_v25 = vadd.f32 %v3508_v40, %v2920_v24  ;;  %v3510_v4 = vpop.f32.mrb[179].mxu0  ;;  %3948 = vst [vmem:[%s5767_s14 + $0x88] sm:$0xff] (!%p4345_p13), %v3820_v34  ;;  %v3822_v24 = vld [vmem:[#allocation2 + $0x98] sm:$0xff] (!%p4345_p13)  ;;  %v3823_v3 = vld [vmem:[#allocation2 + $0xa0] sm:$0xff] (!%p4345_p13) }
 0x46d   : > { %3784 = vst [vmem:[#allocation2 + $0x388] sm:$0xff] %v3656_v1  ;;  %v3658_v33 = vadd.f32 %v3510_v4, %v2921_v28  ;;  %3950 = vst [vmem:[%s5767_s14 + $0x98] sm:$0xff] (!%p4345_p13), %v3822_v24  ;;  %v3824_v16 = vld [vmem:[#allocation2 + $0xa8] sm:$0xff] (!%p4345_p13)  ;;  %v3825_v28 = vld [vmem:[#allocation2 + $0xb0] sm:$0xff] (!%p4345_p13) }
 0x46e   : > { %3785 = vst [vmem:[#allocation2 + $0x390] sm:$0xff] %v3657_v25  ;;  %3951 = vst [vmem:[%s5767_s14 + $0xa0] sm:$0xff] (!%p4345_p13), %v3823_v3  ;;  %v3826_v1 = vld [vmem:[#allocation2 + $0xb8] sm:$0xff] (!%p4345_p13)  ;;  %v3827_v40 = vld [vmem:[#allocation2 + $0xc0] sm:$0xff] (!%p4345_p13) }
 0x46f   : > { %3786 = vst [vmem:[#allocation2 + $0x398] sm:$0xff] %v3658_v33  ;;  %3952 = vst [vmem:[%s5767_s14 + $0xa8] sm:$0xff] (!%p4345_p13), %v3824_v16  ;;  %v3828_v25 = vld [vmem:[#allocation2 + $0xc8] sm:$0xff] (!%p4345_p13)  ;;  %v3829_v4 = vld [vmem:[#allocation2 + $0xd0] sm:$0xff] (!%p4345_p13) }
 0x470   : > { %3953 = vst [vmem:[%s5767_s14 + $0xb0] sm:$0xff] (!%p4345_p13), %v3825_v28  ;;  %3954 = vst [vmem:[%s5767_s14 + $0xb8] sm:$0xff] (!%p4345_p13), %v3826_v1  ;;  %v3830_v33 = vld [vmem:[#allocation2 + $0xd8] sm:$0xff] (!%p4345_p13)  ;;  %v3876_v19 = vld [vmem:[#allocation2 + $0x248] sm:$0xff] (!%p4345_p13) }
 0x471   : > { %v3514_v35 = vpop.f32.mrb[180].mxu0  ;;  %3955 = vst [vmem:[%s5767_s14 + $0xc0] sm:$0xff] (!%p4345_p13), %v3827_v40  ;;  %3956 = vst [vmem:[%s5767_s14 + $0xc8] sm:$0xff] (!%p4345_p13), %v3828_v25  ;;  %v3877_v14 = vld [vmem:[#allocation2 + $0x250] sm:$0xff] (!%p4345_p13)  ;;  %v3878_v18 = vld [vmem:[#allocation2 + $0x258] sm:$0xff] (!%p4345_p13) }
 0x472   : > { %v3659_v48 = vadd.f32 %v3514_v35, %v2922_v36  ;;  %v3516_v32 = vpop.f32.mrb[181].mxu0  ;;  %3957 = vst [vmem:[%s5767_s14 + $0xd0] sm:$0xff] (!%p4345_p13), %v3829_v4  ;;  %v3831_v36 = vld [vmem:[#allocation2 + $0xe0] sm:$0xff] (!%p4345_p13)  ;;  %3958 = vst [vmem:[%s5767_s14 + $0xd8] sm:$0xff] (!%p4345_p13), %v3830_v33  ;;  %v3833_v35 = vld [vmem:[#allocation2 + $0xf0] sm:$0xff] (!%p4345_p13) }
 0x473   : > { %v3660_v12 = vadd.f32 %v3516_v32, %v2923_v37  ;;  %v3518_v49 = vpop.f32.mrb[182].mxu0  ;;  %v3832_v37 = vld [vmem:[#allocation2 + $0xe8] sm:$0xff] (!%p4345_p13)  ;;  %3959 = vst [vmem:[%s5767_s14 + $0xe0] sm:$0xff] (!%p4345_p13), %v3831_v36  ;;  %3961 = vst [vmem:[%s5767_s14 + $0xf0] sm:$0xff] (!%p4345_p13), %v3833_v35  ;;  %v3879_v15 = vld [vmem:[#allocation2 + $0x260] sm:$0xff] (!%p4345_p13) }
 0x474   : > { %3787 = vst [vmem:[#allocation2 + $0x3a0] sm:$0xff] %v3659_v48  ;;  %v3661_v61 = vadd.f32 %v3518_v49, %v2924_v22  ;;  %v3520_v20 = vpop.f32.mrb[183].mxu0  ;;  %3960 = vst [vmem:[%s5767_s14 + $0xe8] sm:$0xff] (!%p4345_p13), %v3832_v37  ;;  %v3834_v22 = vld [vmem:[#allocation2 + $0xf8] sm:$0xff] (!%p4345_p13)  ;;  %v3835_v48 = vld [vmem:[#allocation2 + $0x100] sm:$0xff] (!%p4345_p13) }
 0x475   : > { %3788 = vst [vmem:[#allocation2 + $0x3a8] sm:$0xff] %v3660_v12  ;;  %v3662_v62 = vadd.f32 %v3520_v20, %v2925_v53  ;;  %3962 = vst [vmem:[%s5767_s14 + $0xf8] sm:$0xff] (!%p4345_p13), %v3834_v22  ;;  %v3836_v32 = vld [vmem:[#allocation2 + $0x108] sm:$0xff] (!%p4345_p13)  ;;  %v3837_v53 = vld [vmem:[#allocation2 + $0x110] sm:$0xff] (!%p4345_p13) }
 0x476   : > { %3789 = vst [vmem:[#allocation2 + $0x3b0] sm:$0xff] %v3661_v61  ;;  %3963 = vst [vmem:[%s5767_s14 + $0x100] sm:$0xff] (!%p4345_p13), %v3835_v48  ;;  %v3838_v12 = vld [vmem:[#allocation2 + $0x118] sm:$0xff] (!%p4345_p13)  ;;  %v3839_v49 = vld [vmem:[#allocation2 + $0x120] sm:$0xff] (!%p4345_p13) }
 0x477   : > { %3790 = vst [vmem:[#allocation2 + $0x3b8] sm:$0xff] %v3662_v62  ;;  %3964 = vst [vmem:[%s5767_s14 + $0x108] sm:$0xff] (!%p4345_p13), %v3836_v32  ;;  %v3840_v61 = vld [vmem:[#allocation2 + $0x128] sm:$0xff] (!%p4345_p13)  ;;  %v3841_v20 = vld [vmem:[#allocation2 + $0x130] sm:$0xff] (!%p4345_p13) }
 0x478   : > { %3965 = vst [vmem:[%s5767_s14 + $0x110] sm:$0xff] (!%p4345_p13), %v3837_v53  ;;  %3966 = vst [vmem:[%s5767_s14 + $0x118] sm:$0xff] (!%p4345_p13), %v3838_v12  ;;  %v3842_v62 = vld [vmem:[#allocation2 + $0x138] sm:$0xff] (!%p4345_p13)  ;;  %v3880_v27 = vld [vmem:[#allocation2 + $0x268] sm:$0xff] (!%p4345_p13) }
 0x479   : > { %v3524_v58 = vpop.f32.mrb[184].mxu0  ;;  %3967 = vst [vmem:[%s5767_s14 + $0x120] sm:$0xff] (!%p4345_p13), %v3839_v49  ;;  %3968 = vst [vmem:[%s5767_s14 + $0x128] sm:$0xff] (!%p4345_p13), %v3840_v61  ;;  %v3881_v10 = vld [vmem:[#allocation2 + $0x270] sm:$0xff] (!%p4345_p13)  ;;  %v3882_v50 = vld [vmem:[#allocation2 + $0x278] sm:$0xff] (!%p4345_p13) }
 0x47a   : > { %v3663_v47 = vadd.f32 %v3524_v58, %v2926_v55  ;;  %v3526_v59 = vpop.f32.mrb[185].mxu0  ;;  %3969 = vst [vmem:[%s5767_s14 + $0x130] sm:$0xff] (!%p4345_p13), %v3841_v20  ;;  %v3843_v55 = vld [vmem:[#allocation2 + $0x140] sm:$0xff] (!%p4345_p13)  ;;  %3970 = vst [vmem:[%s5767_s14 + $0x138] sm:$0xff] (!%p4345_p13), %v3842_v62  ;;  %v3845_v58 = vld [vmem:[#allocation2 + $0x150] sm:$0xff] (!%p4345_p13) }
 0x47b   : > { %v3664_v8 = vadd.f32 %v3526_v59, %v2927_v46  ;;  %v3528_v5 = vpop.f32.mrb[186].mxu0  ;;  %v3844_v46 = vld [vmem:[#allocation2 + $0x148] sm:$0xff] (!%p4345_p13)  ;;  %3971 = vst [vmem:[%s5767_s14 + $0x140] sm:$0xff] (!%p4345_p13), %v3843_v55  ;;  %3973 = vst [vmem:[%s5767_s14 + $0x150] sm:$0xff] (!%p4345_p13), %v3845_v58  ;;  %v3883_v45 = vld [vmem:[#allocation2 + $0x280] sm:$0xff] (!%p4345_p13) }
 0x47c   : > { %3791 = vst [vmem:[#allocation2 + $0x3c0] sm:$0xff] %v3663_v47  ;;  %v3665_v11 = vadd.f32 %v3528_v5, %v2928_v63  ;;  %v3530_v38 = vpop.f32.mrb[187].mxu0  ;;  %3972 = vst [vmem:[%s5767_s14 + $0x148] sm:$0xff] (!%p4345_p13), %v3844_v46  ;;  %v3846_v63 = vld [vmem:[#allocation2 + $0x158] sm:$0xff] (!%p4345_p13)  ;;  %v3847_v47 = vld [vmem:[#allocation2 + $0x160] sm:$0xff] (!%p4345_p13) }
 0x47d   : > { %3792 = vst [vmem:[#allocation2 + $0x3c8] sm:$0xff] %v3664_v8  ;;  %v3666_v44 = vadd.f32 %v3530_v38, %v2929_v21  ;;  %3974 = vst [vmem:[%s5767_s14 + $0x158] sm:$0xff] (!%p4345_p13), %v3846_v63  ;;  %v3848_v59 = vld [vmem:[#allocation2 + $0x168] sm:$0xff] (!%p4345_p13)  ;;  %v3849_v21 = vld [vmem:[#allocation2 + $0x170] sm:$0xff] (!%p4345_p13) }
 0x47e   : > { %3793 = vst [vmem:[#allocation2 + $0x3d0] sm:$0xff] %v3665_v11  ;;  %3975 = vst [vmem:[%s5767_s14 + $0x160] sm:$0xff] (!%p4345_p13), %v3847_v47  ;;  %v3850_v8 = vld [vmem:[#allocation2 + $0x178] sm:$0xff] (!%p4345_p13)  ;;  %v3851_v5 = vld [vmem:[#allocation2 + $0x180] sm:$0xff] (!%p4345_p13) }
 0x47f   : > { %3794 = vst [vmem:[#allocation2 + $0x3d8] sm:$0xff] %v3666_v44  ;;  %3976 = vst [vmem:[%s5767_s14 + $0x168] sm:$0xff] (!%p4345_p13), %v3848_v59  ;;  %v3852_v11 = vld [vmem:[#allocation2 + $0x188] sm:$0xff] (!%p4345_p13)  ;;  %v3853_v38 = vld [vmem:[#allocation2 + $0x190] sm:$0xff] (!%p4345_p13) }
 0x480   : > { %3977 = vst [vmem:[%s5767_s14 + $0x170] sm:$0xff] (!%p4345_p13), %v3849_v21  ;;  %3978 = vst [vmem:[%s5767_s14 + $0x178] sm:$0xff] (!%p4345_p13), %v3850_v8  ;;  %v3854_v44 = vld [vmem:[#allocation2 + $0x198] sm:$0xff] (!%p4345_p13)  ;;  %v3884_v34 = vld [vmem:[#allocation2 + $0x288] sm:$0xff] (!%p4345_p13) }
 0x481   : > { %v3534_v13 = vpop.f32.mrb[188].mxu0  ;;  %3802 = sbr.rel (%p4345_p13) target bundleno = 1193 (0x4a9), region = 60  ;;  %3979 = vst [vmem:[%s5767_s14 + $0x180] sm:$0xff] (!%p4345_p13), %v3851_v5  ;;  %3980 = vst [vmem:[%s5767_s14 + $0x188] sm:$0xff] (!%p4345_p13), %v3852_v11  ;;  %v3885_v54 = vld [vmem:[#allocation2 + $0x290] sm:$0xff] (!%p4345_p13)  ;;  %v3886_v24 = vld [vmem:[#allocation2 + $0x298] sm:$0xff] (!%p4345_p13) }
 0x482   : > { %v3667_v2 = vadd.f32 %v3534_v13, %v2930_v23  ;;  %v3536_v31 = vpop.f32.mrb[189].mxu0  ;;  %3981 = vst [vmem:[%s5767_s14 + $0x190] sm:$0xff] (!%p4345_p13), %v3853_v38  ;;  %v3855_v23 = vld [vmem:[#allocation2 + $0x1a0] sm:$0xff] (!%p4345_p13)  ;;  %3982 = vst [vmem:[%s5767_s14 + $0x198] sm:$0xff] (!%p4345_p13), %v3854_v44  ;;  %v3857_v13 = vld [vmem:[#allocation2 + $0x1b0] sm:$0xff] (!%p4345_p13) }
 0x483   : > { %v3668_v56 = vadd.f32 %v3536_v31, %v2931_v39  ;;  %v3538_v0 = vpop.f32.mrb[190].mxu0  ;;  %v3856_v39 = vld [vmem:[#allocation2 + $0x1a8] sm:$0xff] (!%p4345_p13)  ;;  %3983 = vst [vmem:[%s5767_s14 + $0x1a0] sm:$0xff] (!%p4345_p13), %v3855_v23  ;;  %3985 = vst [vmem:[%s5767_s14 + $0x1b0] sm:$0xff] (!%p4345_p13), %v3857_v13  ;;  %v3887_v3 = vld [vmem:[#allocation2 + $0x2a0] sm:$0xff] (!%p4345_p13) }
 0x484   : > { %3795 = vst [vmem:[#allocation2 + $0x3e0] sm:$0xff] %v3667_v2  ;;  %v3669_v42 = vadd.f32 %v3538_v0, %v2932_v41  ;;  %v3540_v43 = vpop.f32.mrb[191].mxu0  ;;  %3984 = vst [vmem:[%s5767_s14 + $0x1a8] sm:$0xff] (!%p4345_p13), %v3856_v39  ;;  %v3858_v41 = vld [vmem:[#allocation2 + $0x1b8] sm:$0xff] (!%p4345_p13)  ;;  %v3859_v2 = vld [vmem:[#allocation2 + $0x1c0] sm:$0xff] (!%p4345_p13) }
 0x485   : > { %3796 = vst [vmem:[#allocation2 + $0x3e8] sm:$0xff] %v3668_v56  ;;  %v3670_v9 = vadd.f32 %v3540_v43, %v2933_v29  ;;  %3986 = vst [vmem:[%s5767_s14 + $0x1b8] sm:$0xff] (!%p4345_p13), %v3858_v41  ;;  %v3860_v31 = vld [vmem:[#allocation2 + $0x1c8] sm:$0xff] (!%p4345_p13)  ;;  %v3861_v29 = vld [vmem:[#allocation2 + $0x1d0] sm:$0xff] (!%p4345_p13) }
 0x486   : > { %3797 = vst [vmem:[#allocation2 + $0x3f0] sm:$0xff] %v3669_v42  ;;  %3987 = vst [vmem:[%s5767_s14 + $0x1c0] sm:$0xff] (!%p4345_p13), %v3859_v2  ;;  %v3862_v56 = vld [vmem:[#allocation2 + $0x1d8] sm:$0xff] (!%p4345_p13)  ;;  %v3863_v0 = vld [vmem:[#allocation2 + $0x1e0] sm:$0xff] (!%p4345_p13) }
 0x487   : > { %3798 = vst [vmem:[#allocation2 + $0x3f8] sm:$0xff] %v3670_v9  ;;  %3988 = vst [vmem:[%s5767_s14 + $0x1c8] sm:$0xff] (!%p4345_p13), %v3860_v31  ;;  %v3864_v42 = vld [vmem:[#allocation2 + $0x1e8] sm:$0xff] (!%p4345_p13)  ;;  %v3865_v43 = vld [vmem:[#allocation2 + $0x1f0] sm:$0xff] (!%p4345_p13) }
 0x488   : > { %3989 = vst [vmem:[%s5767_s14 + $0x1d0] sm:$0xff] %v3861_v29  ;;  %3990 = vst [vmem:[%s5767_s14 + $0x1d8] sm:$0xff] %v3862_v56  ;;  %v3866_v9 = vld [vmem:[#allocation2 + $0x1f8] sm:$0xff]  ;;  %v3888_v16 = vld [vmem:[#allocation2 + $0x2a8] sm:$0xff] }
 0x489   : > { %3991 = vst [vmem:[%s5767_s14 + $0x1e0] sm:$0xff] %v3863_v0  ;;  %3992 = vst [vmem:[%s5767_s14 + $0x1e8] sm:$0xff] %v3864_v42  ;;  %v3889_v28 = vld [vmem:[#allocation2 + $0x2b0] sm:$0xff]  ;;  %v3890_v1 = vld [vmem:[#allocation2 + $0x2b8] sm:$0xff] }
 0x48a   : > { %3993 = vst [vmem:[%s5767_s14 + $0x1f0] sm:$0xff] %v3865_v43  ;;  %3994 = vst [vmem:[%s5767_s14 + $0x1f8] sm:$0xff] %v3866_v9  ;;  %v3891_v40 = vld [vmem:[#allocation2 + $0x2c0] sm:$0xff]  ;;  %v3892_v25 = vld [vmem:[#allocation2 + $0x2c8] sm:$0xff] }
 0x48b   : > { %3999 = vst [vmem:[%s5767_s14 + $0x220] sm:$0xff] %v3871_v60  ;;  %4000 = vst [vmem:[%s5767_s14 + $0x228] sm:$0xff] %v3872_v57  ;;  %v3893_v4 = vld [vmem:[#allocation2 + $0x2d0] sm:$0xff]  ;;  %v3894_v33 = vld [vmem:[#allocation2 + $0x2d8] sm:$0xff] }
 0x48c   : > { %4001 = vst [vmem:[%s5767_s14 + $0x230] sm:$0xff] %v3873_v26  ;;  %4002 = vst [vmem:[%s5767_s14 + $0x238] sm:$0xff] %v3874_v51  ;;  %v3895_v36 = vld [vmem:[#allocation2 + $0x2e0] sm:$0xff]  ;;  %v3896_v37 = vld [vmem:[#allocation2 + $0x2e8] sm:$0xff] }
 0x48d   : > { %4003 = vst [vmem:[%s5767_s14 + $0x240] sm:$0xff] %v3875_v30  ;;  %4004 = vst [vmem:[%s5767_s14 + $0x248] sm:$0xff] %v3876_v19  ;;  %v3897_v35 = vld [vmem:[#allocation2 + $0x2f0] sm:$0xff]  ;;  %v3898_v22 = vld [vmem:[#allocation2 + $0x2f8] sm:$0xff] }
 0x48e   : > { %4005 = vst [vmem:[%s5767_s14 + $0x250] sm:$0xff] %v3877_v14  ;;  %4006 = vst [vmem:[%s5767_s14 + $0x258] sm:$0xff] %v3878_v18  ;;  %v3899_v48 = vld [vmem:[#allocation2 + $0x300] sm:$0xff]  ;;  %v3900_v32 = vld [vmem:[#allocation2 + $0x308] sm:$0xff] }
 0x48f   : > { %4007 = vst [vmem:[%s5767_s14 + $0x260] sm:$0xff] %v3879_v15  ;;  %4008 = vst [vmem:[%s5767_s14 + $0x268] sm:$0xff] %v3880_v27  ;;  %v3901_v53 = vld [vmem:[#allocation2 + $0x310] sm:$0xff]  ;;  %v3902_v12 = vld [vmem:[#allocation2 + $0x318] sm:$0xff] }
 0x490   : > { %4009 = vst [vmem:[%s5767_s14 + $0x270] sm:$0xff] %v3881_v10  ;;  %4010 = vst [vmem:[%s5767_s14 + $0x278] sm:$0xff] %v3882_v50  ;;  %v3903_v49 = vld [vmem:[#allocation2 + $0x320] sm:$0xff]  ;;  %v3904_v61 = vld [vmem:[#allocation2 + $0x328] sm:$0xff] }
 0x491   : > { %4011 = vst [vmem:[%s5767_s14 + $0x280] sm:$0xff] %v3883_v45  ;;  %4012 = vst [vmem:[%s5767_s14 + $0x288] sm:$0xff] %v3884_v34  ;;  %v3905_v20 = vld [vmem:[#allocation2 + $0x330] sm:$0xff]  ;;  %v3906_v62 = vld [vmem:[#allocation2 + $0x338] sm:$0xff] }
 0x492   : > { %4013 = vst [vmem:[%s5767_s14 + $0x290] sm:$0xff] %v3885_v54  ;;  %4014 = vst [vmem:[%s5767_s14 + $0x298] sm:$0xff] %v3886_v24  ;;  %v3907_v55 = vld [vmem:[#allocation2 + $0x340] sm:$0xff]  ;;  %v3908_v46 = vld [vmem:[#allocation2 + $0x348] sm:$0xff] }
 0x493   : > { %4015 = vst [vmem:[%s5767_s14 + $0x2a0] sm:$0xff] %v3887_v3  ;;  %4016 = vst [vmem:[%s5767_s14 + $0x2a8] sm:$0xff] %v3888_v16  ;;  %v3909_v58 = vld [vmem:[#allocation2 + $0x350] sm:$0xff]  ;;  %v3910_v63 = vld [vmem:[#allocation2 + $0x358] sm:$0xff] }
 0x494   : > { %4017 = vst [vmem:[%s5767_s14 + $0x2b0] sm:$0xff] %v3889_v28  ;;  %4018 = vst [vmem:[%s5767_s14 + $0x2b8] sm:$0xff] %v3890_v1  ;;  %v3911_v47 = vld [vmem:[#allocation2 + $0x360] sm:$0xff]  ;;  %v3912_v59 = vld [vmem:[#allocation2 + $0x368] sm:$0xff] }
 0x495   : > { %4019 = vst [vmem:[%s5767_s14 + $0x2c0] sm:$0xff] %v3891_v40  ;;  %4020 = vst [vmem:[%s5767_s14 + $0x2c8] sm:$0xff] %v3892_v25  ;;  %v3913_v21 = vld [vmem:[#allocation2 + $0x370] sm:$0xff]  ;;  %v3914_v8 = vld [vmem:[#allocation2 + $0x378] sm:$0xff] }
 0x496   : > { %4021 = vst [vmem:[%s5767_s14 + $0x2d0] sm:$0xff] %v3893_v4  ;;  %4022 = vst [vmem:[%s5767_s14 + $0x2d8] sm:$0xff] %v3894_v33  ;;  %v3915_v5 = vld [vmem:[#allocation2 + $0x380] sm:$0xff]  ;;  %v3916_v11 = vld [vmem:[#allocation2 + $0x388] sm:$0xff] }
 0x497   : > { %4023 = vst [vmem:[%s5767_s14 + $0x2e0] sm:$0xff] %v3895_v36  ;;  %4024 = vst [vmem:[%s5767_s14 + $0x2e8] sm:$0xff] %v3896_v37  ;;  %v3917_v38 = vld [vmem:[#allocation2 + $0x390] sm:$0xff]  ;;  %v3918_v44 = vld [vmem:[#allocation2 + $0x398] sm:$0xff] }
 0x498   : > { %4025 = vst [vmem:[%s5767_s14 + $0x2f0] sm:$0xff] %v3897_v35  ;;  %4026 = vst [vmem:[%s5767_s14 + $0x2f8] sm:$0xff] %v3898_v22  ;;  %v3919_v23 = vld [vmem:[#allocation2 + $0x3a0] sm:$0xff]  ;;  %v3920_v39 = vld [vmem:[#allocation2 + $0x3a8] sm:$0xff] }
 0x499   : > { %4027 = vst [vmem:[%s5767_s14 + $0x300] sm:$0xff] %v3899_v48  ;;  %4028 = vst [vmem:[%s5767_s14 + $0x308] sm:$0xff] %v3900_v32  ;;  %v3921_v13 = vld [vmem:[#allocation2 + $0x3b0] sm:$0xff]  ;;  %v3922_v41 = vld [vmem:[#allocation2 + $0x3b8] sm:$0xff] }
 0x49a   : > { %4029 = vst [vmem:[%s5767_s14 + $0x310] sm:$0xff] %v3901_v53  ;;  %4030 = vst [vmem:[%s5767_s14 + $0x318] sm:$0xff] %v3902_v12  ;;  %v3923_v2 = vld [vmem:[#allocation2 + $0x3c0] sm:$0xff]  ;;  %v3924_v31 = vld [vmem:[#allocation2 + $0x3c8] sm:$0xff] }
 0x49b   : > { %4031 = vst [vmem:[%s5767_s14 + $0x320] sm:$0xff] %v3903_v49  ;;  %4032 = vst [vmem:[%s5767_s14 + $0x328] sm:$0xff] %v3904_v61  ;;  %v3925_v29 = vld [vmem:[#allocation2 + $0x3d0] sm:$0xff]  ;;  %v3926_v56 = vld [vmem:[#allocation2 + $0x3d8] sm:$0xff] }
 0x49c   : > { %4033 = vst [vmem:[%s5767_s14 + $0x330] sm:$0xff] %v3905_v20  ;;  %4034 = vst [vmem:[%s5767_s14 + $0x338] sm:$0xff] %v3906_v62  ;;  %v3927_v0 = vld [vmem:[#allocation2 + $0x3e0] sm:$0xff]  ;;  %v3928_v42 = vld [vmem:[#allocation2 + $0x3e8] sm:$0xff] }
 0x49d   : > { %4035 = vst [vmem:[%s5767_s14 + $0x340] sm:$0xff] %v3907_v55  ;;  %4036 = vst [vmem:[%s5767_s14 + $0x348] sm:$0xff] %v3908_v46  ;;  %v3929_v43 = vld [vmem:[#allocation2 + $0x3f0] sm:$0xff]  ;;  %v3930_v9 = vld [vmem:[#allocation2 + $0x3f8] sm:$0xff] }
 0x49e   : > { %4037 = vst [vmem:[%s5767_s14 + $0x350] sm:$0xff] %v3909_v58  ;;  %4038 = vst [vmem:[%s5767_s14 + $0x358] sm:$0xff] %v3910_v63 }
 0x49f   : > { %4039 = vst [vmem:[%s5767_s14 + $0x360] sm:$0xff] %v3911_v47  ;;  %4040 = vst [vmem:[%s5767_s14 + $0x368] sm:$0xff] %v3912_v59 }
 0x4a0   : > { %4041 = vst [vmem:[%s5767_s14 + $0x370] sm:$0xff] %v3913_v21  ;;  %4042 = vst [vmem:[%s5767_s14 + $0x378] sm:$0xff] %v3914_v8 }
 0x4a1   : > { %4043 = vst [vmem:[%s5767_s14 + $0x380] sm:$0xff] %v3915_v5  ;;  %4044 = vst [vmem:[%s5767_s14 + $0x388] sm:$0xff] %v3916_v11 }
 0x4a2   : > { %4045 = vst [vmem:[%s5767_s14 + $0x390] sm:$0xff] %v3917_v38  ;;  %4046 = vst [vmem:[%s5767_s14 + $0x398] sm:$0xff] %v3918_v44 }
 0x4a3   : > { %4047 = vst [vmem:[%s5767_s14 + $0x3a0] sm:$0xff] %v3919_v23  ;;  %4048 = vst [vmem:[%s5767_s14 + $0x3a8] sm:$0xff] %v3920_v39 }
 0x4a4   : > { %4049 = vst [vmem:[%s5767_s14 + $0x3b0] sm:$0xff] %v3921_v13  ;;  %4050 = vst [vmem:[%s5767_s14 + $0x3b8] sm:$0xff] %v3922_v41 }
 0x4a5   : > { %4051 = vst [vmem:[%s5767_s14 + $0x3c0] sm:$0xff] %v3923_v2  ;;  %4052 = vst [vmem:[%s5767_s14 + $0x3c8] sm:$0xff] %v3924_v31 }
 0x4a6   : > { %4053 = vst [vmem:[%s5767_s14 + $0x3d0] sm:$0xff] %v3925_v29  ;;  %4054 = vst [vmem:[%s5767_s14 + $0x3d8] sm:$0xff] %v3926_v56 }
 0x4a7   : > { %4055 = vst [vmem:[%s5767_s14 + $0x3e0] sm:$0xff] %v3927_v0  ;;  %4056 = vst [vmem:[%s5767_s14 + $0x3e8] sm:$0xff] %v3928_v42 }
 0x4a8   : > { %4057 = vst [vmem:[%s5767_s14 + $0x3f0] sm:$0xff] %v3929_v43  ;;  %4058 = vst [vmem:[%s5767_s14 + $0x3f8] sm:$0xff] %v3930_v9 }
 0x4a9 PF: > { %s9258_s21 = sld [smem:[#allocation18_spill]]  ;;  %s9259_s9 = sld [smem:[#allocation159_spill]] }
 0x4aa   : > { %s4073_s17 = sshll.u32 %s5767_s14, 4  ;;  %s8616_s18 = scalar_lea.sflag [#allocation5], %s334_s11  ;;  %s8612_s17 = int_to_ptr.vmem [resolvable:$true] %s4073_s17 }
 0x4ab   : > { %s5294_s5 = scalar_lea.vmem %s8612_s17, 16384  ;;  %p9260_p12 = scmp.ne.s32.totalorder %s8807_s30, 0 }
 0x4ac   : > { %p5295_p1 = scmp.ne.s32.totalorder %s8612_s17, %s5294_s5  ;;  %s5436_s13 = smov [#allocation11]  }
 0x4ad   : > { %s5298_s23 = sshll.u32 %s5436_s13, 4  ;;  %s5299_s23 = int_to_ptr.vmem [resolvable:$false] %s5298_s23 }
 0x4ae   : > { %p5296_p8 = pnand %p5295_p1, %p9260_p12  ;;  %s5300_s7 = scalar_lea.vmem %s5299_s23, 32768 }
 0x4af   : > { %s4355_s28 = sshll.u32 %s9258_s21, 14  ;;  %p5301_p0 = scmp.lt.s32.totalorder %s8612_s17, %s5299_s23 }
 0x4b0   : > { %s8609_s22 = scalar_lea.hbm %s9259_s9, %s4355_s28  ;;  %p5297_p5 = pneg %p5296_p8 }
 0x4b1   : > { %p5302_p6 = scmp.lt.s32.totalorder %s5300_s7, %s5294_s5 }
 0x4b3   : > { %p5303_p7 = por %p5302_p6, %p5301_p0 }
 0x4b5   : > { %p5304_p9 = pnand %p5303_p7, %p5297_p5 }
 0x4b7   : > { %5307 = shalt.err (!%p5304_p9)
}
 0x4b8   : > { %s5308_s10 = scalar_lea.hbm %s8609_s22, 16384  ;;  %s5312_s12 = scalar_lea.hbm %s9259_s9, 32768 }
 0x4b9   : > { %p5309_p2 = scmp.ne.s32.totalorder %s8609_s22, %s5308_s10  ;;  %p5313_p11 = scmp.lt.u32.totalorder %s8609_s22, %s9259_s9 }
 0x4ba   : > { %p5314_p10 = scmp.lt.u32.totalorder %s5312_s12, %s5308_s10  ;;  %p5316_p1 = scmp.lt.u32.totalorder %s5308_s10, %s8609_s22 }
 0x4bb   : > { %p5310_p4 = pnand %p5309_p2, %p9260_p12 }
 0x4bc   : > { %p5315_p13 = por %p5314_p10, %p5313_p11 }
 0x4bd   : > { %p5311_p3 = pneg %p5310_p4 }
 0x4be   : > { %p5317_p8 = por %p5316_p1, %p5315_p13 }
 0x4c0   : > { %p5318_p5 = pnand %p5317_p8, %p5311_p3 }
 0x4c2   : > { %5321 = shalt.err (!%p5318_p5)
}
 0x4c3   : > { %s5437_s27 = smov 256   ;;  %s5438_s24 = smov 16  }
 0x4c4   : > { %4398 = dma.vmem_to_hbm [thread:$0]  (%p9260_p12), %s8612_s17, 16384, %s8609_s22, %s8616_s18, %s5437_s27, %s5437_s27, %s5438_s24  }
 0x4c5 PF: > { %s9261_s11 = sld [smem:[#allocation25_spill]]  ;;  %p4421_p0 = scmp.ge.s32.totalorder %s5424_s25, 2 }
 0x4c6   : > { %s4088_s26 = sand.u32 1, %s5384_s15  }
 0x4c7   : > { %s4089_s14 = scalar_lea.sflag [#allocation5], %s4088_s26 }
 0x4cb   : > { %p9262_p6 = scmp.ne.s32.totalorder %s9261_s11, 0 }
 0x4cd   : > { %p4415_p7 = pnand %p4421_p0, %p9262_p6 }
 0x4cf   : > { %5379 = dma.done.wait (!%p4415_p7), %s4089_s14, 16384  }
 0x4d0   : > { %5381 = vsyncadd (!%p4415_p7), %s4089_s14, 4294950912  ;;  %s24_s25 = sadd.s32 1, %s5424_s25   ;;  %s9263_s21 = sld [smem:[#allocation16_spill]] }
 0x4d1   : > { %p21_p9 = scmp.ge.s32.totalorder %s24_s25, 6   ;;  %s9264_s17 = sld [smem:[#allocation24_spill]] }
 0x4d2   : > { %s9265_s30 = sld [smem:[#allocation17_spill]]  ;;  %s9266_s20 = sld [smem:[#allocation23_spill]] }
 0x4d3   : > { %s9267_s28 = sld [smem:[#allocation19_spill]]  ;;  %s9268_s22 = sld [smem:[#allocation20_spill]] }
 0x4d4   : > { %s9269_s23 = sld [smem:[#allocation21_spill]]  ;;  %s9270_s24 = sld [smem:[#allocation22_spill]] }
 0x4d5   : > { %s9271_s15 = smov %s5388_s16  ;;  %s9273_s18 = smov %s5400_s19 }
 0x4d6   : > { %s9272_s16 = smov %s9263_s21  ;;  %23 = sbr.rel (!%p21_p9) target bundleno = 15 (0xf), region = 118 }
 0x4d8   : > { %s9274_s19 = smov %s9265_s30 }
 0x4d9   : > { %s9275_s21 = smov %s9267_s28 }
 0x4dd   :  { %4094 = vsyncpa [#allocation4], 1 }
 0x4de   :  { %4096 = vsyncpa [#allocation4 + $0x1], 1 }
 0x4df   :  { %4097 = vsyncpa [#allocation7], 1 }
 0x4e0   :  { %4099 = vsyncpa [#allocation7 + $0x1], 1 }
 0x4e1   :  { %4100 = vsyncpa [#allocation10], 1 }
 0x4e2   :  { %4102 = vsyncpa [#allocation10 + $0x1], 1 }
 0x4e3   :  { %4103 = vsyncpa [#allocation5], 1 }
 0x4e4   :  { %4105 = vsyncpa [#allocation5 + $0x1], 1 }

</bundles_post_ra>
